<compile_context>
chip_gen: v5e
topology: v5e:2x2
jax: 0.10.0
libtpu: 0.0.40
codegen_flags: <defaults>
</compile_context>

<pallas_src>
import functools
import math

import jax
import jax.numpy as jnp
from jax import lax
from jax.experimental import pallas as pl
from jax.experimental.pallas import tpu as pltpu


def _softmax_dim_minus2(ctx):
    """PyTorch softmax(dim=-2) on a (D, D) f32 context: normalize each column over rows.

    Exact division (per the correctness feedback): the denominator is a single (1, D)
    vector per head, so the approx-reciprocal EUP saving is negligible.
    """
    m = jnp.max(ctx, axis=0, keepdims=True)
    e = jnp.exp(ctx - m)
    s = jnp.sum(e, axis=0, keepdims=True)
    return e / s


# Contract over the token axis of both operands: k^T @ v without materializing a transpose.
_TOKEN_CONTRACT = (((0,), (0,)), ((), ()))


def _project_kv(x, w, compute_dtype):
    """(BB, T, C) tokens @ (C, 2C) fused K|V weights -> (BB, T, 2C) in compute dtype."""
    BB, T, C = x.shape
    kv = jnp.dot(x.reshape(BB * T, C), w, preferred_element_type=jnp.float32)
    # Single cast right after the projection: the f32 accumulator dies here instead of
    # staying co-resident with per-head compute-dtype slices.
    return kv.reshape(BB, T, 2 * C).astype(compute_dtype)


def _channel_attention_fused_kernel(
        x1_ref, x2_ref, wkv1_ref, wkv2_ref, o1_ref, o2_ref, *,
        scale, num_heads, head_dim, compute_dtype, per_head_store):
    """Whole-N path: one grid step per batch tile."""
    H, D = num_heads, head_dim
    C = H * D
    BB = x1_ref.shape[0]

    x1 = x1_ref[...].astype(compute_dtype)            # (BB, N, C) — also the queries
    x2 = x2_ref[...].astype(compute_dtype)
    kv1 = _project_kv(x1, wkv1_ref[...], compute_dtype)   # (BB, N, 2C) [K feats | V feats]
    kv2 = _project_kv(x2, wkv2_ref[...], compute_dtype)

    for b in range(BB):                                # BB, H small -> static unroll
        o1_heads, o2_heads = [], []
        for h in range(H):
            ks = slice(h * D, (h + 1) * D)
            vs = slice(C + h * D, C + (h + 1) * D)
            ctx1 = lax.dot_general(kv1[b][:, ks], kv1[b][:, vs], _TOKEN_CONTRACT,
                                   preferred_element_type=jnp.float32)
            ctx2 = lax.dot_general(kv2[b][:, ks], kv2[b][:, vs], _TOKEN_CONTRACT,
                                   preferred_element_type=jnp.float32)
            ctx1 = _softmax_dim_minus2(ctx1 * scale).astype(compute_dtype)   # (D, D)
            ctx2 = _softmax_dim_minus2(ctx2 * scale).astype(compute_dtype)
            # Cross application: stream-1 queries use stream-2 context and vice versa.
            o1h = jnp.dot(x1[b][:, ks], ctx2, preferred_element_type=jnp.float32)
            o2h = jnp.dot(x2[b][:, ks], ctx1, preferred_element_type=jnp.float32)
            if per_head_store:
                # D % 128 == 0: per-head store stays an unmasked lane-dense vst and
                # frees each head's vregs immediately (no (N, C) concat temporary).
                o1_ref[b, :, ks] = o1h.astype(o1_ref.dtype)
                o2_ref[b, :, ks] = o2h.astype(o2_ref.dtype)
            else:
                o1_heads.append(o1h)
                o2_heads.append(o2h)
        if not per_head_store:
            o1_ref[b] = jnp.concatenate(o1_heads, axis=-1).astype(o1_ref.dtype)
            o2_ref[b] = jnp.concatenate(o2_heads, axis=-1).astype(o2_ref.dtype)


def _channel_attention_tiled_kernel(
        x1_ref, x2_ref, wkv1_ref, wkv2_ref, o1_ref, o2_ref, ctx_acc, *,
        scale, num_heads, head_dim, compute_dtype, per_head_store):
    """N-tiled two-pass path. grid = (batch_tiles, 2, n_tiles).

    phase 0: accumulate ctx into the (2*BB*H, D, D) f32 scratch; softmax on last n-tile.
    phase 1: per n-tile, compute q @ ctx_cross and store per head.
    Output blocks are only written in phase 1 (the out index_map parks phase-0 steps on
    the phase-1 n==0 block, so nothing stale is ever flushed).
    """
    H, D = num_heads, head_dim
    C = H * D
    BB = x1_ref.shape[0]
    phase = pl.program_id(1)
    n = pl.program_id(2)
    num_n = pl.num_programs(2)

    @pl.when(phase == 0)
    def _accumulate():
        @pl.when(n == 0)
        def _init():
            ctx_acc[...] = jnp.zeros_like(ctx_acc)

        x1 = x1_ref[...].astype(compute_dtype)
        x2 = x2_ref[...].astype(compute_dtype)
        kv1 = _project_kv(x1, wkv1_ref[...], compute_dtype)
        kv2 = _project_kv(x2, wkv2_ref[...], compute_dtype)
        for b in range(BB):
            for h in range(H):
                ks = slice(h * D, (h + 1) * D)
                vs = slice(C + h * D, C + (h + 1) * D)
                ctx_acc[(0 * BB + b) * H + h] += lax.dot_general(
                    kv1[b][:, ks], kv1[b][:, vs], _TOKEN_CONTRACT,
                    preferred_element_type=jnp.float32)
                ctx_acc[(1 * BB + b) * H + h] += lax.dot_general(
                    kv2[b][:, ks], kv2[b][:, vs], _TOKEN_CONTRACT,
                    preferred_element_type=jnp.float32)

        @pl.when(n == num_n - 1)
        def _finalize():
            # Scale once at the end (equivalent to scaling each partial sum), then
            # softmax(dim=-2) in place, still f32.
            for i in range(2 * BB * H):
                ctx_acc[i] = _softmax_dim_minus2(ctx_acc[i] * scale)

    @pl.when(phase == 1)
    def _apply():
        x1 = x1_ref[...].astype(compute_dtype)      # queries for this n-tile
        x2 = x2_ref[...].astype(compute_dtype)
        for b in range(BB):
            o1_heads, o2_heads = [], []
            for h in range(H):
                ks = slice(h * D, (h + 1) * D)
                ctx1 = ctx_acc[(0 * BB + b) * H + h].astype(compute_dtype)
                ctx2 = ctx_acc[(1 * BB + b) * H + h].astype(compute_dtype)
                o1h = jnp.dot(x1[b][:, ks], ctx2, preferred_element_type=jnp.float32)
                o2h = jnp.dot(x2[b][:, ks], ctx1, preferred_element_type=jnp.float32)
                if per_head_store:
                    o1_ref[b, :, ks] = o1h.astype(o1_ref.dtype)
                    o2_ref[b, :, ks] = o2h.astype(o2_ref.dtype)
                else:
                    o1_heads.append(o1h)
                    o2_heads.append(o2h)
            if not per_head_store:
                o1_ref[b] = jnp.concatenate(o1_heads, axis=-1).astype(o1_ref.dtype)
                o2_ref[b] = jnp.concatenate(o2_heads, axis=-1).astype(o2_ref.dtype)


def _physical_vmem_bytes():
    """Generation-aware VMEM capacity (128 MiB v5e/v6e, 64 MiB per TensorCore on v7x)."""
    try:
        return int(pltpu.get_tpu_info().vmem_capacity_bytes)
    except Exception:
        return 64 * 1024 * 1024    # conservative fallback (v7x per-core)


def _fused_vmem_estimate(BB, N, C, D, io_bytes, cmp_bytes, w_bytes):
    return int(
        4 * 2 * BB * N * C * io_bytes              # x1/x2/o1/o2 blocks, double-buffered
        + 2 * 2 * C * 2 * C * w_bytes              # weight slabs (worst case 2 buffers)
        + 2 * BB * N * C * cmp_bytes               # compute-dtype copies of x1/x2
        + 2 * BB * N * 2 * C * (4 + cmp_bytes)     # kv f32 accumulators + cast copies
        + 16 * D * D * 4                           # per-head ctx / softmax temporaries
    )


def _tiled_vmem_estimate(BB, TN, C, H, D, io_bytes, cmp_bytes, w_bytes):
    return int(
        4 * 2 * BB * TN * C * io_bytes
        + 2 * 2 * C * 2 * C * w_bytes
        + 2 * BB * TN * C * cmp_bytes
        + 2 * BB * TN * 2 * C * (4 + cmp_bytes)
        + 2 * 2 * BB * H * D * D * 4               # ctx scratch + softmax temporaries
        + 16 * D * D * 4
    )


def _pick_n_tile(N, fits):
    """Largest divisor of N that is a multiple of 8 (or N itself) whose estimate fits."""
    cands = [d for d in range(N, 0, -1) if N % d == 0 and (d % 8 == 0 or d == N)]
    for d in cands:
        if fits(d):
            return d
    return cands[-1]


def channel_attention(x1, x2, w_kv1, w_kv2, num_heads, qk_scale=None,
                      compute_dtype=jnp.bfloat16, batch_tile=1, n_tile=None):
    """x1, x2: (B, N, C); w_kv1, w_kv2: (2C, C) (PyTorch nn.Linear weight layout).

    compute_dtype: MXU operand dtype (bf16 by default; accumulation, softmax and outputs
    stay f32 / input dtype). n_tile: force the N-tiled two-pass path with this token tile;
    by default the whole-N fused path is used whenever it fits the VMEM budget.
    """
    B, N, C = x1.shape
    H = num_heads
    assert C % H == 0, "dim must be divisible by num_heads"
    D = C // H
    assert B % batch_tile == 0, "batch must be divisible by batch_tile"
    BB = batch_tile
    scale = float(qk_scale) if qk_scale is not None else D ** (-0.5)
    compute_dtype = jnp.dtype(compute_dtype)

    # nn.Linear computes y = x @ W.T; transpose + cast once outside the kernel so K|V come
    # out of one wide MXU dot and the (resident) weight DMA moves compute-dtype bytes.
    wkv1 = jnp.asarray(w_kv1).T.astype(compute_dtype)   # (C, 2C): [K feats | V feats]
    wkv2 = jnp.asarray(w_kv2).T.astype(compute_dtype)

    io_bytes = jnp.dtype(x1.dtype).itemsize
    cmp_bytes = compute_dtype.itemsize
    w_bytes = cmp_bytes

    phys_vmem = _physical_vmem_bytes()
    budget = int(0.80 * phys_vmem)

    # D % 128 == 0 -> per-head output stores are lane-aligned unmasked vst's.
    per_head_store = (D % 128 == 0)

    kernel_kwargs = dict(scale=scale, num_heads=H, head_dim=D,
                         compute_dtype=compute_dtype, per_head_store=per_head_store)

    fused_est = _fused_vmem_estimate(BB, N, C, D, io_bytes, cmp_bytes, w_bytes)
    use_tiled = (n_tile is not None) or (fused_est > budget)

    if not use_tiled:
        TN = N
        est = fused_est
        grid = (B // BB,)
        dims = ("parallel",)
        x_map = lambda b: (b, 0, 0)
        w_map = lambda b: (0, 0)
        o_map = x_map
        kernel = functools.partial(_channel_attention_fused_kernel, **kernel_kwargs)
        scratch_shapes = []
    else:
        if n_tile is not None:
            TN = int(n_tile)
            assert N % TN == 0, "n_tile must divide N"
        else:
            TN = _pick_n_tile(
                N, lambda t: _tiled_vmem_estimate(
                    BB, t, C, H, D, io_bytes, cmp_bytes, w_bytes) <= budget)
        est = _tiled_vmem_estimate(BB, TN, C, H, D, io_bytes, cmp_bytes, w_bytes)
        grid = (B // BB, 2, N // TN)
        dims = ("parallel", "arbitrary", "arbitrary")
        x_map = lambda b, p, n: (b, n, 0)
        w_map = lambda b, p, n: (0, 0)
        # Phase 0 parks the output block on (b, 0); blocks are written (and flushed)
        # only during phase 1, one lane-dense (BB, TN, C) block per n-tile.
        o_map = lambda b, p, n: (b, p * n, 0)
        kernel = functools.partial(_channel_attention_tiled_kernel, **kernel_kwargs)
        scratch_shapes = [pltpu.VMEM((2 * BB * H, D, D), jnp.float32)]

    x_spec = pl.BlockSpec((BB, TN, C), x_map)
    o_spec = pl.BlockSpec((BB, TN, C), o_map)

    # Generation-aware scoped-VMEM request: 2x the estimated working set, capped at ~85%
    # of physical VMEM; no hard 64 MiB clamp.
    vmem_limit = int(min(max(2 * est, 32 * 1024 * 1024), int(0.85 * phys_vmem)))
    compiler_params = pltpu.CompilerParams(dimension_semantics=dims,
                                           vmem_limit_bytes=vmem_limit)

    x_reads = 2 if use_tiled else 1   # tiled path streams x twice (accumulate + apply)
    cost = pl.CostEstimate(
        flops=int(8 * B * N * C * C + 8 * B * N * C * D),
        transcendentals=int(2 * B * C * D),
        bytes_accessed=int((2 * x_reads + 2) * B * N * C * io_bytes
                           + 2 * 2 * C * C * w_bytes),
    )

    out_shape = (jax.ShapeDtypeStruct((B, N, C), x1.dtype),
                 jax.ShapeDtypeStruct((B, N, C), x2.dtype))

    def _call(single_buffer_weights):
        if single_buffer_weights:
            # Constant index_map already means "DMA once, stay resident"; Buffered(1)
            # additionally drops the dead second pipeline buffer per weight slab.
            w_spec = pl.BlockSpec((C, 2 * C), w_map, pipeline_mode=pl.Buffered(1))
        else:
            w_spec = pl.BlockSpec((C, 2 * C), w_map)
        return pl.pallas_call(
            kernel,
            out_shape=out_shape,
            grid=grid,
            in_specs=[x_spec, x_spec, w_spec, w_spec],
            out_specs=(o_spec, o_spec),
            scratch_shapes=scratch_shapes,
            compiler_params=compiler_params,
            cost_estimate=cost,
        )(x1, x2, wkv1, wkv2)

    try:
        return _call(single_buffer_weights=True)
    except Exception:
        # Defensive fallback if pl.Buffered(1) is unsupported by this Pallas version;
        # a genuine kernel error re-raises identically from the second attempt.
        return _call(single_buffer_weights=False)


def channel_attention_reference(x1, x2, w_kv1, w_kv2, num_heads, qk_scale=None):
    B, N, C = x1.shape
    H = num_heads
    D = C // H
    scale = qk_scale if qk_scale is not None else D ** (-0.5)

    def heads(t):
        return t.reshape(B, N, H, D).transpose(0, 2, 1, 3)   # (B, H, N, D)

    q1, q2 = heads(x1), heads(x2)
    kv1 = x1 @ w_kv1.T
    kv2 = x2 @ w_kv2.T
    k1, v1 = heads(kv1[..., :C]), heads(kv1[..., C:])
    k2, v2 = heads(kv2[..., :C]), heads(kv2[..., C:])

    ctx1 = jax.nn.softmax(jnp.einsum('bhnd,bhne->bhde', k1, v1) * scale, axis=-2)
    ctx2 = jax.nn.softmax(jnp.einsum('bhnd,bhne->bhde', k2, v2) * scale, axis=-2)

    o1 = jnp.einsum('bhnd,bhde->bhne', q1, ctx2).transpose(0, 2, 1, 3).reshape(B, N, C)
    o2 = jnp.einsum('bhnd,bhde->bhne', q2, ctx1).transpose(0, 2, 1, 3).reshape(B, N, C)
    return o1, o2


if __name__ == "__main__":
    # Small shapes consistent with the module: dim % num_heads == 0, head_dim = 128.
    B, N, C = 2, 16, 256
    num_heads = 2

    key = jax.random.PRNGKey(0)
    k_x1, k_x2, k_w1, k_w2 = jax.random.split(key, 4)
    x1 = jax.random.normal(k_x1, (B, N, C), dtype=jnp.float32)
    x2 = jax.random.normal(k_x2, (B, N, C), dtype=jnp.float32)
    # Deterministic nn.Linear-style weights: (out=2C, in=C), no bias (qkv_bias=False).
    w_scale = 1.0 / math.sqrt(C)
    w_kv1 = jax.random.normal(k_w1, (2 * C, C), dtype=jnp.float32) * w_scale
    w_kv2 = jax.random.normal(k_w2, (2 * C, C), dtype=jnp.float32) * w_scale

    r1, r2 = channel_attention_reference(x1, x2, w_kv1, w_kv2, num_heads)

    def check(o, r, tol, tag):
        o = jax.block_until_ready(o)
        assert jnp.allclose(o, r, rtol=tol, atol=tol), \
            f"{tag}: max abs err {jnp.max(jnp.abs(o - r))}"

    # 1) Fused whole-N path, exact f32 compute (tight parity with the PyTorch math).
    o1, o2 = channel_attention(x1, x2, w_kv1, w_kv2, num_heads,
                               compute_dtype=jnp.float32, batch_tile=1)
    check(o1, r1, 2e-3, "fused f32 out1")
    check(o2, r2, 2e-3, "fused f32 out2")

    # 2) N-tiled two-pass path (the large-N / v7x path), exact f32 compute.
    t1, t2 = channel_attention(x1, x2, w_kv1, w_kv2, num_heads,
                               compute_dtype=jnp.float32, batch_tile=1, n_tile=8)
    check(t1, r1, 2e-3, "tiled f32 out1")
    check(t2, r2, 2e-3, "tiled f32 out2")

    # 3) Default bf16-MXU path (f32 accumulation + f32 softmax), fused, row-packed batch.
    b1, b2 = channel_attention(x1, x2, w_kv1, w_kv2, num_heads, batch_tile=2)
    check(b1, r1, 3e-2, "fused bf16 out1")
    check(b2, r2, 3e-2, "fused bf16 out2")

    # 4) Default bf16-MXU path through the N-tiled kernel.
    c1, c2 = channel_attention(x1, x2, w_kv1, w_kv2, num_heads, batch_tile=2, n_tile=8)
    check(c1, r1, 3e-2, "tiled bf16 out1")
    check(c2, r2, 3e-2, "tiled bf16 out2")

    print("KERNEL_OK")
</pallas_src>

<mosaic_0001>
module attributes {stable_mosaic.version = 11 : i64} {
  func.func @_channel_attention_fused_kernel(%arg0: i32, %arg1: memref<1x16x256xf32, #tpu.memory_space<vmem>>, %arg2: memref<1x16x256xf32, #tpu.memory_space<vmem>>, %arg3: memref<256x512xf32, #tpu.memory_space<vmem>>, %arg4: memref<256x512xf32, #tpu.memory_space<vmem>>, %arg5: memref<1x16x256xf32, #tpu.memory_space<vmem>>, %arg6: memref<1x16x256xf32, #tpu.memory_space<vmem>>) attributes {dimension_semantics = [#tpu.dimension_semantics<parallel>], iteration_bounds = array<i64: 2>, scalar_prefetch = 0 : i64, scratch_operands = 0 : i64, tpu.core_type = #tpu.core_type<tc>, window_params = [{transform_indices = @transform_0, window_bounds = array<i64: 1, 16, 256>}, {transform_indices = @transform_1, window_bounds = array<i64: 1, 16, 256>}, {pipeline_mode = #tpu.pipeline_mode<synchronous>, transform_indices = @transform_2, window_bounds = array<i64: 256, 512>}, {pipeline_mode = #tpu.pipeline_mode<synchronous>, transform_indices = @transform_3, window_bounds = array<i64: 256, 512>}, {transform_indices = @transform_4, window_bounds = array<i64: 1, 16, 256>}, {transform_indices = @transform_5, window_bounds = array<i64: 1, 16, 256>}]} {
    %c0 = arith.constant 0 : index
    %c0_0 = arith.constant 0 : index
    %c0_1 = arith.constant 0 : index
    %0 = vector.load %arg1[%c0, %c0_0, %c0_1] : memref<1x16x256xf32, #tpu.memory_space<vmem>>, vector<1x16x256xf32>
    %c0_2 = arith.constant 0 : index
    %c0_3 = arith.constant 0 : index
    %c0_4 = arith.constant 0 : index
    %1 = vector.load %arg2[%c0_2, %c0_3, %c0_4] : memref<1x16x256xf32, #tpu.memory_space<vmem>>, vector<1x16x256xf32>
    %c0_5 = arith.constant 0 : index
    %c0_6 = arith.constant 0 : index
    %2 = vector.load %arg3[%c0_5, %c0_6] : memref<256x512xf32, #tpu.memory_space<vmem>>, vector<256x512xf32>
    %3 = vector.shape_cast %0 : vector<1x16x256xf32> to vector<16x256xf32>
    %cst = arith.constant dense<0.000000e+00> : vector<16x512xf32>
    %4 = tpu.matmul %3, %2, %cst {dimension_numbers = #tpu.dot_dimension_numbers<[1], [0], [0], [1], [0, 0, 1, 1], [], []>} : vector<16x256xf32>, vector<256x512xf32>, vector<16x512xf32> -> vector<16x512xf32>
    %5 = vector.shape_cast %4 : vector<16x512xf32> to vector<1x16x512xf32>
    %c0_7 = arith.constant 0 : index
    %c0_8 = arith.constant 0 : index
    %6 = vector.load %arg4[%c0_7, %c0_8] : memref<256x512xf32, #tpu.memory_space<vmem>>, vector<256x512xf32>
    %7 = vector.shape_cast %1 : vector<1x16x256xf32> to vector<16x256xf32>
    %cst_9 = arith.constant dense<0.000000e+00> : vector<16x512xf32>
    %8 = tpu.matmul %7, %6, %cst_9 {dimension_numbers = #tpu.dot_dimension_numbers<[1], [0], [0], [1], [0, 0, 1, 1], [], []>} : vector<16x256xf32>, vector<256x512xf32>, vector<16x512xf32> -> vector<16x512xf32>
    %9 = vector.shape_cast %8 : vector<16x512xf32> to vector<1x16x512xf32>
    %10 = vector.shape_cast %5 : vector<1x16x512xf32> to vector<16x512xf32>
    %11 = vector.extract_strided_slice %10 {offsets = [0, 0], sizes = [16, 128], strides = [1, 1]} : vector<16x512xf32> to vector<16x128xf32>
    %12 = vector.shape_cast %5 : vector<1x16x512xf32> to vector<16x512xf32>
    %13 = vector.extract_strided_slice %12 {offsets = [0, 256], sizes = [16, 128], strides = [1, 1]} : vector<16x512xf32> to vector<16x128xf32>
    %cst_10 = arith.constant dense<0.000000e+00> : vector<128x128xf32>
    %14 = tpu.matmul %11, %13, %cst_10 {dimension_numbers = #tpu.dot_dimension_numbers<[0], [0], [1], [1], [0, 1, 1, 1], [], []>} : vector<16x128xf32>, vector<16x128xf32>, vector<128x128xf32> -> vector<128x128xf32>
    %15 = vector.shape_cast %9 : vector<1x16x512xf32> to vector<16x512xf32>
    %16 = vector.extract_strided_slice %15 {offsets = [0, 0], sizes = [16, 128], strides = [1, 1]} : vector<16x512xf32> to vector<16x128xf32>
    %17 = vector.shape_cast %9 : vector<1x16x512xf32> to vector<16x512xf32>
    %18 = vector.extract_strided_slice %17 {offsets = [0, 256], sizes = [16, 128], strides = [1, 1]} : vector<16x512xf32> to vector<16x128xf32>
    %cst_11 = arith.constant dense<0.000000e+00> : vector<128x128xf32>
    %19 = tpu.matmul %16, %18, %cst_11 {dimension_numbers = #tpu.dot_dimension_numbers<[0], [0], [1], [1], [0, 1, 1, 1], [], []>} : vector<16x128xf32>, vector<16x128xf32>, vector<128x128xf32> -> vector<128x128xf32>
    %cst_12 = arith.constant 0.0883883461 : f32
    %20 = vector.broadcast %cst_12 : f32 to vector<128x128xf32>
    %21 = arith.mulf %14, %20 : vector<128x128xf32>
    %cst_13 = arith.constant dense<0xFF800000> : vector<128xf32>
    %22 = vector.multi_reduction <maximumf>, %21, %cst_13 [0] : vector<128x128xf32> to vector<128xf32>
    %23 = vector.shape_cast %22 : vector<128xf32> to vector<1x128xf32>
    %24 = vector.broadcast %23 : vector<1x128xf32> to vector<128x128xf32>
    %25 = arith.subf %21, %24 : vector<128x128xf32>
    %26 = math.exp %25 : vector<128x128xf32>
    %cst_14 = arith.constant dense<0.000000e+00> : vector<128xf32>
    %27 = vector.multi_reduction <add>, %26, %cst_14 [0] : vector<128x128xf32> to vector<128xf32>
    %28 = vector.shape_cast %27 : vector<128xf32> to vector<1x128xf32>
    %29 = vector.broadcast %28 : vector<1x128xf32> to vector<128x128xf32>
    %30 = arith.divf %26, %29 : vector<128x128xf32>
    %cst_15 = arith.constant 0.0883883461 : f32
    %31 = vector.broadcast %cst_15 : f32 to vector<128x128xf32>
    %32 = arith.mulf %19, %31 : vector<128x128xf32>
    %cst_16 = arith.constant dense<0xFF800000> : vector<128xf32>
    %33 = vector.multi_reduction <maximumf>, %32, %cst_16 [0] : vector<128x128xf32> to vector<128xf32>
    %34 = vector.shape_cast %33 : vector<128xf32> to vector<1x128xf32>
    %35 = vector.broadcast %34 : vector<1x128xf32> to vector<128x128xf32>
    %36 = arith.subf %32, %35 : vector<128x128xf32>
    %37 = math.exp %36 : vector<128x128xf32>
    %cst_17 = arith.constant dense<0.000000e+00> : vector<128xf32>
    %38 = vector.multi_reduction <add>, %37, %cst_17 [0] : vector<128x128xf32> to vector<128xf32>
    %39 = vector.shape_cast %38 : vector<128xf32> to vector<1x128xf32>
    %40 = vector.broadcast %39 : vector<1x128xf32> to vector<128x128xf32>
    %41 = arith.divf %37, %40 : vector<128x128xf32>
    %42 = vector.shape_cast %0 : vector<1x16x256xf32> to vector<16x256xf32>
    %43 = vector.extract_strided_slice %42 {offsets = [0, 0], sizes = [16, 128], strides = [1, 1]} : vector<16x256xf32> to vector<16x128xf32>
    %cst_18 = arith.constant dense<0.000000e+00> : vector<16x128xf32>
    %44 = tpu.matmul %43, %41, %cst_18 {dimension_numbers = #tpu.dot_dimension_numbers<[1], [0], [0], [1], [0, 0, 1, 1], [], []>} : vector<16x128xf32>, vector<128x128xf32>, vector<16x128xf32> -> vector<16x128xf32>
    %45 = vector.shape_cast %1 : vector<1x16x256xf32> to vector<16x256xf32>
    %46 = vector.extract_strided_slice %45 {offsets = [0, 0], sizes = [16, 128], strides = [1, 1]} : vector<16x256xf32> to vector<16x128xf32>
    %cst_19 = arith.constant dense<0.000000e+00> : vector<16x128xf32>
    %47 = tpu.matmul %46, %30, %cst_19 {dimension_numbers = #tpu.dot_dimension_numbers<[1], [0], [0], [1], [0, 0, 1, 1], [], []>} : vector<16x128xf32>, vector<128x128xf32>, vector<16x128xf32> -> vector<16x128xf32>
    %c0_20 = arith.constant 0 : index
    %c0_21 = arith.constant 0 : index
    %c0_22 = arith.constant 0 : index
    %48 = vector.load %arg5[%c0_20, %c0_21, %c0_22] : memref<1x16x256xf32, #tpu.memory_space<vmem>>, vector<1x16x128xf32>
    %49 = vector.shape_cast %48 : vector<1x16x128xf32> to vector<16x128xf32>
    %50 = vector.shape_cast %44 : vector<16x128xf32> to vector<1x16x128xf32>
    tpu.vector_store %arg5[%c0_20, %c0_21, %c0_22], %50 {strides = array<i32>} : memref<1x16x256xf32, #tpu.memory_space<vmem>>, vector<1x16x128xf32>,
    %c0_23 = arith.constant 0 : index
    %c0_24 = arith.constant 0 : index
    %c0_25 = arith.constant 0 : index
    %51 = vector.load %arg6[%c0_23, %c0_24, %c0_25] : memref<1x16x256xf32, #tpu.memory_space<vmem>>, vector<1x16x128xf32>
    %52 = vector.shape_cast %51 : vector<1x16x128xf32> to vector<16x128xf32>
    %53 = vector.shape_cast %47 : vector<16x128xf32> to vector<1x16x128xf32>
    tpu.vector_store %arg6[%c0_23, %c0_24, %c0_25], %53 {strides = array<i32>} : memref<1x16x256xf32, #tpu.memory_space<vmem>>, vector<1x16x128xf32>,
    %54 = vector.shape_cast %5 : vector<1x16x512xf32> to vector<16x512xf32>
    %55 = vector.extract_strided_slice %54 {offsets = [0, 128], sizes = [16, 128], strides = [1, 1]} : vector<16x512xf32> to vector<16x128xf32>
    %56 = vector.shape_cast %5 : vector<1x16x512xf32> to vector<16x512xf32>
    %57 = vector.extract_strided_slice %56 {offsets = [0, 384], sizes = [16, 128], strides = [1, 1]} : vector<16x512xf32> to vector<16x128xf32>
    %cst_26 = arith.constant dense<0.000000e+00> : vector<128x128xf32>
    %58 = tpu.matmul %55, %57, %cst_26 {dimension_numbers = #tpu.dot_dimension_numbers<[0], [0], [1], [1], [0, 1, 1, 1], [], []>} : vector<16x128xf32>, vector<16x128xf32>, vector<128x128xf32> -> vector<128x128xf32>
    %59 = vector.shape_cast %9 : vector<1x16x512xf32> to vector<16x512xf32>
    %60 = vector.extract_strided_slice %59 {offsets = [0, 128], sizes = [16, 128], strides = [1, 1]} : vector<16x512xf32> to vector<16x128xf32>
    %61 = vector.shape_cast %9 : vector<1x16x512xf32> to vector<16x512xf32>
    %62 = vector.extract_strided_slice %61 {offsets = [0, 384], sizes = [16, 128], strides = [1, 1]} : vector<16x512xf32> to vector<16x128xf32>
    %cst_27 = arith.constant dense<0.000000e+00> : vector<128x128xf32>
    %63 = tpu.matmul %60, %62, %cst_27 {dimension_numbers = #tpu.dot_dimension_numbers<[0], [0], [1], [1], [0, 1, 1, 1], [], []>} : vector<16x128xf32>, vector<16x128xf32>, vector<128x128xf32> -> vector<128x128xf32>
    %cst_28 = arith.constant 0.0883883461 : f32
    %64 = vector.broadcast %cst_28 : f32 to vector<128x128xf32>
    %65 = arith.mulf %58, %64 : vector<128x128xf32>
    %cst_29 = arith.constant dense<0xFF800000> : vector<128xf32>
    %66 = vector.multi_reduction <maximumf>, %65, %cst_29 [0] : vector<128x128xf32> to vector<128xf32>
    %67 = vector.shape_cast %66 : vector<128xf32> to vector<1x128xf32>
    %68 = vector.broadcast %67 : vector<1x128xf32> to vector<128x128xf32>
    %69 = arith.subf %65, %68 : vector<128x128xf32>
    %70 = math.exp %69 : vector<128x128xf32>
    %cst_30 = arith.constant dense<0.000000e+00> : vector<128xf32>
    %71 = vector.multi_reduction <add>, %70, %cst_30 [0] : vector<128x128xf32> to vector<128xf32>
    %72 = vector.shape_cast %71 : vector<128xf32> to vector<1x128xf32>
    %73 = vector.broadcast %72 : vector<1x128xf32> to vector<128x128xf32>
    %74 = arith.divf %70, %73 : vector<128x128xf32>
    %cst_31 = arith.constant 0.0883883461 : f32
    %75 = vector.broadcast %cst_31 : f32 to vector<128x128xf32>
    %76 = arith.mulf %63, %75 : vector<128x128xf32>
    %cst_32 = arith.constant dense<0xFF800000> : vector<128xf32>
    %77 = vector.multi_reduction <maximumf>, %76, %cst_32 [0] : vector<128x128xf32> to vector<128xf32>
    %78 = vector.shape_cast %77 : vector<128xf32> to vector<1x128xf32>
    %79 = vector.broadcast %78 : vector<1x128xf32> to vector<128x128xf32>
    %80 = arith.subf %76, %79 : vector<128x128xf32>
    %81 = math.exp %80 : vector<128x128xf32>
    %cst_33 = arith.constant dense<0.000000e+00> : vector<128xf32>
    %82 = vector.multi_reduction <add>, %81, %cst_33 [0] : vector<128x128xf32> to vector<128xf32>
    %83 = vector.shape_cast %82 : vector<128xf32> to vector<1x128xf32>
    %84 = vector.broadcast %83 : vector<1x128xf32> to vector<128x128xf32>
    %85 = arith.divf %81, %84 : vector<128x128xf32>
    %86 = vector.shape_cast %0 : vector<1x16x256xf32> to vector<16x256xf32>
    %87 = vector.extract_strided_slice %86 {offsets = [0, 128], sizes = [16, 128], strides = [1, 1]} : vector<16x256xf32> to vector<16x128xf32>
    %cst_34 = arith.constant dense<0.000000e+00> : vector<16x128xf32>
    %88 = tpu.matmul %87, %85, %cst_34 {dimension_numbers = #tpu.dot_dimension_numbers<[1], [0], [0], [1], [0, 0, 1, 1], [], []>} : vector<16x128xf32>, vector<128x128xf32>, vector<16x128xf32> -> vector<16x128xf32>
    %89 = vector.shape_cast %1 : vector<1x16x256xf32> to vector<16x256xf32>
    %90 = vector.extract_strided_slice %89 {offsets = [0, 128], sizes = [16, 128], strides = [1, 1]} : vector<16x256xf32> to vector<16x128xf32>
    %cst_35 = arith.constant dense<0.000000e+00> : vector<16x128xf32>
    %91 = tpu.matmul %90, %74, %cst_35 {dimension_numbers = #tpu.dot_dimension_numbers<[1], [0], [0], [1], [0, 0, 1, 1], [], []>} : vector<16x128xf32>, vector<128x128xf32>, vector<16x128xf32> -> vector<16x128xf32>
    %c0_36 = arith.constant 0 : index
    %c0_37 = arith.constant 0 : index
    %c128 = arith.constant 128 : index
    %92 = vector.load %arg5[%c0_36, %c0_37, %c128] : memref<1x16x256xf32, #tpu.memory_space<vmem>>, vector<1x16x128xf32>
    %93 = vector.shape_cast %92 : vector<1x16x128xf32> to vector<16x128xf32>
    %94 = vector.shape_cast %88 : vector<16x128xf32> to vector<1x16x128xf32>
    tpu.vector_store %arg5[%c0_36, %c0_37, %c128], %94 {strides = array<i32>} : memref<1x16x256xf32, #tpu.memory_space<vmem>>, vector<1x16x128xf32>,
    %c0_38 = arith.constant 0 : index
    %c0_39 = arith.constant 0 : index
    %c128_40 = arith.constant 128 : index
    %95 = vector.load %arg6[%c0_38, %c0_39, %c128_40] : memref<1x16x256xf32, #tpu.memory_space<vmem>>, vector<1x16x128xf32>
    %96 = vector.shape_cast %95 : vector<1x16x128xf32> to vector<16x128xf32>
    %97 = vector.shape_cast %91 : vector<16x128xf32> to vector<1x16x128xf32>
    tpu.vector_store %arg6[%c0_38, %c0_39, %c128_40], %97 {strides = array<i32>} : memref<1x16x256xf32, #tpu.memory_space<vmem>>, vector<1x16x128xf32>,
    return
  }
  func.func @transform_0(%arg0: i32) -> (i32, i32, i32) {
    %c0_i32 = arith.constant 0 : i32
    %c0_i32_0 = arith.constant 0 : i32
    %c0_i32_1 = arith.constant 0 : i32
    return %arg0, %c0_i32, %c0_i32_0 : i32, i32, i32
  }
  func.func @transform_1(%arg0: i32) -> (i32, i32, i32) {
    %c0_i32 = arith.constant 0 : i32
    %c0_i32_0 = arith.constant 0 : i32
    %c0_i32_1 = arith.constant 0 : i32
    return %arg0, %c0_i32, %c0_i32_0 : i32, i32, i32
  }
  func.func @transform_2(%arg0: i32) -> (i32, i32) {
    %c0_i32 = arith.constant 0 : i32
    %c0_i32_0 = arith.constant 0 : i32
    %c0_i32_1 = arith.constant 0 : i32
    return %c0_i32, %c0_i32_0 : i32, i32
  }
  func.func @transform_3(%arg0: i32) -> (i32, i32) {
    %c0_i32 = arith.constant 0 : i32
    %c0_i32_0 = arith.constant 0 : i32
    %c0_i32_1 = arith.constant 0 : i32
    return %c0_i32, %c0_i32_0 : i32, i32
  }
  func.func @transform_4(%arg0: i32) -> (i32, i32, i32) {
    %c0_i32 = arith.constant 0 : i32
    %c0_i32_0 = arith.constant 0 : i32
    %c0_i32_1 = arith.constant 0 : i32
    return %arg0, %c0_i32, %c0_i32_0 : i32, i32, i32
  }
  func.func @transform_5(%arg0: i32) -> (i32, i32, i32) {
    %c0_i32 = arith.constant 0 : i32
    %c0_i32_0 = arith.constant 0 : i32
    %c0_i32_1 = arith.constant 0 : i32
    return %arg0, %c0_i32, %c0_i32_0 : i32, i32, i32
  }
}

module attributes {stable_mosaic.version = 11 : i64} {
  func.func @_channel_attention_fused_kernel(%arg0: i32, %arg1: memref<1x16x256xf32, #tpu.memory_space<vmem>>, %arg2: memref<1x16x256xf32, #tpu.memory_space<vmem>>, %arg3: memref<256x512xf32, #tpu.memory_space<vmem>>, %arg4: memref<256x512xf32, #tpu.memory_space<vmem>>, %arg5: memref<1x16x256xf32, #tpu.memory_space<vmem>>, %arg6: memref<1x16x256xf32, #tpu.memory_space<vmem>>) attributes {dimension_semantics = [#tpu.dimension_semantics<parallel>], iteration_bounds = array<i64: 2>, scalar_prefetch = 0 : i64, scratch_operands = 0 : i64, tpu.core_type = #tpu.core_type<tc>, window_params = [{transform_indices = @transform_0, window_bounds = array<i64: 1, 16, 256>}, {transform_indices = @transform_1, window_bounds = array<i64: 1, 16, 256>}, {pipeline_mode = #tpu.pipeline_mode<synchronous>, transform_indices = @transform_2, window_bounds = array<i64: 256, 512>}, {pipeline_mode = #tpu.pipeline_mode<synchronous>, transform_indices = @transform_3, window_bounds = array<i64: 256, 512>}, {transform_indices = @transform_4, window_bounds = array<i64: 1, 16, 256>}, {transform_indices = @transform_5, window_bounds = array<i64: 1, 16, 256>}]} {
    %c0 = arith.constant 0 : index
    %c0_0 = arith.constant 0 : index
    %c0_1 = arith.constant 0 : index
    %0 = vector.load %arg1[%c0, %c0_0, %c0_1] : memref<1x16x256xf32, #tpu.memory_space<vmem>>, vector<1x16x256xf32>
    %c0_2 = arith.constant 0 : index
    %c0_3 = arith.constant 0 : index
    %c0_4 = arith.constant 0 : index
    %1 = vector.load %arg2[%c0_2, %c0_3, %c0_4] : memref<1x16x256xf32, #tpu.memory_space<vmem>>, vector<1x16x256xf32>
    %c0_5 = arith.constant 0 : index
    %c0_6 = arith.constant 0 : index
    %2 = vector.load %arg3[%c0_5, %c0_6] : memref<256x512xf32, #tpu.memory_space<vmem>>, vector<256x512xf32>
    %3 = vector.shape_cast %0 : vector<1x16x256xf32> to vector<16x256xf32>
    %cst = arith.constant dense<0.000000e+00> : vector<16x512xf32>
    %4 = tpu.matmul %3, %2, %cst {dimension_numbers = #tpu.dot_dimension_numbers<[1], [0], [0], [1], [0, 0, 1, 1], [], []>} : vector<16x256xf32>, vector<256x512xf32>, vector<16x512xf32> -> vector<16x512xf32>
    %5 = vector.shape_cast %4 : vector<16x512xf32> to vector<1x16x512xf32>
    %c0_7 = arith.constant 0 : index
    %c0_8 = arith.constant 0 : index
    %6 = vector.load %arg4[%c0_7, %c0_8] : memref<256x512xf32, #tpu.memory_space<vmem>>, vector<256x512xf32>
    %7 = vector.shape_cast %1 : vector<1x16x256xf32> to vector<16x256xf32>
    %cst_9 = arith.constant dense<0.000000e+00> : vector<16x512xf32>
    %8 = tpu.matmul %7, %6, %cst_9 {dimension_numbers = #tpu.dot_dimension_numbers<[1], [0], [0], [1], [0, 0, 1, 1], [], []>} : vector<16x256xf32>, vector<256x512xf32>, vector<16x512xf32> -> vector<16x512xf32>
    %9 = vector.shape_cast %8 : vector<16x512xf32> to vector<1x16x512xf32>
    %10 = vector.shape_cast %5 : vector<1x16x512xf32> to vector<16x512xf32>
    %11 = vector.extract_strided_slice %10 {offsets = [0, 0], sizes = [16, 128], strides = [1, 1]} : vector<16x512xf32> to vector<16x128xf32>
    %12 = vector.shape_cast %5 : vector<1x16x512xf32> to vector<16x512xf32>
    %13 = vector.extract_strided_slice %12 {offsets = [0, 256], sizes = [16, 128], strides = [1, 1]} : vector<16x512xf32> to vector<16x128xf32>
    %cst_10 = arith.constant dense<0.000000e+00> : vector<128x128xf32>
    %14 = tpu.matmul %11, %13, %cst_10 {dimension_numbers = #tpu.dot_dimension_numbers<[0], [0], [1], [1], [0, 1, 1, 1], [], []>} : vector<16x128xf32>, vector<16x128xf32>, vector<128x128xf32> -> vector<128x128xf32>
    %15 = vector.shape_cast %9 : vector<1x16x512xf32> to vector<16x512xf32>
    %16 = vector.extract_strided_slice %15 {offsets = [0, 0], sizes = [16, 128], strides = [1, 1]} : vector<16x512xf32> to vector<16x128xf32>
    %17 = vector.shape_cast %9 : vector<1x16x512xf32> to vector<16x512xf32>
    %18 = vector.extract_strided_slice %17 {offsets = [0, 256], sizes = [16, 128], strides = [1, 1]} : vector<16x512xf32> to vector<16x128xf32>
    %cst_11 = arith.constant dense<0.000000e+00> : vector<128x128xf32>
    %19 = tpu.matmul %16, %18, %cst_11 {dimension_numbers = #tpu.dot_dimension_numbers<[0], [0], [1], [1], [0, 1, 1, 1], [], []>} : vector<16x128xf32>, vector<16x128xf32>, vector<128x128xf32> -> vector<128x128xf32>
    %cst_12 = arith.constant 0.0883883461 : f32
    %20 = vector.broadcast %cst_12 : f32 to vector<128x128xf32>
    %21 = arith.mulf %14, %20 : vector<128x128xf32>
    %cst_13 = arith.constant dense<0xFF800000> : vector<128xf32>
    %22 = vector.multi_reduction <maximumf>, %21, %cst_13 [0] : vector<128x128xf32> to vector<128xf32>
    %23 = vector.shape_cast %22 : vector<128xf32> to vector<1x128xf32>
    %24 = vector.broadcast %23 : vector<1x128xf32> to vector<128x128xf32>
    %25 = arith.subf %21, %24 : vector<128x128xf32>
    %26 = math.exp %25 : vector<128x128xf32>
    %cst_14 = arith.constant dense<0.000000e+00> : vector<128xf32>
    %27 = vector.multi_reduction <add>, %26, %cst_14 [0] : vector<128x128xf32> to vector<128xf32>
    %28 = vector.shape_cast %27 : vector<128xf32> to vector<1x128xf32>
    %29 = vector.broadcast %28 : vector<1x128xf32> to vector<128x128xf32>
    %30 = arith.divf %26, %29 : vector<128x128xf32>
    %cst_15 = arith.constant 0.0883883461 : f32
    %31 = vector.broadcast %cst_15 : f32 to vector<128x128xf32>
    %32 = arith.mulf %19, %31 : vector<128x128xf32>
    %cst_16 = arith.constant dense<0xFF800000> : vector<128xf32>
    %33 = vector.multi_reduction <maximumf>, %32, %cst_16 [0] : vector<128x128xf32> to vector<128xf32>
    %34 = vector.shape_cast %33 : vector<128xf32> to vector<1x128xf32>
    %35 = vector.broadcast %34 : vector<1x128xf32> to vector<128x128xf32>
    %36 = arith.subf %32, %35 : vector<128x128xf32>
    %37 = math.exp %36 : vector<128x128xf32>
    %cst_17 = arith.constant dense<0.000000e+00> : vector<128xf32>
    %38 = vector.multi_reduction <add>, %37, %cst_17 [0] : vector<128x128xf32> to vector<128xf32>
    %39 = vector.shape_cast %38 : vector<128xf32> to vector<1x128xf32>
    %40 = vector.broadcast %39 : vector<1x128xf32> to vector<128x128xf32>
    %41 = arith.divf %37, %40 : vector<128x128xf32>
    %42 = vector.shape_cast %0 : vector<1x16x256xf32> to vector<16x256xf32>
    %43 = vector.extract_strided_slice %42 {offsets = [0, 0], sizes = [16, 128], strides = [1, 1]} : vector<16x256xf32> to vector<16x128xf32>
    %cst_18 = arith.constant dense<0.000000e+00> : vector<16x128xf32>
    %44 = tpu.matmul %43, %41, %cst_18 {dimension_numbers = #tpu.dot_dimension_numbers<[1], [0], [0], [1], [0, 0, 1, 1], [], []>} : vector<16x128xf32>, vector<128x128xf32>, vector<16x128xf32> -> vector<16x128xf32>
    %45 = vector.shape_cast %1 : vector<1x16x256xf32> to vector<16x256xf32>
    %46 = vector.extract_strided_slice %45 {offsets = [0, 0], sizes = [16, 128], strides = [1, 1]} : vector<16x256xf32> to vector<16x128xf32>
    %cst_19 = arith.constant dense<0.000000e+00> : vector<16x128xf32>
    %47 = tpu.matmul %46, %30, %cst_19 {dimension_numbers = #tpu.dot_dimension_numbers<[1], [0], [0], [1], [0, 0, 1, 1], [], []>} : vector<16x128xf32>, vector<128x128xf32>, vector<16x128xf32> -> vector<16x128xf32>
    %c0_20 = arith.constant 0 : index
    %c0_21 = arith.constant 0 : index
    %c0_22 = arith.constant 0 : index
    %48 = vector.load %arg5[%c0_20, %c0_21, %c0_22] : memref<1x16x256xf32, #tpu.memory_space<vmem>>, vector<1x16x128xf32>
    %49 = vector.shape_cast %48 : vector<1x16x128xf32> to vector<16x128xf32>
    %50 = vector.shape_cast %44 : vector<16x128xf32> to vector<1x16x128xf32>
    tpu.vector_store %arg5[%c0_20, %c0_21, %c0_22], %50 {strides = array<i32>} : memref<1x16x256xf32, #tpu.memory_space<vmem>>, vector<1x16x128xf32>,
    %c0_23 = arith.constant 0 : index
    %c0_24 = arith.constant 0 : index
    %c0_25 = arith.constant 0 : index
    %51 = vector.load %arg6[%c0_23, %c0_24, %c0_25] : memref<1x16x256xf32, #tpu.memory_space<vmem>>, vector<1x16x128xf32>
    %52 = vector.shape_cast %51 : vector<1x16x128xf32> to vector<16x128xf32>
    %53 = vector.shape_cast %47 : vector<16x128xf32> to vector<1x16x128xf32>
    tpu.vector_store %arg6[%c0_23, %c0_24, %c0_25], %53 {strides = array<i32>} : memref<1x16x256xf32, #tpu.memory_space<vmem>>, vector<1x16x128xf32>,
    %54 = vector.shape_cast %5 : vector<1x16x512xf32> to vector<16x512xf32>
    %55 = vector.extract_strided_slice %54 {offsets = [0, 128], sizes = [16, 128], strides = [1, 1]} : vector<16x512xf32> to vector<16x128xf32>
    %56 = vector.shape_cast %5 : vector<1x16x512xf32> to vector<16x512xf32>
    %57 = vector.extract_strided_slice %56 {offsets = [0, 384], sizes = [16, 128], strides = [1, 1]} : vector<16x512xf32> to vector<16x128xf32>
    %cst_26 = arith.constant dense<0.000000e+00> : vector<128x128xf32>
    %58 = tpu.matmul %55, %57, %cst_26 {dimension_numbers = #tpu.dot_dimension_numbers<[0], [0], [1], [1], [0, 1, 1, 1], [], []>} : vector<16x128xf32>, vector<16x128xf32>, vector<128x128xf32> -> vector<128x128xf32>
    %59 = vector.shape_cast %9 : vector<1x16x512xf32> to vector<16x512xf32>
    %60 = vector.extract_strided_slice %59 {offsets = [0, 128], sizes = [16, 128], strides = [1, 1]} : vector<16x512xf32> to vector<16x128xf32>
    %61 = vector.shape_cast %9 : vector<1x16x512xf32> to vector<16x512xf32>
    %62 = vector.extract_strided_slice %61 {offsets = [0, 384], sizes = [16, 128], strides = [1, 1]} : vector<16x512xf32> to vector<16x128xf32>
    %cst_27 = arith.constant dense<0.000000e+00> : vector<128x128xf32>
    %63 = tpu.matmul %60, %62, %cst_27 {dimension_numbers = #tpu.dot_dimension_numbers<[0], [0], [1], [1], [0, 1, 1, 1], [], []>} : vector<16x128xf32>, vector<16x128xf32>, vector<128x128xf32> -> vector<128x128xf32>
    %cst_28 = arith.constant 0.0883883461 : f32
    %64 = vector.broadcast %cst_28 : f32 to vector<128x128xf32>
    %65 = arith.mulf %58, %64 : vector<128x128xf32>
    %cst_29 = arith.constant dense<0xFF800000> : vector<128xf32>
    %66 = vector.multi_reduction <maximumf>, %65, %cst_29 [0] : vector<128x128xf32> to vector<128xf32>
    %67 = vector.shape_cast %66 : vector<128xf32> to vector<1x128xf32>
    %68 = vector.broadcast %67 : vector<1x128xf32> to vector<128x128xf32>
    %69 = arith.subf %65, %68 : vector<128x128xf32>
    %70 = math.exp %69 : vector<128x128xf32>
    %cst_30 = arith.constant dense<0.000000e+00> : vector<128xf32>
    %71 = vector.multi_reduction <add>, %70, %cst_30 [0] : vector<128x128xf32> to vector<128xf32>
    %72 = vector.shape_cast %71 : vector<128xf32> to vector<1x128xf32>
    %73 = vector.broadcast %72 : vector<1x128xf32> to vector<128x128xf32>
    %74 = arith.divf %70, %73 : vector<128x128xf32>
    %cst_31 = arith.constant 0.0883883461 : f32
    %75 = vector.broadcast %cst_31 : f32 to vector<128x128xf32>
    %76 = arith.mulf %63, %75 : vector<128x128xf32>
    %cst_32 = arith.constant dense<0xFF800000> : vector<128xf32>
    %77 = vector.multi_reduction <maximumf>, %76, %cst_32 [0] : vector<128x128xf32> to vector<128xf32>
    %78 = vector.shape_cast %77 : vector<128xf32> to vector<1x128xf32>
    %79 = vector.broadcast %78 : vector<1x128xf32> to vector<128x128xf32>
    %80 = arith.subf %76, %79 : vector<128x128xf32>
    %81 = math.exp %80 : vector<128x128xf32>
    %cst_33 = arith.constant dense<0.000000e+00> : vector<128xf32>
    %82 = vector.multi_reduction <add>, %81, %cst_33 [0] : vector<128x128xf32> to vector<128xf32>
    %83 = vector.shape_cast %82 : vector<128xf32> to vector<1x128xf32>
    %84 = vector.broadcast %83 : vector<1x128xf32> to vector<128x128xf32>
    %85 = arith.divf %81, %84 : vector<128x128xf32>
    %86 = vector.shape_cast %0 : vector<1x16x256xf32> to vector<16x256xf32>
    %87 = vector.extract_strided_slice %86 {offsets = [0, 128], sizes = [16, 128], strides = [1, 1]} : vector<16x256xf32> to vector<16x128xf32>
    %cst_34 = arith.constant dense<0.000000e+00> : vector<16x128xf32>
    %88 = tpu.matmul %87, %85, %cst_34 {dimension_numbers = #tpu.dot_dimension_numbers<[1], [0], [0], [1], [0, 0, 1, 1], [], []>} : vector<16x128xf32>, vector<128x128xf32>, vector<16x128xf32> -> vector<16x128xf32>
    %89 = vector.shape_cast %1 : vector<1x16x256xf32> to vector<16x256xf32>
    %90 = vector.extract_strided_slice %89 {offsets = [0, 128], sizes = [16, 128], strides = [1, 1]} : vector<16x256xf32> to vector<16x128xf32>
    %cst_35 = arith.constant dense<0.000000e+00> : vector<16x128xf32>
    %91 = tpu.matmul %90, %74, %cst_35 {dimension_numbers = #tpu.dot_dimension_numbers<[1], [0], [0], [1], [0, 0, 1, 1], [], []>} : vector<16x128xf32>, vector<128x128xf32>, vector<16x128xf32> -> vector<16x128xf32>
    %c0_36 = arith.constant 0 : index
    %c0_37 = arith.constant 0 : index
    %c128 = arith.constant 128 : index
    %92 = vector.load %arg5[%c0_36, %c0_37, %c128] : memref<1x16x256xf32, #tpu.memory_space<vmem>>, vector<1x16x128xf32>
    %93 = vector.shape_cast %92 : vector<1x16x128xf32> to vector<16x128xf32>
    %94 = vector.shape_cast %88 : vector<16x128xf32> to vector<1x16x128xf32>
    tpu.vector_store %arg5[%c0_36, %c0_37, %c128], %94 {strides = array<i32>} : memref<1x16x256xf32, #tpu.memory_space<vmem>>, vector<1x16x128xf32>,
    %c0_38 = arith.constant 0 : index
    %c0_39 = arith.constant 0 : index
    %c128_40 = arith.constant 128 : index
    %95 = vector.load %arg6[%c0_38, %c0_39, %c128_40] : memref<1x16x256xf32, #tpu.memory_space<vmem>>, vector<1x16x128xf32>
    %96 = vector.shape_cast %95 : vector<1x16x128xf32> to vector<16x128xf32>
    %97 = vector.shape_cast %91 : vector<16x128xf32> to vector<1x16x128xf32>
    tpu.vector_store %arg6[%c0_38, %c0_39, %c128_40], %97 {strides = array<i32>} : memref<1x16x256xf32, #tpu.memory_space<vmem>>, vector<1x16x128xf32>,
    return
  }
  func.func @transform_0(%arg0: i32) -> (i32, i32, i32) {
    %c0_i32 = arith.constant 0 : i32
    %c0_i32_0 = arith.constant 0 : i32
    %c0_i32_1 = arith.constant 0 : i32
    return %arg0, %c0_i32, %c0_i32_0 : i32, i32, i32
  }
  func.func @transform_1(%arg0: i32) -> (i32, i32, i32) {
    %c0_i32 = arith.constant 0 : i32
    %c0_i32_0 = arith.constant 0 : i32
    %c0_i32_1 = arith.constant 0 : i32
    return %arg0, %c0_i32, %c0_i32_0 : i32, i32, i32
  }
  func.func @transform_2(%arg0: i32) -> (i32, i32) {
    %c0_i32 = arith.constant 0 : i32
    %c0_i32_0 = arith.constant 0 : i32
    %c0_i32_1 = arith.constant 0 : i32
    return %c0_i32, %c0_i32_0 : i32, i32
  }
  func.func @transform_3(%arg0: i32) -> (i32, i32) {
    %c0_i32 = arith.constant 0 : i32
    %c0_i32_0 = arith.constant 0 : i32
    %c0_i32_1 = arith.constant 0 : i32
    return %c0_i32, %c0_i32_0 : i32, i32
  }
  func.func @transform_4(%arg0: i32) -> (i32, i32, i32) {
    %c0_i32 = arith.constant 0 : i32
    %c0_i32_0 = arith.constant 0 : i32
    %c0_i32_1 = arith.constant 0 : i32
    return %arg0, %c0_i32, %c0_i32_0 : i32, i32, i32
  }
  func.func @transform_5(%arg0: i32) -> (i32, i32, i32) {
    %c0_i32 = arith.constant 0 : i32
    %c0_i32_0 = arith.constant 0 : i32
    %c0_i32_1 = arith.constant 0 : i32
    return %arg0, %c0_i32, %c0_i32_0 : i32, i32, i32
  }
}

</mosaic_0001>

<bundles_post_ra>
// kernel: tpu_custom_call.1
= control target key start
LH: loop header
LB: loop body
LE: loop exit
PB: predicated region body
PF: predicated region fallthrough
CT: control target
= control target key end

     0   :  { %s3932_s0 = inlined_call_operand.hbm [shape: f32[2,16,256], index: 0, kind: input, shape index: {}]   ;;  %s3933_s1 = inlined_call_operand.hbm [shape: f32[2,16,256], index: 1, kind: input, shape index: {}]   ;;  %s3934_s2 = inlined_call_operand.hbm [shape: f32[256,512], index: 2, kind: input, shape index: {}]   ;;  %s3935_s3 = inlined_call_operand.hbm [shape: f32[256,512], index: 3, kind: input, shape index: {}]   ;;  %s3936_s4 = inlined_call_operand.hbm [shape: f32[2,16,256], index: 4, kind: output, shape index: {0}]   ;;  %s3937_s5 = inlined_call_operand.hbm [shape: f32[2,16,256], index: 5, kind: output, shape index: {1}]  }
   0x1   :  { %3939 = sst [smem:[#allocation20_spill]] %s3932_s0 }
   0x2   :  { %3940 = sst [smem:[#allocation21_spill]] %s3934_s2 }
   0x3   :  { %3941 = sst [smem:[#allocation22_spill]] %s3935_s3 }
   0x4   :  { %11 = vsyncpa [#allocation3], 0 }
   0x5   :  { %13 = vsyncpa [#allocation3 + $0x1], 0 }
   0x6   :  { %14 = vsyncpa [#allocation6], 0 }
   0x7   :  { %16 = vsyncpa [#allocation6 + $0x1], 0 }
   0x8   :  { %17 = vsyncpa [#allocation9], 0 }
   0x9   :  { %18 = vsyncpa [#allocation4], 0 }
   0xa   :  { %20 = vsyncpa [#allocation4 + $0x1], 0 }
   0xb   :  { %21 = vsyncpa [#allocation12], 0 }
   0xc   :  { %23 = vsyncpa [#allocation12 + $0x1], 0  ;;  %s2966_s18 = smov 0   ;;  %s2968_s19 = smov 0  }
   0xd   :  { %s2970_s20 = smov 0   ;;  %s2972_s21 = smov 0  }
   0xe LB: > { %s2987_s22 = sadd.s32 4294967295, %s2926_s21   ;;  %s2374_s23 = sadd.s32 4294967294, %s2926_s21   ;;  %s2926_s21 = sphi %s2972_s21, %s3957_s21   ;;  %s2922_s20 = sphi %s2970_s20, %s3956_s20   ;;  %s2918_s19 = sphi %s2968_s19, %s3955_s19   ;;  %s2914_s18 = sphi %s2966_s18, %s3954_s18  }
   0xf   : > { %p49_p0 = scmp.ne.s32.totalorder %s2918_s19, %s2914_s18  ;;  %p50_p1 = scmp.eq.s32.totalorder %s2987_s22, 0 }
  0x10   : > { %p141_p2 = scmp.eq.s32.totalorder %s2987_s22, 1  ;;  %p147_p3 = scmp.eq.s32.totalorder %s2374_s23, 1 }
  0x11   : > { %p2996_p4 = por %p50_p1, %p49_p0  ;;  %p2375_p5 = scmp.ge.s32.totalorder %s2926_s21, 1 }
  0x12   : > { %p3001_p6 = por %p147_p3, %p49_p0  ;;  %p180_p7 = scmp.lt.s32.totalorder %s2926_s21, 3 }
  0x13   : > { %s3944_s2 = sld [smem:[#allocation21_spill]]  ;;  %s2928_s30 = smov [#allocation7]  }
  0x14   : > { %p3009_p8 = pnand %p2375_p5, %p180_p7  ;;  %s193_s6 = sshll.u32 %s2928_s30, 4  ;;  %s194_s6 = int_to_ptr.vmem [resolvable:$true] %s193_s6 }
  0x15   : > { %s3946_s3 = sld [smem:[#allocation22_spill]]  ;;  %s2929_s10 = smov 512  }
  0x16   : > { %p2484_p9 = pneg %p3009_p8  ;;  %s2930_s11 = smov 32  }
  0x17   : > { %s2931_s12 = smov [#allocation8]   ;;  %s3022_s14 = sadd.s32 1, %s2926_s21  }
  0x18   : > { %p2485_p10 = pnand %p2484_p9, %p50_p1  ;;  %s207_s13 = sshll.u32 %s2931_s12, 4  ;;  %s208_s13 = int_to_ptr.vmem [resolvable:$true] %s207_s13 }
  0x19   : > { %s191_s28 = sshll.u32 %s3944_s2, 4  ;;  %s36_s15 = sadd.s32 1, %s2922_s20  ;;  %s192_s28 = int_to_ptr.hbm [resolvable:$true] %s191_s28 }
  0x1a   : > { %2487 = dma.hbm_to_vmem [thread:$0]  (!%p2485_p10), %s192_s28, 16384, %s194_s6, [#allocation6], %s2929_s10, %s2929_s10, %s2930_s11  }
  0x1b   : > { %s205_s9 = sshll.u32 %s3946_s3, 4  ;;  %s33_s16 = ssub.s32 %s2926_s21, %s3022_s14  ;;  %s206_s9 = int_to_ptr.hbm [resolvable:$true] %s205_s9 }
  0x1c   : > { %2490 = dma.hbm_to_vmem [thread:$0]  (!%p2485_p10), %s206_s9, 16384, %s208_s13, [#allocation9], %s2929_s10, %s2929_s10, %s2930_s11  }
  0x1d   : > { %p43_p12 = scmp.ne.s32.totalorder %s2922_s20, %s2918_s19  ;;  %p34_p13 = scmp.eq.s32.totalorder %s33_s16, 0 }
  0x1e   : > { %p44_p0 = scmp.eq.s32.totalorder %s2926_s21, 0  ;;  %p2507_p5 = scmp.lt.s32.totalorder %s2926_s21, 2 }
  0x1f   : > { %p3032_p3 = por %p141_p2, %p43_p12  ;;  %s221_s26 = sand.u32 1, %s2922_s20  }
  0x20   : > { %s3038_s23 = scalar_select %p34_p13, %s2922_s20, %s36_s15  }
  0x21   : > { %p45_p7 = por %p44_p0, %p43_p12  ;;  %s3041_s27 = sshll.u32 %s221_s26, 5 }
  0x22   : > { %3948 = sst [smem:[#allocation19_spill]] %s3038_s23  ;;  %s3938_s28 = sshll.u32 %s2926_s21, 5 }
  0x23   : > { %s3949_s0 = sld [smem:[#allocation20_spill]]  ;;  %s225_s8 = scalar_lea.vmem [#allocation2], %s3041_s27 }
  0x24   : > { %s233_s9 = sshll.u32 %s225_s8, 4  ;;  %p3050_p2 = pnand %p2507_p5, %p45_p7  ;;  %s234_s9 = int_to_ptr.vmem [resolvable:$true] %s233_s9 }
  0x25   : > { %s222_s12 = scalar_lea.sflag [#allocation3], %s221_s26 }
  0x26   : > { %p2760_p10 = pneg %p3050_p2 }
  0x29   : > { %s230_s7 = scalar_lea.hbm %s3949_s0, %s3938_s28  ;;  %s2763_s6 = scalar_lea.hbm %s3949_s0, 64 }
  0x2a   : > { %s231_s10 = sshll.u32 %s230_s7, 4  ;;  %s232_s10 = int_to_ptr.hbm [resolvable:$true] %s231_s10 }
  0x2b   : > { %s2756_s13 = sshra.s32 %s232_s10, 4  ;;  %s2757_s13 = int_to_ptr.hbm [resolvable:$true] %s2756_s13 }
  0x2c   : > { %s2758_s15 = scalar_lea.hbm %s2757_s13, 32  ;;  %p2764_p0 = scmp.lt.s32.totalorder %s2757_s13, %s3949_s0 }
  0x2d   : > { %p2759_p9 = scmp.ne.s32.totalorder %s2757_s13, %s2758_s15  ;;  %p2765_p5 = scmp.lt.s32.totalorder %s2763_s6, %s2758_s15 }
  0x2f   : > { %p2761_p12 = pnand %p2760_p10, %p2759_p9  ;;  %p2766_p7 = por %p2765_p5, %p2764_p0 }
  0x31   : > { %p2762_p13 = pneg %p2761_p12 }
  0x33   : > { %p2767_p11 = pnand %p2766_p7, %p2762_p13 }
  0x35   : > { %2770 = shalt.err (!%p2767_p11)
}
  0x36   : > { %s2932_s26 = smov 256   ;;  %s2933_s28 = smov 16  }
  0x37   : > { %2494 = dma.hbm_to_vmem [thread:$0]  (!%p3050_p2), %s232_s10, 512, %s234_s9, %s222_s12, %s2932_s26, %s2932_s26, %s2933_s28  }
  0x38   : > { %s3951_s2 = sshll.u32 %s2926_s21, 5  ;;  %s247_s7 = scalar_lea.vmem [#allocation5], %s3041_s27 }
  0x39   : > { %s252_s3 = scalar_lea.hbm %s3933_s1, %s3951_s2  ;;  %s255_s13 = sshll.u32 %s247_s7, 4  ;;  %s256_s13 = int_to_ptr.vmem [resolvable:$true] %s255_s13 }
  0x3a   : > { %s253_s15 = sshll.u32 %s252_s3, 4  ;;  %s243_s6 = sand.u32 1, %s2926_s21   ;;  %s254_s15 = int_to_ptr.hbm [resolvable:$true] %s253_s15 }
  0x3b   : > { %s244_s8 = scalar_lea.sflag [#allocation6], %s243_s6  ;;  %s2786_s0 = sshra.s32 %s254_s15, 4  ;;  %s2787_s0 = int_to_ptr.hbm [resolvable:$true] %s2786_s0 }
  0x3c   : > { %s2788_s23 = scalar_lea.hbm %s2787_s0, 32  ;;  %s2793_s12 = scalar_lea.hbm %s3933_s1, 64 }
  0x3d   : > { %p2789_p11 = scmp.ne.s32.totalorder %s2787_s0, %s2788_s23  ;;  %p2794_p13 = scmp.lt.s32.totalorder %s2787_s0, %s3933_s1 }
  0x3e   : > { %p2795_p0 = scmp.lt.s32.totalorder %s2793_s12, %s2788_s23 }
  0x3f   : > { %p2791_p9 = pnand %p2789_p11, %p2760_p10 }
  0x40   : > { %p2796_p5 = por %p2795_p0, %p2794_p13 }
  0x41   : > { %p2792_p12 = pneg %p2791_p9 }
  0x43   : > { %p2797_p7 = pnand %p2796_p5, %p2792_p12 }
  0x45   : > { %2800 = shalt.err (!%p2797_p7)
}
  0x46   : > { %2497 = dma.hbm_to_vmem [thread:$0]  (!%p3050_p2), %s254_s15, 512, %s256_s13, %s244_s8, %s2932_s26, %s2932_s26, %s2933_s28  }
  0x47   : > { %267 = sbr.rel (%p3009_p8) target bundleno = 1373 (0x55d), region = 36  ;;  %s3088_s3 = sand.u32 (!%p3009_p8), 1, %s2918_s19  }
  0x48   : > { %s3091_s16 = sshll.u32 (!%p3009_p8), %s3088_s3, 5  ;;  %s270_s0 = scalar_lea.sflag (!%p3009_p8), [#allocation3], %s3088_s3 }
  0x49   : > { %s3095_s23 = scalar_lea.vmem (!%p3009_p8), [#allocation2], %s3091_s16 }
  0x4c   : > { %2889 = dma.done.wait (%p2996_p4), %s270_s0, 512  }
  0x4d   : > { %2891 = vsyncadd (%p2996_p4), %s270_s0, 4294966784  ;;  %s279_s29 = sand.u32 1, %s2987_s22   ;;  %s3103_s11 = scalar_lea.vmem [#allocation5], %s3091_s16 }
  0x4e   : > { %s280_s28 = scalar_lea.sflag [#allocation6], %s279_s29 }
  0x4f   : > { %2893 = dma.done.wait (%p2996_p4), %s280_s28, 512  }
  0x50   : > { %2895 = vsyncadd (%p2996_p4), %s280_s28, 4294966784 }
  0x51   : > { %2897 = dma.done.wait (%p50_p1), [#allocation6], 16384  }
  0x52   : > { %2899 = vsyncadd (%p50_p1), [#allocation6], 4294950912 }
  0x53   : > { %2901 = dma.done.wait (%p50_p1), [#allocation9], 16384  }
  0x54   : > { %2903 = vsyncadd (%p50_p1), [#allocation9], 4294950912  ;;  %v399_v0 = vld [vmem:[#allocation7 + $0x1e0] sm:$0xff]  ;;  %v3121_v33 = vld [vmem:[%s3095_s23 + $0x8] sm:$0xff]  ;;  %vm995_vm0 = vcmask 130048   ;;  %s3566_s24 = scalar_lea.vmem [#allocation11], %s3091_s16 }
  0x55   : > { %v463_v1 = vld [vmem:[#allocation7 + $0x3e0] sm:$0xff]  ;;  %467 = vmatpush.msra.mxu0 %v399_v0  ;;  %v401_v34 = vld [vmem:[#allocation7 + $0x1f0] sm:$0xff]  ;;  %v3129_v43 = vld [vmem:[%s3095_s23 + $0x18] sm:$0xff]  ;;  %s3594_s26 = scalar_lea.vmem [#allocation10], %s3091_s16  ;;  %s2466_s30 = sshll.u32 %s2987_s22, 5 }
  0x56   : > { %v395_v2 = vld [vmem:[#allocation7 + $0x1c0] sm:$0xff]  ;;  %490 = vmatpush.msra.mxu1 %v463_v1  ;;  %v465_v35 = vld [vmem:[#allocation7 + $0x3f0] sm:$0xff]  ;;  %s2205_s15 = scalar_lea.hbm %s3936_s4, %s2466_s30  ;;  %s2206_s6 = sshll.u32 %s3594_s26, 4  ;;  %s2207_s6 = int_to_ptr.vmem [resolvable:$true] %s2206_s6 }
  0x57   : > { %v459_v3 = vld [vmem:[#allocation7 + $0x3c0] sm:$0xff]  ;;  %468 = vmatpush.msra.mxu0 %v395_v2  ;;  %v397_v36 = vld [vmem:[#allocation7 + $0x1d0] sm:$0xff]  ;;  %s2208_s8 = sshll.u32 %s2205_s15, 4  ;;  %s2189_s9 = scalar_lea.sflag [#allocation4], %s3088_s3  ;;  %s2209_s8 = int_to_ptr.hbm [resolvable:$true] %s2208_s8 }
  0x58   : > { %v391_v4 = vld [vmem:[#allocation7 + $0x1a0] sm:$0xff]  ;;  %491 = vmatpush.msra.mxu1 %v459_v3  ;;  %v461_v37 = vld [vmem:[#allocation7 + $0x3d0] sm:$0xff]  ;;  %s2830_s10 = sshra.s32 %s2209_s8, 4  ;;  %s2836_s27 = scalar_lea.hbm %s3936_s4, 64  ;;  %s2831_s10 = int_to_ptr.hbm [resolvable:$true] %s2830_s10 }
  0x59   : > { %v455_v5 = vld [vmem:[#allocation7 + $0x3a0] sm:$0xff]  ;;  %469 = vmatpush.msra.mxu0 %v391_v4  ;;  %v393_v38 = vld [vmem:[#allocation7 + $0x1b0] sm:$0xff]  ;;  %s2832_s12 = scalar_lea.hbm %s2831_s10, 32  ;;  %p2837_p2 = scmp.lt.s32.totalorder %s2831_s10, %s3936_s4 }
  0x5a   : > { %v387_v6 = vld [vmem:[#allocation7 + $0x180] sm:$0xff]  ;;  %492 = vmatpush.msra.mxu1 %v455_v5  ;;  %v457_v39 = vld [vmem:[#allocation7 + $0x3b0] sm:$0xff]  ;;  %p2833_p1 = scmp.ne.s32.totalorder %s2831_s10, %s2832_s12  ;;  %p2838_p10 = scmp.lt.s32.totalorder %s2836_s27, %s2832_s12 }
  0x5b   : > { %v451_v7 = vld [vmem:[#allocation7 + $0x380] sm:$0xff]  ;;  %470 = vmatpush.msra.mxu0 %v387_v6  ;;  %v389_v40 = vld [vmem:[#allocation7 + $0x190] sm:$0xff] }
  0x5c   : > { %v383_v8 = vld [vmem:[#allocation7 + $0x160] sm:$0xff]  ;;  %493 = vmatpush.msra.mxu1 %v451_v7  ;;  %v453_v41 = vld [vmem:[#allocation7 + $0x390] sm:$0xff]  ;;  %p2834_p4 = pnand %p2833_p1, %p3032_p3  ;;  %p2839_p11 = por %p2838_p10, %p2837_p2 }
  0x5d   : > { %v447_v9 = vld [vmem:[#allocation7 + $0x360] sm:$0xff]  ;;  %471 = vmatpush.msra.mxu0 %v383_v8  ;;  %v3126_v42 = vld [vmem:[%s3095_s23 + $0x10] sm:$0xff] }
  0x5e   : > { %v379_v10 = vld [vmem:[#allocation7 + $0x140] sm:$0xff]  ;;  %494 = vmatpush.msra.mxu1 %v447_v9  ;;  %v385_v44 = vld [vmem:[#allocation7 + $0x170] sm:$0xff]  ;;  %p2835_p8 = pneg %p2834_p4 }
  0x5f   : > { %v443_v11 = vld [vmem:[#allocation7 + $0x340] sm:$0xff]  ;;  %472 = vmatpush.msra.mxu0 %v379_v10  ;;  %v449_v45 = vld [vmem:[#allocation7 + $0x370] sm:$0xff] }
  0x60   : > { %v375_v12 = vld [vmem:[#allocation7 + $0x120] sm:$0xff]  ;;  %495 = vmatpush.msra.mxu1 %v443_v11  ;;  %v381_v46 = vld [vmem:[#allocation7 + $0x150] sm:$0xff]  ;;  %p2840_p9 = pnand %p2839_p11, %p2835_p8 }
  0x61   : > { %v439_v13 = vld [vmem:[#allocation7 + $0x320] sm:$0xff]  ;;  %473 = vmatpush.msra.mxu0 %v375_v12  ;;  %v445_v47 = vld [vmem:[#allocation7 + $0x350] sm:$0xff] }
  0x62   : > { %v371_v14 = vld [vmem:[#allocation7 + $0x100] sm:$0xff]  ;;  %496 = vmatpush.msra.mxu1 %v439_v13  ;;  %v377_v48 = vld [vmem:[#allocation7 + $0x130] sm:$0xff] }
  0x63   : > { %v435_v15 = vld [vmem:[#allocation7 + $0x300] sm:$0xff]  ;;  %474 = vmatpush.msra.mxu0 %v371_v14  ;;  %v441_v49 = vld [vmem:[#allocation7 + $0x330] sm:$0xff] }
  0x64   : > { %v367_v16 = vld [vmem:[#allocation7 + $0xe0] sm:$0xff]  ;;  %497 = vmatpush.msra.mxu1 %v435_v15  ;;  %v373_v50 = vld [vmem:[#allocation7 + $0x110] sm:$0xff] }
  0x65   : > { %v431_v17 = vld [vmem:[#allocation7 + $0x2e0] sm:$0xff]  ;;  %475 = vmatpush.msra.mxu0 %v367_v16  ;;  %v437_v51 = vld [vmem:[#allocation7 + $0x310] sm:$0xff] }
  0x66   : > { %v363_v18 = vld [vmem:[#allocation7 + $0xc0] sm:$0xff]  ;;  %498 = vmatpush.msra.mxu1 %v431_v17  ;;  %v369_v52 = vld [vmem:[#allocation7 + $0xf0] sm:$0xff] }
  0x67   : > { %v427_v19 = vld [vmem:[#allocation7 + $0x2c0] sm:$0xff]  ;;  %476 = vmatpush.msra.mxu0 %v363_v18  ;;  %v433_v53 = vld [vmem:[#allocation7 + $0x2f0] sm:$0xff] }
  0x68   : > { %v359_v20 = vld [vmem:[#allocation7 + $0xa0] sm:$0xff]  ;;  %499 = vmatpush.msra.mxu1 %v427_v19  ;;  %v365_v54 = vld [vmem:[#allocation7 + $0xd0] sm:$0xff] }
  0x69   : > { %v423_v21 = vld [vmem:[#allocation7 + $0x2a0] sm:$0xff]  ;;  %477 = vmatpush.msra.mxu0 %v359_v20  ;;  %v429_v55 = vld [vmem:[#allocation7 + $0x2d0] sm:$0xff] }
  0x6a   : > { %v355_v22 = vld [vmem:[#allocation7 + $0x80] sm:$0xff]  ;;  %500 = vmatpush.msra.mxu1 %v423_v21  ;;  %v361_v56 = vld [vmem:[#allocation7 + $0xb0] sm:$0xff] }
  0x6b   : > { %v419_v23 = vld [vmem:[#allocation7 + $0x280] sm:$0xff]  ;;  %478 = vmatpush.msra.mxu0 %v355_v22  ;;  %v425_v57 = vld [vmem:[#allocation7 + $0x2b0] sm:$0xff] }
  0x6c   : > { %v351_v24 = vld [vmem:[#allocation7 + $0x60] sm:$0xff]  ;;  %501 = vmatpush.msra.mxu1 %v419_v23  ;;  %v357_v58 = vld [vmem:[#allocation7 + $0x90] sm:$0xff] }
  0x6d   : > { %v415_v25 = vld [vmem:[#allocation7 + $0x260] sm:$0xff]  ;;  %479 = vmatpush.msra.mxu0 %v351_v24  ;;  %v421_v59 = vld [vmem:[#allocation7 + $0x290] sm:$0xff] }
  0x6e   : > { %v347_v26 = vld [vmem:[#allocation7 + $0x40] sm:$0xff]  ;;  %502 = vmatpush.msra.mxu1 %v415_v25  ;;  %v353_v60 = vld [vmem:[#allocation7 + $0x70] sm:$0xff] }
  0x6f   : > { %v411_v27 = vld [vmem:[#allocation7 + $0x240] sm:$0xff]  ;;  %480 = vmatpush.msra.mxu0 %v347_v26  ;;  %v417_v61 = vld [vmem:[#allocation7 + $0x270] sm:$0xff] }
  0x70   : > { %v343_v28 = vld [vmem:[#allocation7 + $0x20] sm:$0xff]  ;;  %503 = vmatpush.msra.mxu1 %v411_v27  ;;  %v349_v62 = vld [vmem:[#allocation7 + $0x50] sm:$0xff] }
  0x71   : > { %v407_v29 = vld [vmem:[#allocation7 + $0x220] sm:$0xff]  ;;  %481 = vmatpush.msra.mxu0 %v343_v28  ;;  %v413_v63 = vld [vmem:[#allocation7 + $0x250] sm:$0xff] }
  0x72   : > { %v339_v30 = vld [vmem:[#allocation7] sm:$0xff]  ;;  %504 = vmatpush.msra.mxu1 %v407_v29  ;;  %v345_v0 = vld [vmem:[#allocation7 + $0x30] sm:$0xff] }
  0x73   : > { %v403_v31 = vld [vmem:[#allocation7 + $0x200] sm:$0xff]  ;;  %482 = vmatpush.msra.mxu0 %v339_v30  ;;  %v409_v1 = vld [vmem:[#allocation7 + $0x230] sm:$0xff] }
  0x74   : > { %v3118_v32 = vld [vmem:[%s3095_s23] sm:$0xff]  ;;  %505 = vmatpush.msra.mxu1 %v403_v31  ;;  %v341_v2 = vld [vmem:[#allocation7 + $0x10] sm:$0xff] }
  0x75   : > { %483 = vmatmul.f32.vlgmr.msra.gmra.mxu0 %v3118_v32  ;;  %506 = vmatmul.f32.vlgmr.msra.gmra.mxu1 %v3121_v33  ;;  %v405_v3 = vld [vmem:[#allocation7 + $0x210] sm:$0xff]  ;;  %v711_v4 = vld [vmem:[#allocation8 + $0x1e0] sm:$0xff] }
  0x76   : > { %559 = vmatpush.msrb.mxu0 %v401_v34  ;;  %582 = vmatpush.msrb.mxu1 %v465_v35  ;;  %v775_v5 = vld [vmem:[#allocation8 + $0x3e0] sm:$0xff] }
  0x77   : > { %v707_v6 = vld [vmem:[#allocation8 + $0x1c0] sm:$0xff] }
  0x78   : > { %560 = vmatpush.msrb.mxu0 %v397_v36  ;;  %583 = vmatpush.msrb.mxu1 %v461_v37  ;;  %v771_v7 = vld [vmem:[#allocation8 + $0x3c0] sm:$0xff] }
  0x79   : > { %v703_v8 = vld [vmem:[#allocation8 + $0x1a0] sm:$0xff] }
  0x7a   : > { %561 = vmatpush.msrb.mxu0 %v393_v38  ;;  %584 = vmatpush.msrb.mxu1 %v457_v39  ;;  %v767_v9 = vld [vmem:[#allocation8 + $0x3a0] sm:$0xff]  ;;  %v3141_v39 = vld [vmem:[%s3103_s11 + $0x8] sm:$0xff] }
  0x7b   : > { %v699_v10 = vld [vmem:[#allocation8 + $0x180] sm:$0xff] }
  0x7c   : > { %562 = vmatpush.msrb.mxu0 %v389_v40  ;;  %585 = vmatpush.msrb.mxu1 %v453_v41  ;;  %v763_v11 = vld [vmem:[#allocation8 + $0x380] sm:$0xff]  ;;  %v3146_v40 = vld [vmem:[%s3103_s11 + $0x10] sm:$0xff]  ;;  %v3149_v41 = vld [vmem:[%s3103_s11 + $0x18] sm:$0xff] }
  0x7d   : > { %486 = vmatmul.f32.gmra.mxu0 %v3126_v42  ;;  %509 = vmatmul.f32.gmra.mxu1 %v3129_v43  ;;  %v695_v12 = vld [vmem:[#allocation8 + $0x160] sm:$0xff] }
  0x7e   : > { %563 = vmatpush.msrb.mxu0 %v385_v44  ;;  %586 = vmatpush.msrb.mxu1 %v449_v45  ;;  %v759_v13 = vld [vmem:[#allocation8 + $0x360] sm:$0xff]  ;;  %v713_v44 = vld [vmem:[#allocation8 + $0x1f0] sm:$0xff] }
  0x7f   : > { %v691_v14 = vld [vmem:[#allocation8 + $0x140] sm:$0xff]  ;;  %v709_v45 = vld [vmem:[#allocation8 + $0x1d0] sm:$0xff] }
  0x80   : > { %564 = vmatpush.msrb.mxu0 %v381_v46  ;;  %587 = vmatpush.msrb.mxu1 %v445_v47  ;;  %v755_v15 = vld [vmem:[#allocation8 + $0x340] sm:$0xff]  ;;  %v705_v46 = vld [vmem:[#allocation8 + $0x1b0] sm:$0xff] }
  0x81   : > { %v687_v16 = vld [vmem:[#allocation8 + $0x120] sm:$0xff]  ;;  %v701_v47 = vld [vmem:[#allocation8 + $0x190] sm:$0xff] }
  0x82   : > { %565 = vmatpush.msrb.mxu0 %v377_v48  ;;  %588 = vmatpush.msrb.mxu1 %v441_v49  ;;  %v751_v17 = vld [vmem:[#allocation8 + $0x320] sm:$0xff]  ;;  %v697_v48 = vld [vmem:[#allocation8 + $0x170] sm:$0xff] }
  0x83   : > { %v683_v18 = vld [vmem:[#allocation8 + $0x100] sm:$0xff]  ;;  %v693_v49 = vld [vmem:[#allocation8 + $0x150] sm:$0xff] }
  0x84   : > { %566 = vmatpush.msrb.mxu0 %v373_v50  ;;  %589 = vmatpush.msrb.mxu1 %v437_v51  ;;  %v747_v19 = vld [vmem:[#allocation8 + $0x300] sm:$0xff]  ;;  %v689_v50 = vld [vmem:[#allocation8 + $0x130] sm:$0xff] }
  0x85   : > { %v679_v20 = vld [vmem:[#allocation8 + $0xe0] sm:$0xff]  ;;  %v685_v51 = vld [vmem:[#allocation8 + $0x110] sm:$0xff] }
  0x86   : > { %567 = vmatpush.msrb.mxu0 %v369_v52  ;;  %590 = vmatpush.msrb.mxu1 %v433_v53  ;;  %v743_v21 = vld [vmem:[#allocation8 + $0x2e0] sm:$0xff]  ;;  %v681_v52 = vld [vmem:[#allocation8 + $0xf0] sm:$0xff] }
  0x87   : > { %v675_v22 = vld [vmem:[#allocation8 + $0xc0] sm:$0xff]  ;;  %v677_v53 = vld [vmem:[#allocation8 + $0xd0] sm:$0xff] }
  0x88   : > { %568 = vmatpush.msrb.mxu0 %v365_v54  ;;  %591 = vmatpush.msrb.mxu1 %v429_v55  ;;  %v739_v23 = vld [vmem:[#allocation8 + $0x2c0] sm:$0xff] }
  0x89   : > { %v671_v24 = vld [vmem:[#allocation8 + $0xa0] sm:$0xff] }
  0x8a   : > { %569 = vmatpush.msrb.mxu0 %v361_v56  ;;  %592 = vmatpush.msrb.mxu1 %v425_v57  ;;  %v735_v25 = vld [vmem:[#allocation8 + $0x2a0] sm:$0xff]  ;;  %v673_v57 = vld [vmem:[#allocation8 + $0xb0] sm:$0xff] }
  0x8b   : > { %v667_v26 = vld [vmem:[#allocation8 + $0x80] sm:$0xff] }
  0x8c   : > { %570 = vmatpush.msrb.mxu0 %v357_v58  ;;  %593 = vmatpush.msrb.mxu1 %v421_v59  ;;  %v731_v27 = vld [vmem:[#allocation8 + $0x280] sm:$0xff]  ;;  %v669_v58 = vld [vmem:[#allocation8 + $0x90] sm:$0xff] }
  0x8d   : > { %v663_v28 = vld [vmem:[#allocation8 + $0x60] sm:$0xff]  ;;  %v665_v59 = vld [vmem:[#allocation8 + $0x70] sm:$0xff] }
  0x8e   : > { %571 = vmatpush.msrb.mxu0 %v353_v60  ;;  %594 = vmatpush.msrb.mxu1 %v417_v61  ;;  %v727_v29 = vld [vmem:[#allocation8 + $0x260] sm:$0xff]  ;;  %v661_v60 = vld [vmem:[#allocation8 + $0x50] sm:$0xff] }
  0x8f   : > { %v659_v30 = vld [vmem:[#allocation8 + $0x40] sm:$0xff] }
  0x90   : > { %572 = vmatpush.msrb.mxu0 %v349_v62  ;;  %595 = vmatpush.msrb.mxu1 %v413_v63  ;;  %v723_v31 = vld [vmem:[#allocation8 + $0x240] sm:$0xff] }
  0x91   : > { %v655_v34 = vld [vmem:[#allocation8 + $0x20] sm:$0xff] }
  0x92   : > { %573 = vmatpush.msrb.mxu0 %v345_v0  ;;  %596 = vmatpush.msrb.mxu1 %v409_v1  ;;  %v719_v35 = vld [vmem:[#allocation8 + $0x220] sm:$0xff]  ;;  %v657_v0 = vld [vmem:[#allocation8 + $0x30] sm:$0xff] }
  0x93   : > { %v651_v36 = vld [vmem:[#allocation8] sm:$0xff]  ;;  %v653_v1 = vld [vmem:[#allocation8 + $0x10] sm:$0xff] }
  0x94   : > { %574 = vmatpush.msrb.mxu0 %v341_v2  ;;  %597 = vmatpush.msrb.mxu1 %v405_v3  ;;  %v715_v37 = vld [vmem:[#allocation8 + $0x200] sm:$0xff]  ;;  %v777_v2 = vld [vmem:[#allocation8 + $0x3f0] sm:$0xff] }
  0x95   : > { %575 = vmatmul.f32.vlgmr.msrb.gmra.mxu0 %v3118_v32  ;;  %598 = vmatmul.f32.vlgmr.msrb.gmra.mxu1 %v3121_v33  ;;  %v3138_v38 = vld [vmem:[%s3103_s11] sm:$0xff]  ;;  %v773_v3 = vld [vmem:[#allocation8 + $0x3d0] sm:$0xff] }
  0x96   : > { %779 = vmatpush.msra.mxu0 %v711_v4  ;;  %802 = vmatpush.msra.mxu1 %v775_v5  ;;  %v769_v4 = vld [vmem:[#allocation8 + $0x3b0] sm:$0xff] }
  0x97   : > { %v765_v5 = vld [vmem:[#allocation8 + $0x390] sm:$0xff] }
  0x98   : > { %780 = vmatpush.msra.mxu0 %v707_v6  ;;  %803 = vmatpush.msra.mxu1 %v771_v7  ;;  %v761_v6 = vld [vmem:[#allocation8 + $0x370] sm:$0xff] }
  0x99   : > { %v757_v7 = vld [vmem:[#allocation8 + $0x350] sm:$0xff] }
  0x9a   : > { %781 = vmatpush.msra.mxu0 %v703_v8  ;;  %804 = vmatpush.msra.mxu1 %v767_v9  ;;  %v753_v8 = vld [vmem:[#allocation8 + $0x330] sm:$0xff] }
  0x9b   : > { %v749_v9 = vld [vmem:[#allocation8 + $0x310] sm:$0xff] }
  0x9c   : > { %782 = vmatpush.msra.mxu0 %v699_v10  ;;  %805 = vmatpush.msra.mxu1 %v763_v11 }
  0x9d   : > { %578 = vmatmul.f32.gmra.mxu0 %v3126_v42  ;;  %601 = vmatmul.f32.gmra.mxu1 %v3129_v43 }
  0x9e   : > { %783 = vmatpush.msra.mxu0 %v695_v12  ;;  %806 = vmatpush.msra.mxu1 %v759_v13  ;;  %v745_v12 = vld [vmem:[#allocation8 + $0x2f0] sm:$0xff] }
  0x9f   : > { %v741_v13 = vld [vmem:[#allocation8 + $0x2d0] sm:$0xff] }
  0xa0   : > { %784 = vmatpush.msra.mxu0 %v691_v14  ;;  %807 = vmatpush.msra.mxu1 %v755_v15  ;;  %v737_v14 = vld [vmem:[#allocation8 + $0x2b0] sm:$0xff] }
  0xa1   : > { %v733_v15 = vld [vmem:[#allocation8 + $0x290] sm:$0xff] }
  0xa2   : > { %785 = vmatpush.msra.mxu0 %v687_v16  ;;  %808 = vmatpush.msra.mxu1 %v751_v17 }
  0xa4   : > { %786 = vmatpush.msra.mxu0 %v683_v18  ;;  %809 = vmatpush.msra.mxu1 %v747_v19 }
  0xa6   : > { %787 = vmatpush.msra.mxu0 %v679_v20  ;;  %810 = vmatpush.msra.mxu1 %v743_v21  ;;  %v729_v20 = vld [vmem:[#allocation8 + $0x270] sm:$0xff] }
  0xa7   : > { %v725_v21 = vld [vmem:[#allocation8 + $0x250] sm:$0xff] }
  0xa8   : > { %788 = vmatpush.msra.mxu0 %v675_v22  ;;  %811 = vmatpush.msra.mxu1 %v739_v23  ;;  %v400_v22 = vld [vmem:[#allocation7 + $0x1e8] sm:$0xff] }
  0xa9   : > { %v464_v23 = vld [vmem:[#allocation7 + $0x3e8] sm:$0xff]  ;;  %513 = vmatpush.msra.mxu2 %v400_v22 }
  0xaa   : > { %789 = vmatpush.msra.mxu0 %v671_v24  ;;  %812 = vmatpush.msra.mxu1 %v735_v25  ;;  %v721_v24 = vld [vmem:[#allocation8 + $0x230] sm:$0xff]  ;;  %v396_v25 = vld [vmem:[#allocation7 + $0x1c8] sm:$0xff] }
  0xab   : > { %536 = vmatpush.msra.mxu3 %v464_v23  ;;  %514 = vmatpush.msra.mxu2 %v396_v25  ;;  %v438_v23 = vld [vmem:[#allocation7 + $0x318] sm:$0xff] }
  0xac   : > { %790 = vmatpush.msra.mxu0 %v667_v26  ;;  %813 = vmatpush.msra.mxu1 %v731_v27  ;;  %v460_v26 = vld [vmem:[#allocation7 + $0x3c8] sm:$0xff] }
  0xad   : > { %v392_v27 = vld [vmem:[#allocation7 + $0x1a8] sm:$0xff]  ;;  %537 = vmatpush.msra.mxu3 %v460_v26  ;;  %v370_v26 = vld [vmem:[#allocation7 + $0xf8] sm:$0xff] }
  0xae   : > { %791 = vmatpush.msra.mxu0 %v663_v28  ;;  %814 = vmatpush.msra.mxu1 %v727_v29  ;;  %v717_v28 = vld [vmem:[#allocation8 + $0x210] sm:$0xff]  ;;  %v456_v29 = vld [vmem:[#allocation7 + $0x3a8] sm:$0xff] }
  0xaf   : > { %515 = vmatpush.msra.mxu2 %v392_v27  ;;  %538 = vmatpush.msra.mxu3 %v456_v29  ;;  %v434_v27 = vld [vmem:[#allocation7 + $0x2f8] sm:$0xff] }
  0xb0   : > { %792 = vmatpush.msra.mxu0 %v659_v30  ;;  %815 = vmatpush.msra.mxu1 %v723_v31  ;;  %v388_v30 = vld [vmem:[#allocation7 + $0x188] sm:$0xff]  ;;  %v430_v29 = vld [vmem:[#allocation7 + $0x2d8] sm:$0xff] }
  0xb1   : > { %v452_v31 = vld [vmem:[#allocation7 + $0x388] sm:$0xff]  ;;  %516 = vmatpush.msra.mxu2 %v388_v30  ;;  %v362_v30 = vld [vmem:[#allocation7 + $0xb8] sm:$0xff] }
  0xb2   : > { %793 = vmatpush.msra.mxu0 %v655_v34  ;;  %816 = vmatpush.msra.mxu1 %v719_v35 }
  0xb3   : > { %539 = vmatpush.msra.mxu3 %v452_v31  ;;  %v426_v31 = vld [vmem:[#allocation7 + $0x2b8] sm:$0xff] }
  0xb4   : > { %794 = vmatpush.msra.mxu0 %v651_v36  ;;  %817 = vmatpush.msra.mxu1 %v715_v37 }
  0xb5   : > { %795 = vmatmul.f32.vlgmr.msra.gmra.mxu0 %v3138_v38  ;;  %818 = vmatmul.f32.vlgmr.msra.gmra.mxu1 %v3141_v39 }
  0xb6   : > { %871 = vmatpush.msrb.mxu0 %v713_v44  ;;  %894 = vmatpush.msrb.mxu1 %v777_v2  ;;  %v344_v2 = vld [vmem:[#allocation7 + $0x28] sm:$0xff] }
  0xb8   : > { %872 = vmatpush.msrb.mxu0 %v709_v45  ;;  %895 = vmatpush.msrb.mxu1 %v773_v3  ;;  %v408_v3 = vld [vmem:[#allocation7 + $0x228] sm:$0xff] }
  0xba   : > { %873 = vmatpush.msrb.mxu0 %v705_v46  ;;  %896 = vmatpush.msrb.mxu1 %v769_v4  ;;  %v384_v46 = vld [vmem:[#allocation7 + $0x168] sm:$0xff] }
  0xbb   : > { %517 = vmatpush.msra.mxu2 %v384_v46  ;;  %v340_v4 = vld [vmem:[#allocation7 + $0x8] sm:$0xff]  ;;  %v418_v46 = vld [vmem:[#allocation7 + $0x278] sm:$0xff] }
  0xbc   : > { %874 = vmatpush.msrb.mxu0 %v701_v47  ;;  %897 = vmatpush.msrb.mxu1 %v765_v5  ;;  %v448_v47 = vld [vmem:[#allocation7 + $0x368] sm:$0xff] }
  0xbd   : > { %798 = vmatmul.f32.gmra.mxu0 %v3146_v40  ;;  %821 = vmatmul.f32.gmra.mxu1 %v3149_v41  ;;  %v404_v5 = vld [vmem:[#allocation7 + $0x208] sm:$0xff] }
  0xbe   : > { %875 = vmatpush.msrb.mxu0 %v697_v48  ;;  %898 = vmatpush.msrb.mxu1 %v761_v6  ;;  %v380_v48 = vld [vmem:[#allocation7 + $0x148] sm:$0xff]  ;;  %v402_v6 = vld [vmem:[#allocation7 + $0x1f8] sm:$0xff] }
  0xbf   : > { %540 = vmatpush.msra.mxu3 %v448_v47  ;;  %518 = vmatpush.msra.mxu2 %v380_v48 }
  0xc0   : > { %876 = vmatpush.msrb.mxu0 %v693_v49  ;;  %899 = vmatpush.msrb.mxu1 %v757_v7  ;;  %v444_v49 = vld [vmem:[#allocation7 + $0x348] sm:$0xff]  ;;  %v466_v7 = vld [vmem:[#allocation7 + $0x3f8] sm:$0xff] }
  0xc1   : > { %541 = vmatpush.msra.mxu3 %v444_v49  ;;  %v350_v49 = vld [vmem:[#allocation7 + $0x58] sm:$0xff] }
  0xc2   : > { %877 = vmatpush.msrb.mxu0 %v689_v50  ;;  %900 = vmatpush.msrb.mxu1 %v753_v8  ;;  %v376_v50 = vld [vmem:[#allocation7 + $0x128] sm:$0xff]  ;;  %v398_v8 = vld [vmem:[#allocation7 + $0x1d8] sm:$0xff] }
  0xc3   : > { %519 = vmatpush.msra.mxu2 %v376_v50  ;;  %v414_v50 = vld [vmem:[#allocation7 + $0x258] sm:$0xff] }
  0xc4   : > { %878 = vmatpush.msrb.mxu0 %v685_v51  ;;  %901 = vmatpush.msrb.mxu1 %v749_v9  ;;  %v440_v51 = vld [vmem:[#allocation7 + $0x328] sm:$0xff]  ;;  %v462_v9 = vld [vmem:[#allocation7 + $0x3d8] sm:$0xff] }
  0xc5   : > { %542 = vmatpush.msra.mxu3 %v440_v51  ;;  %v346_v51 = vld [vmem:[#allocation7 + $0x38] sm:$0xff] }
  0xc6   : > { %879 = vmatpush.msrb.mxu0 %v681_v52  ;;  %902 = vmatpush.msrb.mxu1 %v745_v12  ;;  %v372_v52 = vld [vmem:[#allocation7 + $0x108] sm:$0xff]  ;;  %v390_v12 = vld [vmem:[#allocation7 + $0x198] sm:$0xff] }
  0xc7   : > { %520 = vmatpush.msra.mxu2 %v372_v52  ;;  %v410_v52 = vld [vmem:[#allocation7 + $0x238] sm:$0xff] }
  0xc8   : > { %880 = vmatpush.msrb.mxu0 %v677_v53  ;;  %903 = vmatpush.msrb.mxu1 %v741_v13  ;;  %v436_v53 = vld [vmem:[#allocation7 + $0x308] sm:$0xff]  ;;  %v454_v13 = vld [vmem:[#allocation7 + $0x398] sm:$0xff] }
  0xc9   : > { %543 = vmatpush.msra.mxu3 %v436_v53  ;;  %v342_v53 = vld [vmem:[#allocation7 + $0x18] sm:$0xff] }
  0xca   : > { %881 = vmatpush.msrb.mxu0 %v673_v57  ;;  %904 = vmatpush.msrb.mxu1 %v737_v14  ;;  %v428_v57 = vld [vmem:[#allocation7 + $0x2c8] sm:$0xff] }
  0xcc   : > { %882 = vmatpush.msrb.mxu0 %v669_v58  ;;  %905 = vmatpush.msrb.mxu1 %v733_v15  ;;  %v360_v58 = vld [vmem:[#allocation7 + $0xa8] sm:$0xff]  ;;  %v386_v15 = vld [vmem:[#allocation7 + $0x178] sm:$0xff] }
  0xce   : > { %883 = vmatpush.msrb.mxu0 %v665_v59  ;;  %906 = vmatpush.msrb.mxu1 %v729_v20  ;;  %v424_v59 = vld [vmem:[#allocation7 + $0x2a8] sm:$0xff]  ;;  %v442_v20 = vld [vmem:[#allocation7 + $0x338] sm:$0xff] }
  0xd0   : > { %884 = vmatpush.msrb.mxu0 %v661_v60  ;;  %907 = vmatpush.msrb.mxu1 %v725_v21  ;;  %v356_v60 = vld [vmem:[#allocation7 + $0x88] sm:$0xff]  ;;  %v374_v21 = vld [vmem:[#allocation7 + $0x118] sm:$0xff] }
  0xd2   : > { %885 = vmatpush.msrb.mxu0 %v657_v0  ;;  %908 = vmatpush.msrb.mxu1 %v721_v24  ;;  %v348_v0 = vld [vmem:[#allocation7 + $0x48] sm:$0xff] }
  0xd4   : > { %886 = vmatpush.msrb.mxu0 %v653_v1  ;;  %909 = vmatpush.msrb.mxu1 %v717_v28  ;;  %v412_v1 = vld [vmem:[#allocation7 + $0x248] sm:$0xff]  ;;  %v366_v28 = vld [vmem:[#allocation7 + $0xd8] sm:$0xff] }
  0xd5   : > { %887 = vmatmul.f32.vlgmr.msrb.gmra.mxu0 %v3138_v38  ;;  %910 = vmatmul.f32.vlgmr.msrb.gmra.mxu1 %v3141_v39 }
  0xdd   : > { %890 = vmatmul.f32.gmra.mxu0 %v3146_v40  ;;  %913 = vmatmul.f32.gmra.mxu1 %v3149_v41 }
  0xf2   : > { %v484_v54 = vpop.f32.mrf.mxu0  ;;  %v507_v55 = vpop.f32.mrf.mxu1 }
  0xf3   : > { %v508_v56 = vadd.f32 %v507_v55, %v484_v54  ;;  %v368_v54 = vld [vmem:[#allocation7 + $0xe8] sm:$0xff] }
  0xf4   : > { %v432_v55 = vld [vmem:[#allocation7 + $0x2e8] sm:$0xff]  ;;  %521 = vmatpush.msra.mxu2 %v368_v54  ;;  %v406_v54 = vld [vmem:[#allocation7 + $0x218] sm:$0xff] }
  0xf5   : > { %963 = vxpose.xlu0.b32.start [1/2] (short) %v508_v56, 128  ;;  %v364_v56 = vld [vmem:[#allocation7 + $0xc8] sm:$0xff]  ;;  %544 = vmatpush.msra.mxu3 %v432_v55 }
  0xf6   : > { %522 = vmatpush.msra.mxu2 %v364_v56  ;;  %v712_v55 = vld [vmem:[#allocation8 + $0x1e8] sm:$0xff] }
  0xf7   : > { %545 = vmatpush.msra.mxu3 %v428_v57  ;;  %v776_v56 = vld [vmem:[#allocation8 + $0x3e8] sm:$0xff] }
  0xf8   : > { %523 = vmatpush.msra.mxu2 %v360_v58  ;;  %v708_v58 = vld [vmem:[#allocation8 + $0x1c8] sm:$0xff] }
  0xf9   : > { %546 = vmatpush.msra.mxu3 %v424_v59  ;;  %v772_v59 = vld [vmem:[#allocation8 + $0x3c8] sm:$0xff] }
  0xfa   : > { %v487_v61 = vpop.f32.mrf.mxu0  ;;  %v510_v62 = vpop.f32.mrf.mxu1  ;;  %524 = vmatpush.msra.mxu2 %v356_v60  ;;  %v704_v60 = vld [vmem:[#allocation8 + $0x1a8] sm:$0xff] }
  0xfb   : > { %v511_v63 = vadd.f32 %v510_v62, %v487_v61  ;;  %v420_v61 = vld [vmem:[#allocation7 + $0x288] sm:$0xff] }
  0xfc   : > { %547 = vmatpush.msra.mxu3 %v420_v61  ;;  %v352_v62 = vld [vmem:[#allocation7 + $0x68] sm:$0xff] }
  0xfd   : > { %964 = vxpose.xlu0.b32.end [2/2] (short) %v511_v63, 128  ;;  %v416_v63 = vld [vmem:[#allocation7 + $0x268] sm:$0xff]  ;;  %525 = vmatpush.msra.mxu2 %v352_v62 }
  0xfe   : > { %548 = vmatpush.msra.mxu3 %v416_v63  ;;  %v768_v61 = vld [vmem:[#allocation8 + $0x3a8] sm:$0xff] }
  0xff   : > { %526 = vmatpush.msra.mxu2 %v348_v0  ;;  %v700_v62 = vld [vmem:[#allocation8 + $0x188] sm:$0xff] }
 0x100   : > { %549 = vmatpush.msra.mxu3 %v412_v1  ;;  %v764_v63 = vld [vmem:[#allocation8 + $0x388] sm:$0xff] }
 0x101   : > { %527 = vmatpush.msra.mxu2 %v344_v2  ;;  %v696_v1 = vld [vmem:[#allocation8 + $0x168] sm:$0xff] }
 0x102   : > { %550 = vmatpush.msra.mxu3 %v408_v3  ;;  %v760_v2 = vld [vmem:[#allocation8 + $0x368] sm:$0xff] }
 0x103   : > { %528 = vmatpush.msra.mxu2 %v340_v4  ;;  %v692_v3 = vld [vmem:[#allocation8 + $0x148] sm:$0xff] }
 0x104   : > { %551 = vmatpush.msra.mxu3 %v404_v5  ;;  %529 = vmatmul.f32.vlgmr.msra.gmra.mxu2 %v3118_v32  ;;  %v756_v4 = vld [vmem:[#allocation8 + $0x348] sm:$0xff] }
 0x105   : > { %605 = vmatpush.msrb.mxu2 %v402_v6  ;;  %552 = vmatmul.f32.vlgmr.msra.gmra.mxu3 %v3121_v33  ;;  %v688_v5 = vld [vmem:[#allocation8 + $0x128] sm:$0xff] }
 0x106   : > { %628 = vmatpush.msrb.mxu3 %v466_v7  ;;  %v748_v6 = vld [vmem:[#allocation8 + $0x308] sm:$0xff] }
 0x107   : > { %606 = vmatpush.msrb.mxu2 %v398_v8  ;;  %v680_v8 = vld [vmem:[#allocation8 + $0xe8] sm:$0xff] }
 0x108   : > { %629 = vmatpush.msrb.mxu3 %v462_v9  ;;  %v744_v9 = vld [vmem:[#allocation8 + $0x2e8] sm:$0xff] }
 0x10c   : > { %532 = vmatmul.f32.gmra.mxu2 %v3126_v42 }
 0x10d   : > { %555 = vmatmul.f32.gmra.mxu3 %v3129_v43 }
 0x112   : > { %v576_v10 = vpop.f32.mrf.mxu0  ;;  %v599_v11 = vpop.f32.mrf.mxu1 }
 0x113   : > { %v600_v18 = vadd.f32 %v599_v11, %v576_v10  ;;  %v394_v10 = vld [vmem:[#allocation7 + $0x1b8] sm:$0xff] }
 0x114   : > { %v458_v11 = vld [vmem:[#allocation7 + $0x3b8] sm:$0xff]  ;;  %607 = vmatpush.msrb.mxu2 %v394_v10  ;;  %v676_v10 = vld [vmem:[#allocation8 + $0xc8] sm:$0xff] }
 0x115   : > { %630 = vmatpush.msrb.mxu3 %v458_v11  ;;  %v740_v11 = vld [vmem:[#allocation8 + $0x2c8] sm:$0xff] }
 0x116   : > { %608 = vmatpush.msrb.mxu2 %v390_v12  ;;  %v672_v12 = vld [vmem:[#allocation8 + $0xa8] sm:$0xff] }
 0x117   : > { %631 = vmatpush.msrb.mxu3 %v454_v13  ;;  %v668_v13 = vld [vmem:[#allocation8 + $0x88] sm:$0xff] }
 0x118   : > { %609 = vmatpush.msrb.mxu2 %v386_v15  ;;  %v664_v15 = vld [vmem:[#allocation8 + $0x68] sm:$0xff] }
 0x11a   : > { %v579_v16 = vpop.f32.mrf.mxu0  ;;  %v602_v17 = vpop.f32.mrf.mxu1 }
 0x11b   : > { %v603_v19 = vadd.f32 %v602_v17, %v579_v16  ;;  %v450_v16 = vld [vmem:[#allocation7 + $0x378] sm:$0xff] }
 0x11c   : > { %v382_v17 = vld [vmem:[#allocation7 + $0x158] sm:$0xff]  ;;  %632 = vmatpush.msrb.mxu3 %v450_v16  ;;  %v728_v16 = vld [vmem:[#allocation8 + $0x268] sm:$0xff] }
 0x11d   : > { %1058 = vmatpush.msra.mxu0 %v603_v19  ;;  %v378_v19 = vld [vmem:[#allocation7 + $0x138] sm:$0xff]  ;;  %610 = vmatpush.msrb.mxu2 %v382_v17  ;;  %v660_v17 = vld [vmem:[#allocation8 + $0x48] sm:$0xff] }
 0x11f   : > { %1059 = vmatpush.msra.mxu0 %v600_v18  ;;  %v446_v18 = vld [vmem:[#allocation7 + $0x358] sm:$0xff]  ;;  %611 = vmatpush.msrb.mxu2 %v378_v19  ;;  %v656_v19 = vld [vmem:[#allocation8 + $0x28] sm:$0xff] }
 0x120   : > { %633 = vmatpush.msrb.mxu3 %v446_v18  ;;  %v724_v18 = vld [vmem:[#allocation8 + $0x248] sm:$0xff] }
 0x121   : > { %612 = vmatpush.msrb.mxu2 %v374_v21  ;;  %v652_v21 = vld [vmem:[#allocation8 + $0x8] sm:$0xff] }
 0x122   : > { %634 = vmatpush.msrb.mxu3 %v442_v20  ;;  %v720_v20 = vld [vmem:[#allocation8 + $0x228] sm:$0xff] }
 0x123   : > { %613 = vmatpush.msrb.mxu2 %v370_v26 }
 0x124   : > { %635 = vmatpush.msrb.mxu3 %v438_v23 }
 0x125   : > { %614 = vmatpush.msrb.mxu2 %v366_v28 }
 0x126   : > { %636 = vmatpush.msrb.mxu3 %v434_v27 }
 0x127   : > { %615 = vmatpush.msrb.mxu2 %v362_v30 }
 0x128   : > { %637 = vmatpush.msrb.mxu3 %v430_v29 }
 0x12a   : > { %638 = vmatpush.msrb.mxu3 %v426_v31 }
 0x132   : > { %v796_v34 = vpop.f32.mrf.mxu0  ;;  %v819_v35 = vpop.f32.mrf.mxu1 }
 0x133   : > { %v820_v36 = vadd.f32 %v819_v35, %v796_v34  ;;  %v358_v34 = vld [vmem:[#allocation7 + $0x98] sm:$0xff] }
 0x134   : > { %v422_v35 = vld [vmem:[#allocation7 + $0x298] sm:$0xff]  ;;  %616 = vmatpush.msrb.mxu2 %v358_v34 }
 0x135   : > { %1109 = vxpose.xlu1.b32.start [1/2] (short) %v820_v36, 128  ;;  %639 = vmatpush.msrb.mxu3 %v422_v35 }
 0x137   : > { %640 = vmatpush.msrb.mxu3 %v418_v46 }
 0x139   : > { %641 = vmatpush.msrb.mxu3 %v414_v50 }
 0x13a   : > { %v799_v37 = vpop.f32.mrf.mxu0  ;;  %v822_v44 = vpop.f32.mrf.mxu1 }
 0x13b   : > { %v823_v45 = vadd.f32 %v822_v44, %v799_v37  ;;  %642 = vmatpush.msrb.mxu3 %v410_v52 }
 0x13d   : > { %1110 = vxpose.xlu1.b32.end [2/2] (short) %v823_v45, 128  ;;  %v354_v45 = vld [vmem:[#allocation7 + $0x78] sm:$0xff]  ;;  %643 = vmatpush.msrb.mxu3 %v406_v54 }
 0x13e   : > { %617 = vmatpush.msrb.mxu2 %v354_v45  ;;  %644 = vmatmul.f32.vlgmr.msrb.gmra.mxu3 %v3121_v33  ;;  %v752_v33 = vld [vmem:[#allocation8 + $0x328] sm:$0xff] }
 0x13f   : > { %848 = vmatpush.msra.mxu3 %v776_v56 }
 0x140   : > { %618 = vmatpush.msrb.mxu2 %v350_v49 }
 0x141   : > { %849 = vmatpush.msra.mxu3 %v772_v59 }
 0x142   : > { %619 = vmatpush.msrb.mxu2 %v346_v51 }
 0x143   : > { %850 = vmatpush.msra.mxu3 %v768_v61 }
 0x144   : > { %620 = vmatpush.msrb.mxu2 %v342_v53 }
 0x145   : > { %621 = vmatmul.f32.vlgmr.msrb.gmra.mxu2 %v3118_v32  ;;  %851 = vmatpush.msra.mxu3 %v764_v63  ;;  %v684_v32 = vld [vmem:[#allocation8 + $0x108] sm:$0xff] }
 0x146   : > { %825 = vmatpush.msra.mxu2 %v712_v55  ;;  %647 = vmatmul.f32.gmra.mxu3 %v3129_v43  ;;  %v736_v43 = vld [vmem:[#allocation8 + $0x2a8] sm:$0xff] }
 0x147   : > { %852 = vmatpush.msra.mxu3 %v760_v2 }
 0x148   : > { %826 = vmatpush.msra.mxu2 %v708_v58 }
 0x149   : > { %853 = vmatpush.msra.mxu3 %v756_v4 }
 0x14a   : > { %827 = vmatpush.msra.mxu2 %v704_v60 }
 0x14b   : > { %854 = vmatpush.msra.mxu3 %v752_v33 }
 0x14c   : > { %828 = vmatpush.msra.mxu2 %v700_v62 }
 0x14d   : > { %624 = vmatmul.f32.gmra.mxu2 %v3126_v42  ;;  %855 = vmatpush.msra.mxu3 %v748_v6  ;;  %v732_v42 = vld [vmem:[#allocation8 + $0x288] sm:$0xff] }
 0x14e   : > { %829 = vmatpush.msra.mxu2 %v696_v1 }
 0x14f   : > { %856 = vmatpush.msra.mxu3 %v744_v9 }
 0x150   : > { %830 = vmatpush.msra.mxu2 %v692_v3 }
 0x151   : > { %857 = vmatpush.msra.mxu3 %v740_v11 }
 0x152   : > { %v888_v22 = vpop.f32.mrf.mxu0  ;;  %v911_v25 = vpop.f32.mrf.mxu1  ;;  %831 = vmatpush.msra.mxu2 %v688_v5 }
 0x153   : > { %v912_v47 = vadd.f32 %v911_v25, %v888_v22  ;;  %858 = vmatpush.msra.mxu3 %v736_v43  ;;  %v716_v22 = vld [vmem:[#allocation8 + $0x208] sm:$0xff] }
 0x154   : > { %832 = vmatpush.msra.mxu2 %v684_v32 }
 0x155   : > { %859 = vmatpush.msra.mxu3 %v732_v42  ;;  %v778_v42 = vld [vmem:[#allocation8 + $0x3f8] sm:$0xff] }
 0x156   : > { %833 = vmatpush.msra.mxu2 %v680_v8 }
 0x157   : > { %860 = vmatpush.msra.mxu3 %v728_v16  ;;  %v774_v16 = vld [vmem:[#allocation8 + $0x3d8] sm:$0xff] }
 0x158   : > { %834 = vmatpush.msra.mxu2 %v676_v10 }
 0x159   : > { %861 = vmatpush.msra.mxu3 %v724_v18  ;;  %v706_v18 = vld [vmem:[#allocation8 + $0x1b8] sm:$0xff] }
 0x15a   : > { %v891_v36 = vpop.f32.mrf.mxu0  ;;  %v914_v44 = vpop.f32.mrf.mxu1  ;;  %835 = vmatpush.msra.mxu2 %v672_v12 }
 0x15b   : > { %v915_v48 = vadd.f32 %v914_v44, %v891_v36  ;;  %862 = vmatpush.msra.mxu3 %v720_v20 }
 0x15c   : > { %836 = vmatpush.msra.mxu2 %v668_v13  ;;  %v714_v13 = vld [vmem:[#allocation8 + $0x1f8] sm:$0xff] }
 0x15d   : > { %1203 = vmatpush.msra.mxu1 %v915_v48  ;;  %863 = vmatpush.msra.mxu3 %v716_v22  ;;  %v766_v22 = vld [vmem:[#allocation8 + $0x398] sm:$0xff] }
 0x15e   : > { %837 = vmatpush.msra.mxu2 %v664_v15  ;;  %864 = vmatmul.f32.vlgmr.msra.gmra.mxu3 %v3141_v39 }
 0x15f   : > { %1204 = vmatpush.msra.mxu1 %v912_v47  ;;  %940 = vmatpush.msrb.mxu3 %v778_v42  ;;  %v718_v42 = vld [vmem:[#allocation8 + $0x218] sm:$0xff] }
 0x160   : > { %838 = vmatpush.msra.mxu2 %v660_v17 }
 0x161   : > { %941 = vmatpush.msrb.mxu3 %v774_v16 }
 0x162   : > { %839 = vmatpush.msra.mxu2 %v656_v19  ;;  %v770_v19 = vld [vmem:[#allocation8 + $0x3b8] sm:$0xff] }
 0x163   : > { %942 = vmatpush.msrb.mxu3 %v770_v19 }
 0x164   : > { %840 = vmatpush.msra.mxu2 %v652_v21  ;;  %v702_v21 = vld [vmem:[#allocation8 + $0x198] sm:$0xff] }
 0x165   : > { %841 = vmatmul.f32.vlgmr.msra.gmra.mxu2 %v3138_v38  ;;  %943 = vmatpush.msrb.mxu3 %v766_v22 }
 0x166   : > { %867 = vmatmul.f32.gmra.mxu3 %v3149_v41  ;;  %917 = vmatpush.msrb.mxu2 %v714_v13  ;;  %v654_v13 = vld [vmem:[#allocation8 + $0x18] sm:$0xff] }
 0x16d   : > { %844 = vmatmul.f32.gmra.mxu2 %v3146_v40 }
 0x187   : > { %v3199_v56 = vpop.f32.mrf.mxu2 }
 0x18f   : > { %v3210_v63 = vpop.f32.mrf.mxu2 }
 0x199   : > { %v979_v14 = vpop.trf.xlu0 }
 0x19a   : > { %2392 = vmatmul.msk.f32.vlgmr.msra.gmra.mxu0 %vm995_vm0, %v979_v14 }
 0x1a1   : > { %v980_v24 = vpop.trf.xlu0 }
 0x1a2   : > { %2393 = vmatmul.msk.f32.gmra.mxu0 %vm995_vm0, %v980_v24 }
 0x1a9   : > { %v981_v37 = vpop.trf.xlu0 }
 0x1aa   : > { %2394 = vmatmul.msk.f32.gmra.mxu0 %vm995_vm0, %v981_v37 }
 0x1b1   : > { %v982_v57 = vpop.trf.xlu0 }
 0x1b2   : > { %2395 = vmatmul.msk.f32.gmra.mxu0 %vm995_vm0, %v982_v57  ;;  %v3201_v57 = vpop.f32.mrf.mxu3 }
 0x1b9   : > { %v983_v0 = vpop.trf.xlu0 }
 0x1ba   : > { %2396 = vmatmul.msk.f32.gmra.mxu0 %vm995_vm0, %v983_v0  ;;  %v3212_v0 = vpop.f32.mrf.mxu3 }
 0x1c1   : > { %v984_v7 = vpop.trf.xlu0 }
 0x1c2   : > { %2397 = vmatmul.msk.f32.gmra.mxu0 %vm995_vm0, %v984_v7  ;;  %v645_v32 = vpop.f32.mrf.mxu3 }
 0x1c8   : > { %v622_v33 = vpop.f32.mrf.mxu2 }
 0x1c9   : > { %v985_v14 = vpop.trf.xlu0  ;;  %v3221_v6 = vadd.f32 %v645_v32, %v622_v33  ;;  %v662_v33 = vld [vmem:[#allocation8 + $0x58] sm:$0xff] }
 0x1ca   : > { %2398 = vmatmul.msk.f32.gmra.mxu0 %vm995_vm0, %v985_v14  ;;  %v648_v43 = vpop.f32.mrf.mxu3  ;;  %v710_v14 = vld [vmem:[#allocation8 + $0x1d8] sm:$0xff] }
 0x1cb   : > { %918 = vmatpush.msrb.mxu2 %v710_v14  ;;  %v726_v32 = vld [vmem:[#allocation8 + $0x258] sm:$0xff] }
 0x1cd   : > { %919 = vmatpush.msrb.mxu2 %v706_v18 }
 0x1cf   : > { %920 = vmatpush.msrb.mxu2 %v702_v21 }
 0x1d0   : > { %v625_v12 = vpop.f32.mrf.mxu2 }
 0x1d1   : > { %v986_v23 = vpop.trf.xlu0  ;;  %v3230_v15 = vadd.f32 %v648_v43, %v625_v12  ;;  %v658_v12 = vld [vmem:[#allocation8 + $0x38] sm:$0xff] }
 0x1d2   : > { %2399 = vmatmul.msk.f32.gmra.mxu0 %vm995_vm0, %v986_v23  ;;  %v698_v23 = vld [vmem:[#allocation8 + $0x178] sm:$0xff] }
 0x1d3   : > { %921 = vmatpush.msrb.mxu2 %v698_v23  ;;  %v722_v43 = vld [vmem:[#allocation8 + $0x238] sm:$0xff] }
 0x1d9   : > { %v1125_v24 = vpop.trf.xlu1  ;;  %v987_v25 = vpop.trf.xlu0 }
 0x1da   : > { %2408 = vmatmul.msk.f32.vlgmr.msra.gmra.mxu1 %vm995_vm0, %v1125_v24  ;;  %2400 = vmatmul.msk.f32.gmra.mxu0 %vm995_vm0, %v987_v25  ;;  %v762_v24 = vld [vmem:[#allocation8 + $0x378] sm:$0xff] }
 0x1db   : > { %v694_v25 = vld [vmem:[#allocation8 + $0x158] sm:$0xff]  ;;  %944 = vmatpush.msrb.mxu3 %v762_v24 }
 0x1dc   : > { %922 = vmatpush.msrb.mxu2 %v694_v25 }
 0x1e1   : > { %v1126_v26 = vpop.trf.xlu1  ;;  %v988_v27 = vpop.trf.xlu0 }
 0x1e2   : > { %2409 = vmatmul.msk.f32.gmra.mxu1 %vm995_vm0, %v1126_v26  ;;  %2401 = vmatmul.msk.f32.gmra.mxu0 %vm995_vm0, %v988_v27  ;;  %v758_v26 = vld [vmem:[#allocation8 + $0x358] sm:$0xff] }
 0x1e3   : > { %945 = vmatpush.msrb.mxu3 %v758_v26 }
 0x1e8   : > { %v842_v27 = vpop.f32.mrf.mxu2 }
 0x1e9   : > { %v1127_v28 = vpop.trf.xlu1  ;;  %v989_v29 = vpop.trf.xlu0 }
 0x1ea   : > { %2410 = vmatmul.msk.f32.gmra.mxu1 %vm995_vm0, %v1127_v28  ;;  %2402 = vmatmul.msk.f32.gmra.mxu0 %vm995_vm0, %v989_v29  ;;  %v865_v28 = vpop.f32.mrf.mxu3 }
 0x1f1   : > { %v1128_v30 = vpop.trf.xlu1  ;;  %v990_v31 = vpop.trf.xlu0 }
 0x1f2   : > { %2411 = vmatmul.msk.f32.gmra.mxu1 %vm995_vm0, %v1128_v30  ;;  %2403 = vmatmul.msk.f32.gmra.mxu0 %vm995_vm0, %v990_v31  ;;  %v866_v30 = vadd.f32 %v865_v28, %v842_v27 }
 0x1f4   : > { %1721 = vxpose.xlu0.b32.start [1/2] (short) %v866_v30, 128 }
 0x1f9   : > { %v1129_v34 = vpop.trf.xlu1  ;;  %v991_v35 = vpop.trf.xlu0 }
 0x1fa   : > { %2412 = vmatmul.msk.f32.gmra.mxu1 %vm995_vm0, %v1129_v34  ;;  %2404 = vmatmul.msk.f32.gmra.mxu0 %vm995_vm0, %v991_v35  ;;  %v690_v34 = vld [vmem:[#allocation8 + $0x138] sm:$0xff] }
 0x1fb   : > { %v754_v35 = vld [vmem:[#allocation8 + $0x338] sm:$0xff]  ;;  %923 = vmatpush.msrb.mxu2 %v690_v34  ;;  %v554_v34 = vadd.f32 %v3201_v57, %v3199_v56 }
 0x1fc   : > { %946 = vmatpush.msrb.mxu3 %v754_v35 }
 0x1fd   : > { %1576 = vxpose.xlu2.b32.start [1/2] (short) %v554_v34, 128 }
 0x201   : > { %v1130_v36 = vpop.trf.xlu1  ;;  %v992_v37 = vpop.trf.xlu0 }
 0x202   : > { %2413 = vmatmul.msk.f32.gmra.mxu1 %vm995_vm0, %v1130_v36  ;;  %2405 = vmatmul.msk.f32.gmra.mxu0 %vm995_vm0, %v992_v37  ;;  %v686_v36 = vld [vmem:[#allocation8 + $0x118] sm:$0xff] }
 0x203   : > { %v750_v37 = vld [vmem:[#allocation8 + $0x318] sm:$0xff]  ;;  %924 = vmatpush.msrb.mxu2 %v686_v36 }
 0x204   : > { %947 = vmatpush.msrb.mxu3 %v750_v37 }
 0x209   : > { %v1131_v44 = vpop.trf.xlu1  ;;  %v993_v45 = vpop.trf.xlu0 }
 0x20a   : > { %2414 = vmatmul.msk.f32.gmra.mxu1 %vm995_vm0, %v1131_v44  ;;  %2406 = vmatmul.msk.f32.gmra.mxu0 %vm995_vm0, %v993_v45  ;;  %v682_v44 = vld [vmem:[#allocation8 + $0xf8] sm:$0xff] }
 0x20b   : > { %v746_v45 = vld [vmem:[#allocation8 + $0x2f8] sm:$0xff]  ;;  %925 = vmatpush.msrb.mxu2 %v682_v44 }
 0x20c   : > { %948 = vmatpush.msrb.mxu3 %v746_v45 }
 0x211   : > { %v1132_v46 = vpop.trf.xlu1  ;;  %v994_v47 = vpop.trf.xlu0 }
 0x212   : > { %2415 = vmatmul.msk.f32.gmra.mxu1 %vm995_vm0, %v1132_v46  ;;  %2407 = vmatmul.msk.f32.gmra.mxu0 %vm995_vm0, %v994_v47  ;;  %v678_v46 = vld [vmem:[#allocation8 + $0xd8] sm:$0xff]  ;;  %v845_v47 = vpop.f32.mrf.mxu2 }
 0x213   : > { %926 = vmatpush.msrb.mxu2 %v678_v46 }
 0x217   : > { %v1061_v48 = vpop.f32.mrf.mxu0 }
 0x218   : > { %v3203_v58 = vmul.f32 0.088388346, %v1061_v48  ;;  %v742_v48 = vld [vmem:[#allocation8 + $0x2d8] sm:$0xff] }
 0x219   : > { %v1133_v49 = vpop.trf.xlu1  ;;  %949 = vmatpush.msrb.mxu3 %v742_v48 }
 0x21a   : > { %2416 = vmatmul.msk.f32.gmra.mxu1 %vm995_vm0, %v1133_v49  ;;  %v868_v49 = vpop.f32.mrf.mxu3 }
 0x21f   : > { %v1064_v50 = vpop.f32.mrf.mxu0 }
 0x220   : > { %v3214_v1 = vmul.f32 0.088388346, %v1064_v50 }
 0x221   : > { %v1134_v51 = vpop.trf.xlu1 }
 0x222   : > { %2417 = vmatmul.msk.f32.gmra.mxu1 %vm995_vm0, %v1134_v51  ;;  %v869_v51 = vadd.f32 %v868_v49, %v845_v47  ;;  %v557_v47 = vadd.f32 %v3212_v0, %v3210_v63 }
 0x224   : > { %1722 = vxpose.xlu0.b32.end [2/2] (short) %v869_v51, 128  ;;  %1577 = vxpose.xlu2.b32.end [2/2] (short) %v557_v47, 128 }
 0x227   : > { %v1067_v52 = vpop.f32.mrf.mxu0 }
 0x228   : > { %v3223_v7 = vmul.f32 0.088388346, %v1067_v52 }
 0x229   : > { %v1135_v53 = vpop.trf.xlu1 }
 0x22a   : > { %2418 = vmatmul.msk.f32.gmra.mxu1 %vm995_vm0, %v1135_v53  ;;  %v674_v53 = vld [vmem:[#allocation8 + $0xb8] sm:$0xff] }
 0x22b   : > { %927 = vmatpush.msrb.mxu2 %v674_v53 }
 0x22f   : > { %v3196_v54 = vpop.f32.mrf.mxu0 }
 0x230   : > { %v1257_v44 = vmul.f32 0.088388346, %v3196_v54 }
 0x231   : > { %v1136_v55 = vpop.trf.xlu1 }
 0x232   : > { %2419 = vmatmul.msk.f32.gmra.mxu1 %vm995_vm0, %v1136_v55  ;;  %v738_v55 = vld [vmem:[#allocation8 + $0x2b8] sm:$0xff] }
 0x233   : > { %950 = vmatpush.msrb.mxu3 %v738_v55 }
 0x237   : > { %v1073_v59 = vpop.f32.mrf.mxu0 }
 0x238   : > { %v3205_v61 = vmul.f32 0.088388346, %v1073_v59  ;;  %v670_v59 = vld [vmem:[#allocation8 + $0x98] sm:$0xff] }
 0x239   : > { %v1137_v60 = vpop.trf.xlu1  ;;  %928 = vmatpush.msrb.mxu2 %v670_v59 }
 0x23a   : > { %2420 = vmatmul.msk.f32.gmra.mxu1 %vm995_vm0, %v1137_v60  ;;  %v1270_v62 = vmax.f32 %v3203_v58, %v3205_v61  ;;  %v734_v60 = vld [vmem:[#allocation8 + $0x298] sm:$0xff] }
 0x23b   : > { %951 = vmatpush.msrb.mxu3 %v734_v60 }
 0x23f   : > { %v1076_v2 = vpop.f32.mrf.mxu0 }
 0x240   : > { %v3216_v4 = vmul.f32 0.088388346, %v1076_v2  ;;  %v666_v2 = vld [vmem:[#allocation8 + $0x78] sm:$0xff] }
 0x241   : > { %v1138_v3 = vpop.trf.xlu1  ;;  %929 = vmatpush.msrb.mxu2 %v666_v2 }
 0x242   : > { %2421 = vmatmul.msk.f32.gmra.mxu1 %vm995_vm0, %v1138_v3  ;;  %v1271_v5 = vmax.f32 %v3214_v1, %v3216_v4  ;;  %v730_v3 = vld [vmem:[#allocation8 + $0x278] sm:$0xff] }
 0x243   : > { %952 = vmatpush.msrb.mxu3 %v730_v3  ;;  %930 = vmatpush.msrb.mxu2 %v662_v33 }
 0x245   : > { %953 = vmatpush.msrb.mxu3 %v726_v32  ;;  %931 = vmatpush.msrb.mxu2 %v658_v12 }
 0x247   : > { %v1079_v8 = vpop.f32.mrf.mxu0  ;;  %954 = vmatpush.msrb.mxu3 %v722_v43  ;;  %932 = vmatpush.msrb.mxu2 %v654_v13 }
 0x248   : > { %v3225_v10 = vmul.f32 0.088388346, %v1079_v8  ;;  %933 = vmatmul.f32.vlgmr.msrb.gmra.mxu2 %v3138_v38 }
 0x249   : > { %v1139_v9 = vpop.trf.xlu1  ;;  %955 = vmatpush.msrb.mxu3 %v718_v42 }
 0x24a   : > { %2422 = vmatmul.msk.f32.gmra.mxu1 %vm995_vm0, %v1139_v9  ;;  %v1272_v11 = vmax.f32 %v3223_v7, %v3225_v10  ;;  %956 = vmatmul.f32.vlgmr.msrb.gmra.mxu3 %v3141_v39 }
 0x24f   : > { %v3232_v17 = vpop.f32.mrf.mxu0 }
 0x250   : > { %936 = vmatmul.f32.gmra.mxu2 %v3146_v40  ;;  %v1261_v45 = vmul.f32 0.088388346, %v3232_v17 }
 0x251   : > { %v1140_v20 = vpop.trf.xlu1 }
 0x252   : > { %2423 = vmatmul.msk.f32.gmra.mxu1 %vm995_vm0, %v1140_v20  ;;  %959 = vmatmul.f32.gmra.mxu3 %v3149_v41  ;;  %v1273_v48 = vmax.f32 %v1257_v44, %v1261_v45 }
 0x257   : > { %v1206_v29 = vpop.f32.mrf.mxu1  ;;  %v1085_v31 = vpop.f32.mrf.mxu0 }
 0x258   : > { %v3241_v19 = vmul.f32 0.088388346, %v1206_v29  ;;  %v3247_v23 = vmul.f32 0.088388346, %v1085_v31 }
 0x25a   : > { %v1274_v26 = vmax.f32 %v1270_v62, %v3247_v23 }
 0x25f   : > { %v1209_v50 = vpop.f32.mrf.mxu1  ;;  %v1088_v52 = vpop.f32.mrf.mxu0 }
 0x260   : > { %v3249_v38 = vmul.f32 0.088388346, %v1088_v52  ;;  %v3253_v25 = vmul.f32 0.088388346, %v1209_v50 }
 0x262   : > { %v1275_v27 = vmax.f32 %v1271_v5, %v3249_v38 }
 0x267   : > { %v1212_v8 = vpop.f32.mrf.mxu1  ;;  %v1091_v9 = vpop.f32.mrf.mxu0 }
 0x268   : > { %v3273_v36 = vmul.f32 0.088388346, %v1212_v8  ;;  %v3283_v56 = vmul.f32 0.088388346, %v1091_v9 }
 0x26a   : > { %v1276_v54 = vmax.f32 %v1272_v11, %v3283_v56 }
 0x26f   : > { %v3237_v14 = vpop.f32.mrf.mxu1  ;;  %v1094_v16 = vpop.f32.mrf.mxu0 }
 0x270   : > { %v3285_v57 = vmul.f32 0.088388346, %v1094_v16 }
 0x272   : > { %v1277_v17 = vmax.f32 %v1273_v48, %v3285_v57 }
 0x277   : > { %v1218_v18 = vpop.f32.mrf.mxu1  ;;  %v1097_v21 = vpop.f32.mrf.mxu0 }
 0x278   : > { %v3243_v20 = vmul.f32 0.088388346, %v1218_v18  ;;  %v3251_v39 = vmul.f32 0.088388346, %v1097_v21 }
 0x27a   : > { %v1406_v22 = vmax.f32 %v3241_v19, %v3243_v20  ;;  %v1278_v30 = vmax.f32 %v1274_v26, %v3251_v39 }
 0x27f   : > { %v1221_v24 = vpop.f32.mrf.mxu1  ;;  %v1100_v41 = vpop.f32.mrf.mxu0 }
 0x280   : > { %v3255_v40 = vmul.f32 0.088388346, %v1221_v24  ;;  %v3265_v28 = vmul.f32 0.088388346, %v1100_v41 }
 0x282   : > { %v1407_v29 = vmax.f32 %v3253_v25, %v3255_v40  ;;  %v1279_v31 = vmax.f32 %v1275_v27, %v3265_v28 }
 0x284   : > { %v1282_v35 = vmax.f32 %v1278_v30, %v1279_v31 }
 0x287   : > { %v1224_v62 = vpop.f32.mrf.mxu1  ;;  %v1103_v5 = vpop.f32.mrf.mxu0 }
 0x288   : > { %v3275_v37 = vmul.f32 0.088388346, %v1224_v62  ;;  %v3287_v49 = vmul.f32 0.088388346, %v1103_v5 }
 0x28a   : > { %v1408_v46 = vmax.f32 %v3273_v36, %v3275_v37  ;;  %v1280_v63 = vmax.f32 %v1276_v54, %v3287_v49 }
 0x28f   : > { %v3289_v50 = vpop.f32.mrf.mxu1  ;;  %v1106_v51 = vpop.f32.mrf.mxu0 }
 0x290   : > { %v3296_v52 = vmul.f32 0.088388346, %v1106_v51 }
 0x292   : > { %v1281_v0 = vmax.f32 %v1277_v17, %v3296_v52 }
 0x294   : > { %v1283_v53 = vmax.f32 %v1280_v63, %v1281_v0 }
 0x296   : > { %v1284_v55 = vmax.f32 %v1282_v35, %v1283_v53 }
 0x297   : > { %v1230_v59 = vpop.f32.mrf.mxu1 }
 0x298   : > { %v1285_v60 = vrot.slane %v1284_v55, 4 }
 0x29a   : > { %v1286_v2 = vmax.f32 %v1284_v55, %v1285_v60  ;;  %v3348_v60 = vmul.f32 0.088388346, %v1230_v59 }
 0x29c   : > { %v1287_v3 = vrot.slane %v1286_v2, 2 }
 0x29e   : > { %v1288_v33 = vmax.f32 %v1286_v2, %v1287_v3 }
 0x29f   : > { %v1233_v32 = vpop.f32.mrf.mxu1 }
 0x2a0   : > { %v1289_v8 = vrot.slane %v1288_v33, 1  ;;  %v3350_v2 = vmul.f32 0.088388346, %v1233_v32 }
 0x2a2   : > { %v3300_v9 = vmax.f32 %v1288_v33, %v1289_v8 }
 0x2a4   : > { %v1291_v11 = vsub.f32 %v3203_v58, %v3300_v9  ;;  %v1292_v12 = vsub.f32 %v3214_v1, %v3300_v9  ;;  %v1293_v43 = vsub.f32 %v3223_v7, %v3300_v9  ;;  %v1294_v13 = vsub.f32 %v1257_v44, %v3300_v9 }
 0x2a5   : > { %v1295_v42 = vsub.f32 %v3205_v61, %v3300_v9  ;;  %v1296_v16 = vsub.f32 %v3216_v4, %v3300_v9  ;;  %v1297_v18 = vsub.f32 %v3225_v10, %v3300_v9  ;;  %v1298_v61 = vsub.f32 %v1261_v45, %v3300_v9 }
 0x2a6   : > { %v1307_v58 = vmul.f32 1.442695, %v1291_v11  ;;  %v1309_v24 = vmul.f32 1.442695, %v1292_v12  ;;  %v1311_v41 = vmul.f32 1.442695, %v1293_v43  ;;  %v1299_v10 = vsub.f32 %v3247_v23, %v3300_v9 }
 0x2a7   : > { %v3315_v21 = vpop.f32.mrf.mxu1  ;;  %v1313_v1 = vmul.f32 1.442695, %v1294_v13  ;;  %v1315_v7 = vmul.f32 1.442695, %v1295_v42  ;;  %v1317_v27 = vmul.f32 1.442695, %v1296_v16  ;;  %v1300_v62 = vsub.f32 %v3249_v38, %v3300_v9 }
 0x2a8   : > { %2552 = vpow2.f32 %v1307_v58  ;;  %v1319_v31 = vmul.f32 1.442695, %v1297_v18  ;;  %v1321_v5 = vmul.f32 1.442695, %v1298_v61  ;;  %v1301_v47 = vsub.f32 %v3283_v56, %v3300_v9 }
 0x2a9   : > { %2554 = vpow2.f32 %v1309_v24  ;;  %v1323_v23 = vmul.f32 1.442695, %v1299_v10  ;;  %v1302_v17 = vsub.f32 %v3285_v57, %v3300_v9  ;;  %v1325_v38 = vmul.f32 1.442695, %v1300_v62 }
 0x2aa   : > { %2556 = vpow2.f32 %v1311_v41  ;;  %v1303_v53 = vsub.f32 %v3251_v39, %v3300_v9  ;;  %v1327_v56 = vmul.f32 1.442695, %v1301_v47  ;;  %v1304_v57 = vsub.f32 %v3265_v28, %v3300_v9 }
 0x2ab   : > { %2558 = vpow2.f32 %v1313_v1  ;;  %v1329_v33 = vmul.f32 1.442695, %v1302_v17  ;;  %v1305_v39 = vsub.f32 %v3287_v49, %v3300_v9  ;;  %v1410_v28 = vmax.f32 %v1406_v22, %v3348_v60 }
 0x2ac   : > { %2560 = vpow2.f32 %v1315_v7  ;;  %v1331_v12 = vmul.f32 1.442695, %v1303_v53  ;;  %v1411_v43 = vmax.f32 %v1407_v29, %v3350_v2  ;;  %v1306_v49 = vsub.f32 %v3296_v52, %v3300_v9 }
 0x2ad   : > { %2562 = vpow2.f32 %v1317_v27  ;;  %v1333_v16 = vmul.f32 1.442695, %v1304_v57  ;;  %v1335_v22 = vmul.f32 1.442695, %v1305_v39 }
 0x2ae   : > { %v3320_v4 = vpop.eup %2552  ;;  %2564 = vpow2.f32 %v1319_v31  ;;  %v1337_v52 = vmul.f32 1.442695, %v1306_v49 }
 0x2af   : > { %v3317_v26 = vpop.f32.mrf.mxu1  ;;  %v3322_v30 = vpop.eup %2554  ;;  %2566 = vpow2.f32 %v1321_v5 }
 0x2b0   : > { %v1339_v34 = vadd.f32 %v3322_v30, %v3320_v4  ;;  %v3328_v35 = vpop.eup %2556  ;;  %2568 = vpow2.f32 %v1323_v23  ;;  %v3406_v17 = vmul.f32 0.088388346, %v3317_v26 }
 0x2b1   : > { %v3333_v45 = vpop.eup %2558  ;;  %2570 = vpow2.f32 %v1325_v38 }
 0x2b2   : > { %v1340_v44 = vadd.f32 %v3328_v35, %v1339_v34  ;;  %v3338_v54 = vpop.eup %2560  ;;  %2572 = vpow2.f32 %v1327_v56 }
 0x2b3   : > { %v3343_v0 = vpop.eup %2562  ;;  %2574 = vpow2.f32 %v1329_v33 }
 0x2b4   : > { %v1341_v48 = vadd.f32 %v3333_v45, %v1340_v44  ;;  %v3352_v3 = vpop.eup %2564  ;;  %2576 = vpow2.f32 %v1331_v12  ;;  %v3396_v44 = vmul.f32 0.088388346, %v3289_v50 }
 0x2b5   : > { %v3357_v11 = vpop.eup %2566  ;;  %2578 = vpow2.f32 %v1333_v16 }
 0x2b6   : > { %v1342_v63 = vadd.f32 %v3338_v54, %v1341_v48  ;;  %v3372_v42 = vpop.eup %2568  ;;  %2580 = vpow2.f32 %v1335_v22  ;;  %v1393_v48 = vmul.f32 0.088388346, %v3237_v14 }
 0x2b7   : > { %v1242_v51 = vpop.f32.mrf.mxu1  ;;  %v3379_v24 = vpop.eup %2570  ;;  %2582 = vpow2.f32 %v1337_v52 }
 0x2b8   : > { %v1343_v55 = vadd.f32 %v3343_v0, %v1342_v63  ;;  %v3361_v59 = vmul.f32 0.088388346, %v1242_v51  ;;  %v3384_v7 = vpop.eup %2572  ;;  %v3403_v51 = vmul.f32 0.088388346, %v3315_v21  ;;  %v1409_v53 = vmax.f32 %v1393_v48, %v3396_v44 }
 0x2b9   : > { %v3387_v27 = vpop.eup %2574 }
 0x2ba   : > { %v1344_v8 = vadd.f32 %v3352_v3, %v1343_v55  ;;  %v1414_v41 = vmax.f32 %v1410_v28, %v3361_v59  ;;  %v3390_v34 = vpop.eup %2576  ;;  %v1412_v14 = vmax.f32 %v1408_v46, %v3403_v51  ;;  %v1413_v21 = vmax.f32 %v1409_v53, %v3406_v17 }
 0x2bb   : > { %v3393_v5 = vpop.eup %2578 }
 0x2bc   : > { %v1345_v32 = vadd.f32 %v3357_v11, %v1344_v8  ;;  %v3399_v23 = vpop.eup %2580 }
 0x2bd   : > { %v2583_v63 = vpop.eup %2582 }
 0x2be   : > { %v1346_v58 = vadd.f32 %v3372_v42, %v1345_v32 }
 0x2bf   : > { %v1245_v13 = vpop.f32.mrf.mxu1 }
 0x2c0   : > { %v3376_v18 = vmul.f32 0.088388346, %v1245_v13  ;;  %v1347_v1 = vadd.f32 %v3379_v24, %v1346_v58 }
 0x2c2   : > { %v1415_v29 = vmax.f32 %v1411_v43, %v3376_v18  ;;  %v1348_v61 = vadd.f32 %v3384_v7, %v1347_v1 }
 0x2c4   : > { %v1418_v9 = vmax.f32 %v1414_v41, %v1415_v29  ;;  %v1349_v10 = vadd.f32 %v3387_v27, %v1348_v61 }
 0x2c6   : > { %v1350_v62 = vadd.f32 %v3390_v34, %v1349_v10 }
 0x2c7   : > { %v1248_v31 = vpop.f32.mrf.mxu1 }
 0x2c8   : > { %v1351_v47 = vadd.f32 %v3393_v5, %v1350_v62  ;;  %v3410_v56 = vmul.f32 0.088388346, %v1248_v31 }
 0x2ca   : > { %v1352_v38 = vadd.f32 %v3399_v23, %v1351_v47  ;;  %v1416_v33 = vmax.f32 %v1412_v14, %v3410_v56 }
 0x2cc   : > { %v1353_v50 = vadd.f32 %v2583_v63, %v1352_v38 }
 0x2ce   : > { %v1354_v26 = vrot.slane %v1353_v50, 4 }
 0x2cf   : > { %v1251_v55 = vpop.f32.mrf.mxu1 }
 0x2d0   : > { %v3417_v57 = vmul.f32 0.088388346, %v1251_v55  ;;  %v1355_v39 = vadd.f32 %v1354_v26, %v1353_v50 }
 0x2d2   : > { %v1417_v8 = vmax.f32 %v1413_v21, %v3417_v57  ;;  %v1356_v32 = vrot.slane %v1355_v39, 2 }
 0x2d4   : > { %v1419_v12 = vmax.f32 %v1416_v33, %v1417_v8  ;;  %v1357_v43 = vadd.f32 %v1356_v32, %v1355_v39 }
 0x2d6   : > { %v1420_v28 = vmax.f32 %v1418_v9, %v1419_v12  ;;  %v1358_v49 = vrot.slane %v1357_v43, 1 }
 0x2d8   : > { %v1421_v13 = vrot.slane %v1420_v28, 4  ;;  %v1359_v58 = vadd.f32 %v1358_v49, %v1357_v43 }
 0x2da   : > { %v1422_v16 = vmax.f32 %v1420_v28, %v1421_v13  ;;  %2584 = vrcp.f32 %v1359_v58  ;;  %v1371_v50 = vand.u32 2147483648, %v1359_v58  ;;  %v1369_v55 = vand.u32 2147483647, %v1359_v58 }
 0x2db   : > { %vm1365_vm2 = vweird.f32 %v1359_v58 }
 0x2dc   : > { %v1423_v22 = vrot.slane %v1422_v16, 2  ;;  %vm1370_vm4 = vcmp.eq.f32.partialorder %v1369_v55, 8.507059e+37 }
 0x2de   : > { %v1424_v46 = vmax.f32 %v1422_v16, %v1423_v22 }
 0x2e0   : > { %v1425_v41 = vrot.slane %v1424_v46, 1  ;;  %v2585_v1 = vpop.eup %2584 }
 0x2e1   : > { %v1361_v52 = vmul.f32 %v2585_v1, %v1359_v58  ;;  %vm1366_vm1 = vweird.f32 %v2585_v1 }
 0x2e2   : > { %v3421_v29 = vmax.f32 %v1424_v46, %v1425_v41  ;;  %vm1367_vm3 = vmor %vm1365_vm2, %vm1366_vm1 }
 0x2e3   : > { %v1362_v38 = vsub.f32 1.0, %v1361_v52 }
 0x2e4   : > { %v1427_v61 = vsub.f32 %v3241_v19, %v3421_v29  ;;  %v1428_v10 = vsub.f32 %v3253_v25, %v3421_v29  ;;  %v1429_v9 = vsub.f32 %v3273_v36, %v3421_v29  ;;  %v1430_v31 = vsub.f32 %v1393_v48, %v3421_v29 }
 0x2e5   : > { %v1431_v62 = vsub.f32 %v3243_v20, %v3421_v29  ;;  %v1432_v47 = vsub.f32 %v3255_v40, %v3421_v29  ;;  %v1433_v53 = vsub.f32 %v3275_v37, %v3421_v29  ;;  %v1363_v19 = vmul.f32 %v2585_v1, %v1362_v38 }
 0x2e6   : > { %v1443_v25 = vmul.f32 1.442695, %v1427_v61  ;;  %v1445_v14 = vmul.f32 1.442695, %v1428_v10  ;;  %v1447_v36 = vmul.f32 1.442695, %v1429_v9  ;;  %v1434_v37 = vsub.f32 %v3396_v44, %v3421_v29 }
 0x2e7   : > { %v1364_v21 = vadd.f32 %v2585_v1, %v1363_v19  ;;  %v1372_v48 = vor.u32 1.1754944e-38, %v1371_v50  ;;  %v1449_v40 = vmul.f32 1.442695, %v1430_v31  ;;  %v1435_v33 = vsub.f32 %v3348_v60, %v3421_v29 }
 0x2e8   : > { %2586 = vpow2.f32 %v1443_v25  ;;  %v1451_v8 = vmul.f32 1.442695, %v1431_v62  ;;  %v1453_v39 = vmul.f32 1.442695, %v1432_v47  ;;  %v1455_v49 = vmul.f32 1.442695, %v1433_v53 }
 0x2e9   : > { %v1368_v20 = vsel %vm1367_vm3, %v2585_v1, %v1364_v21  ;;  %2588 = vpow2.f32 %v1445_v14  ;;  %v1459_v46 = vmul.f32 1.442695, %v1435_v33  ;;  %v934_v14 = vpop.f32.mrf.mxu2  ;;  %v957_v21 = vpop.f32.mrf.mxu3 }
 0x2ea   : > { %v3436_v26 = vsel %vm1370_vm4, %v1372_v48, %v1368_v20  ;;  %2590 = vpow2.f32 %v1447_v36 }
 0x2eb   : > { %v1389_v12 = vmul.f32 %v2583_v63, %v3436_v26  ;;  %v1388_v32 = vmul.f32 %v3399_v23, %v3436_v26  ;;  %v1387_v28 = vmul.f32 %v3393_v5, %v3436_v26  ;;  %2592 = vpow2.f32 %v1449_v40 }
 0x2ec   : > { %v1386_v43 = vmul.f32 %v3390_v34, %v3436_v26  ;;  %v1385_v44 = vmul.f32 %v3387_v27, %v3436_v26  ;;  %v1384_v60 = vmul.f32 %v3384_v7, %v3436_v26  ;;  %v1383_v23 = vmul.f32 %v3379_v24, %v3436_v26 }
 0x2ed   : > { %1549 = vmatpush.msra.mxu3 %v1389_v12  ;;  %v1382_v5 = vmul.f32 %v3372_v42, %v3436_v26  ;;  %v1381_v63 = vmul.f32 %v3357_v11, %v3436_v26  ;;  %2594 = vpow2.f32 %v1451_v8  ;;  %v1380_v27 = vmul.f32 %v3352_v3, %v3436_v26 }
 0x2ee   : > { %v3453_v13 = vpop.eup %2586  ;;  %v1379_v7 = vmul.f32 %v3343_v0, %v3436_v26  ;;  %v1378_v16 = vmul.f32 %v3338_v54, %v3436_v26  ;;  %v3473_v42 = vmul.f32 %v3333_v45, %v3436_v26  ;;  %v3477_v11 = vmul.f32 %v3328_v35, %v3436_v26 }
 0x2ef   : > { %v3461_v34 = vpop.eup %2588  ;;  %1550 = vmatpush.msra.mxu3 %v1388_v32  ;;  %v1436_v0 = vsub.f32 %v3350_v2, %v3421_v29  ;;  %2596 = vpow2.f32 %v1453_v39  ;;  %v1457_v3 = vmul.f32 1.442695, %v1434_v37  ;;  %v1437_v45 = vsub.f32 %v3403_v51, %v3421_v29 }
 0x2f0   : > { %v1475_v24 = vadd.f32 %v3461_v34, %v3453_v13  ;;  %v3479_v58 = vpop.eup %2590  ;;  %2598 = vpow2.f32 %v1455_v49  ;;  %v1438_v2 = vsub.f32 %v3406_v17, %v3421_v29  ;;  %v1439_v51 = vsub.f32 %v3361_v59, %v3421_v29 }
 0x2f1   : > { %1551 = vmatpush.msra.mxu3 %v1387_v28  ;;  %v3484_v22 = vpop.eup %2592  ;;  %2600 = vpow2.f32 %v1457_v3  ;;  %v1461_v1 = vmul.f32 1.442695, %v1436_v0  ;;  %v1463_v10 = vmul.f32 1.442695, %v1437_v45  ;;  %v1440_v17 = vsub.f32 %v3376_v18, %v3421_v29  ;;  %v937_v12 = vpop.f32.mrf.mxu2  ;;  %v2689_v3 = vld [vmem:[%s3103_s11 + $0x10] sm:$0xff] }
 0x2f2   : > { %v1476_v54 = vadd.f32 %v3479_v58, %v1475_v24  ;;  %2602 = vpow2.f32 %v1459_v46  ;;  %v1465_v62 = vmul.f32 1.442695, %v1438_v2  ;;  %v1441_v59 = vsub.f32 %v3410_v56, %v3421_v29  ;;  %v960_v32 = vpop.f32.mrf.mxu3 }
 0x2f3   : > { %1552 = vmatpush.msra.mxu3 %v1386_v43  ;;  %v3489_v41 = vpop.eup %2594  ;;  %2604 = vpow2.f32 %v1461_v1  ;;  %v1467_v53 = vmul.f32 1.442695, %v1439_v51  ;;  %v1442_v18 = vsub.f32 %v3417_v57, %v3421_v29  ;;  %v1469_v55 = vmul.f32 1.442695, %v1440_v17 }
 0x2f4   : > { %v1477_v35 = vadd.f32 %v3484_v22, %v1476_v54  ;;  %2606 = vpow2.f32 %v1463_v10  ;;  %v1471_v56 = vmul.f32 1.442695, %v1441_v59  ;;  %v1375_v43 = vmul.f32 %v3322_v30, %v3436_v26 }
 0x2f5   : > { %1553 = vmatpush.msra.mxu3 %v1385_v44  ;;  %v3494_v61 = vpop.eup %2596  ;;  %2608 = vpow2.f32 %v1465_v62  ;;  %v1473_v40 = vmul.f32 1.442695, %v1442_v18  ;;  %v1374_v49 = vmul.f32 %v3320_v4, %v3436_v26 }
 0x2f6   : > { %v1478_v52 = vadd.f32 %v3489_v41, %v1477_v35  ;;  %v3499_v31 = vpop.eup %2598  ;;  %2610 = vpow2.f32 %v1467_v53 }
 0x2f7   : > { %1554 = vmatpush.msra.mxu3 %v1384_v60  ;;  %v3504_v38 = vpop.eup %2600  ;;  %2612 = vpow2.f32 %v1469_v55 }
 0x2f8   : > { %v1479_v9 = vadd.f32 %v3494_v61, %v1478_v52  ;;  %v3509_v19 = vpop.eup %2602  ;;  %2614 = vpow2.f32 %v1471_v56 }
 0x2f9   : > { %1555 = vmatpush.msra.mxu3 %v1383_v23  ;;  %v3514_v36 = vpop.eup %2604  ;;  %2616 = vpow2.f32 %v1473_v40  ;;  %v961_v23 = vadd.f32 %v960_v32, %v937_v12 }
 0x2fa   : > { %v1480_v47 = vadd.f32 %v3499_v31, %v1479_v9  ;;  %v3517_v20 = vpop.eup %2606 }
 0x2fb   : > { %1556 = vmatpush.msra.mxu3 %v1382_v5  ;;  %v2609_v29 = vpop.eup %2608  ;;  %v1737_v5 = vpop.trf.xlu0 }
 0x2fc   : > { %v1481_v50 = vadd.f32 %v3504_v38, %v1480_v47  ;;  %v2611_v33 = vpop.eup %2610 }
 0x2fd   : > { %1557 = vmatpush.msra.mxu3 %v1381_v63  ;;  %v2613_v39 = vpop.eup %2612 }
 0x2fe   : > { %v1482_v25 = vadd.f32 %v3509_v19, %v1481_v50  ;;  %v2615_v44 = vpop.eup %2614 }
 0x2ff   : > { %1558 = vmatpush.msra.mxu3 %v1380_v27  ;;  %v2617_v63 = vpop.eup %2616 }
 0x300   : > { %v1483_v48 = vadd.f32 %v3514_v36, %v1482_v25 }
 0x301   : > { %1559 = vmatpush.msra.mxu3 %v1379_v7  ;;  %v958_v7 = vadd.f32 %v957_v21, %v934_v14 }
 0x302   : > { %v1484_v57 = vadd.f32 %v3517_v20, %v1483_v48 }
 0x303   : > { %1560 = vmatpush.msra.mxu3 %v1378_v16  ;;  %v2688_v16 = vld [vmem:[%s3103_s11] sm:$0xff] }
 0x304   : > { %v1485_v37 = vadd.f32 %v2609_v29, %v1484_v57 }
 0x305   : > { %1561 = vmatpush.msra.mxu3 %v3473_v42 }
 0x306   : > { %v1486_v8 = vadd.f32 %v2611_v33, %v1485_v37 }
 0x307   : > { %1562 = vmatpush.msra.mxu3 %v3477_v11  ;;  %v1738_v11 = vpop.trf.xlu0 }
 0x308   : > { %v1487_v28 = vadd.f32 %v2613_v39, %v1486_v8 }
 0x309   : > { %1563 = vmatpush.msra.mxu3 %v1375_v43 }
 0x30a   : > { %v1488_v60 = vadd.f32 %v2615_v44, %v1487_v28 }
 0x30b   : > { %1564 = vmatpush.msra.mxu3 %v1374_v49 }
 0x30c   : > { %v1489_v27 = vadd.f32 %v2617_v63, %v1488_v60  ;;  %1565 = vmatmul.f32.vlgmr.msra.gmra.mxu3 %v2688_v16 }
 0x30d   : > { %1815 = vmatpush.msrb.mxu3 %v961_v23 }
 0x30e   : > { %v1490_v24 = vrot.slane %v1489_v27, 4 }
 0x30f   : > { %1816 = vmatpush.msrb.mxu3 %v958_v7  ;;  %v1739_v26 = vpop.trf.xlu0 }
 0x310   : > { %v1491_v42 = vadd.f32 %v1490_v24, %v1489_v27 }
 0x312   : > { %v1492_v30 = vrot.slane %v1491_v42, 2 }
 0x314   : > { %v1493_v0 = vadd.f32 %v1492_v30, %v1491_v42  ;;  %1568 = vmatmul.f32.gmra.mxu3 %v2689_v3 }
 0x316   : > { %v1494_v54 = vrot.slane %v1493_v0, 1 }
 0x317   : > { %v1740_v35 = vpop.trf.xlu0 }
 0x318   : > { %v1495_v4 = vadd.f32 %v1494_v54, %v1493_v0 }
 0x31a   : > { %2618 = vrcp.f32 %v1495_v4  ;;  %v1507_v1 = vand.u32 2147483648, %v1495_v4  ;;  %v1505_v51 = vand.u32 2147483647, %v1495_v4  ;;  %vm1501_vm6 = vweird.f32 %v1495_v4 }
 0x31c   : > { %2440 = vmatmul.msk.f32.vlgmr.msrb.gmra.mxu3 %vm995_vm0, %v1737_v5  ;;  %v1508_v9 = vor.u32 1.1754944e-38, %v1507_v1  ;;  %vm1506_vm8 = vcmp.eq.f32.partialorder %v1505_v51, 8.507059e+37 }
 0x31f   : > { %v1741_v47 = vpop.trf.xlu0 }
 0x320   : > { %v2619_v45 = vpop.eup %2618 }
 0x321   : > { %v1497_v46 = vmul.f32 %v2619_v45, %v1495_v4  ;;  %vm1502_vm5 = vweird.f32 %v2619_v45 }
 0x322   : > { %vm1503_vm7 = vmor %vm1501_vm6, %vm1502_vm5 }
 0x323   : > { %v1498_v2 = vsub.f32 1.0, %v1497_v46 }
 0x324   : > { %2441 = vmatmul.msk.f32.gmra.mxu3 %vm995_vm0, %v1738_v11 }
 0x325   : > { %v1499_v52 = vmul.f32 %v2619_v45, %v1498_v2 }
 0x327   : > { %v1500_v10 = vadd.f32 %v2619_v45, %v1499_v52 }
 0x329   : > { %v1504_v17 = vsel %vm1503_vm7, %v2619_v45, %v1500_v10 }
 0x32a   : > { %v1509_v62 = vsel %vm1506_vm8, %v1508_v9, %v1504_v17 }
 0x32b   : > { %v1525_v59 = vmul.f32 %v2617_v63, %v1509_v62  ;;  %v1524_v53 = vmul.f32 %v2615_v44, %v1509_v62  ;;  %v1523_v50 = vmul.f32 %v2613_v39, %v1509_v62  ;;  %v1522_v18 = vmul.f32 %v2611_v33, %v1509_v62 }
 0x32c   : > { %v1521_v55 = vmul.f32 %v2609_v29, %v1509_v62  ;;  %v1520_v25 = vmul.f32 %v3517_v20, %v1509_v62  ;;  %v1519_v14 = vmul.f32 %v3514_v36, %v1509_v62  ;;  %v1518_v21 = vmul.f32 %v3509_v19, %v1509_v62  ;;  %2442 = vmatmul.msk.f32.gmra.mxu3 %vm995_vm0, %v1739_v26  ;;  %v1742_v36 = vpop.trf.xlu0 }
 0x32d   : > { %1526 = vmatpush.msra.mxu2 %v1525_v59  ;;  %v1517_v56 = vmul.f32 %v3504_v38, %v1509_v62  ;;  %v1516_v48 = vmul.f32 %v3499_v31, %v1509_v62  ;;  %v1515_v40 = vmul.f32 %v3494_v61, %v1509_v62  ;;  %v1514_v57 = vmul.f32 %v3489_v41, %v1509_v62  ;;  %v1592_v41 = vpop.trf.xlu2  ;;  %v2691_v38 = vld [vmem:[%s3095_s23 + $0x10] sm:$0xff] }
 0x32e   : > { %v1513_v37 = vmul.f32 %v3484_v22, %v1509_v62  ;;  %v1512_v29 = vmul.f32 %v3479_v58, %v1509_v62  ;;  %v1511_v20 = vmul.f32 %v3461_v34, %v1509_v62  ;;  %v1510_v19 = vmul.f32 %v3453_v13, %v1509_v62  ;;  %v2690_v58 = vld [vmem:[%s3095_s23] sm:$0xff] }
 0x32f   : > { %1527 = vmatpush.msra.mxu2 %v1524_v53 }
 0x331   : > { %1528 = vmatpush.msra.mxu2 %v1523_v50 }
 0x333   : > { %1529 = vmatpush.msra.mxu2 %v1522_v18 }
 0x334   : > { %2443 = vmatmul.msk.f32.gmra.mxu3 %vm995_vm0, %v1740_v35  ;;  %v1743_v61 = vpop.trf.xlu0 }
 0x335   : > { %1530 = vmatpush.msra.mxu2 %v1521_v55  ;;  %v1593_v13 = vpop.trf.xlu2 }
 0x337   : > { %1531 = vmatpush.msra.mxu2 %v1520_v25 }
 0x339   : > { %1532 = vmatpush.msra.mxu2 %v1519_v14 }
 0x33b   : > { %1533 = vmatpush.msra.mxu2 %v1518_v21 }
 0x33c   : > { %2444 = vmatmul.msk.f32.gmra.mxu3 %vm995_vm0, %v1741_v47  ;;  %v1744_v34 = vpop.trf.xlu0 }
 0x33d   : > { %1534 = vmatpush.msra.mxu2 %v1517_v56  ;;  %v1594_v31 = vpop.trf.xlu2 }
 0x33f   : > { %1535 = vmatpush.msra.mxu2 %v1516_v48 }
 0x341   : > { %1536 = vmatpush.msra.mxu2 %v1515_v40 }
 0x343   : > { %1537 = vmatpush.msra.mxu2 %v1514_v57 }
 0x344   : > { %2445 = vmatmul.msk.f32.gmra.mxu3 %vm995_vm0, %v1742_v36  ;;  %v1745_v22 = vpop.trf.xlu0 }
 0x345   : > { %1538 = vmatpush.msra.mxu2 %v1513_v37  ;;  %v1595_v8 = vpop.trf.xlu2 }
 0x347   : > { %1539 = vmatpush.msra.mxu2 %v1512_v29 }
 0x349   : > { %1540 = vmatpush.msra.mxu2 %v1511_v20 }
 0x34b   : > { %1541 = vmatpush.msra.mxu2 %v1510_v19 }
 0x34c   : > { %1542 = vmatmul.f32.vlgmr.msra.gmra.mxu2 %v2690_v58  ;;  %2446 = vmatmul.msk.f32.gmra.mxu3 %vm995_vm0, %v1743_v61  ;;  %v1746_v33 = vpop.trf.xlu0 }
 0x34d   : > { %1670 = vmatpush.msrb.mxu2 %v3230_v15  ;;  %v1596_v12 = vpop.trf.xlu2 }
 0x34f   : > { %1671 = vmatpush.msrb.mxu2 %v3221_v6 }
 0x354   : > { %1545 = vmatmul.f32.gmra.mxu2 %v2691_v38  ;;  %2447 = vmatmul.msk.f32.gmra.mxu3 %vm995_vm0, %v1744_v34  ;;  %v1747_v39 = vpop.trf.xlu0 }
 0x355   : > { %v1597_v6 = vpop.trf.xlu2 }
 0x35c   : > { %2424 = vmatmul.msk.f32.vlgmr.msrb.gmra.mxu2 %vm995_vm0, %v1592_v41  ;;  %2448 = vmatmul.msk.f32.gmra.mxu3 %vm995_vm0, %v1745_v22  ;;  %v1748_v15 = vpop.trf.xlu0 }
 0x35d   : > { %v1598_v28 = vpop.trf.xlu2 }
 0x364   : > { %2425 = vmatmul.msk.f32.gmra.mxu2 %vm995_vm0, %v1593_v13  ;;  %2449 = vmatmul.msk.f32.gmra.mxu3 %vm995_vm0, %v1746_v33  ;;  %v1749_v32 = vpop.trf.xlu0 }
 0x365   : > { %v1599_v44 = vpop.trf.xlu2 }
 0x36c   : > { %2426 = vmatmul.msk.f32.gmra.mxu2 %vm995_vm0, %v1594_v31  ;;  %2450 = vmatmul.msk.f32.gmra.mxu3 %vm995_vm0, %v1747_v39  ;;  %v1750_v43 = vpop.trf.xlu0 }
 0x36d   : > { %v1600_v49 = vpop.trf.xlu2 }
 0x374   : > { %2427 = vmatmul.msk.f32.gmra.mxu2 %vm995_vm0, %v1595_v8  ;;  %2451 = vmatmul.msk.f32.gmra.mxu3 %vm995_vm0, %v1748_v15  ;;  %v1751_v60 = vpop.trf.xlu0 }
 0x375   : > { %v1601_v63 = vpop.trf.xlu2 }
 0x37c   : > { %2428 = vmatmul.msk.f32.gmra.mxu2 %vm995_vm0, %v1596_v12  ;;  %2452 = vmatmul.msk.f32.gmra.mxu3 %vm995_vm0, %v1749_v32  ;;  %v1752_v5 = vpop.trf.xlu0 }
 0x37d   : > { %v1602_v7 = vpop.trf.xlu2 }
 0x384   : > { %2429 = vmatmul.msk.f32.gmra.mxu2 %vm995_vm0, %v1597_v6  ;;  %2453 = vmatmul.msk.f32.gmra.mxu3 %vm995_vm0, %v1750_v43 }
 0x385   : > { %v1603_v42 = vpop.trf.xlu2 }
 0x38c   : > { %2430 = vmatmul.msk.f32.gmra.mxu2 %vm995_vm0, %v1598_v28  ;;  %2454 = vmatmul.msk.f32.gmra.mxu3 %vm995_vm0, %v1751_v60 }
 0x38d   : > { %v1604_v11 = vpop.trf.xlu2 }
 0x38f   : > { %v1566_v23 = vpop.f32.mrf.mxu3 }
 0x390   : > { %1574 = vst [vmem:[%s3566_s24] sm:$0xff] %v1566_v23 }
 0x394   : > { %2431 = vmatmul.msk.f32.gmra.mxu2 %vm995_vm0, %v1599_v44  ;;  %2455 = vmatmul.msk.f32.gmra.mxu3 %vm995_vm0, %v1752_v5 }
 0x395   : > { %v1605_v3 = vpop.trf.xlu2 }
 0x397   : > { %v1569_v27 = vpop.f32.mrf.mxu3 }
 0x398   : > { %1575 = vst [vmem:[%s3566_s24 + $0x10] sm:$0xff] %v1569_v27 }
 0x39c   : > { %2432 = vmatmul.msk.f32.gmra.mxu2 %vm995_vm0, %v1600_v49 }
 0x39d   : > { %v1606_v35 = vpop.trf.xlu2 }
 0x39f   : > { %v1818_v16 = vpop.f32.mrf.mxu3 }
 0x3a0   : > { %v3577_v54 = vmul.f32 0.088388346, %v1818_v16 }
 0x3a4   : > { %2433 = vmatmul.msk.f32.gmra.mxu2 %vm995_vm0, %v1601_v63 }
 0x3a5   : > { %v1607_v62 = vpop.trf.xlu2 }
 0x3a7   : > { %v1821_v24 = vpop.f32.mrf.mxu3 }
 0x3a8   : > { %v3584_v46 = vmul.f32 0.088388346, %v1821_v24 }
 0x3ac   : > { %2434 = vmatmul.msk.f32.gmra.mxu2 %vm995_vm0, %v1602_v7 }
 0x3af   : > { %v1824_v30 = vpop.f32.mrf.mxu3 }
 0x3b0   : > { %v3591_v51 = vmul.f32 0.088388346, %v1824_v30 }
 0x3b4   : > { %2435 = vmatmul.msk.f32.gmra.mxu2 %vm995_vm0, %v1603_v42 }
 0x3b7   : > { %v1827_v0 = vpop.f32.mrf.mxu3 }
 0x3b8   : > { %v2005_v43 = vmul.f32 0.088388346, %v1827_v0 }
 0x3bc   : > { %2436 = vmatmul.msk.f32.gmra.mxu2 %vm995_vm0, %v1604_v11 }
 0x3bf   : > { %v1830_v4 = vpop.f32.mrf.mxu3 }
 0x3c0   : > { %v3579_v26 = vmul.f32 0.088388346, %v1830_v4 }
 0x3c2   : > { %v2018_v45 = vmax.f32 %v3577_v54, %v3579_v26 }
 0x3c4   : > { %2437 = vmatmul.msk.f32.gmra.mxu2 %vm995_vm0, %v1605_v3 }
 0x3c7   : > { %v1833_v2 = vpop.f32.mrf.mxu3 }
 0x3c8   : > { %v3586_v1 = vmul.f32 0.088388346, %v1833_v2 }
 0x3ca   : > { %v2019_v52 = vmax.f32 %v3584_v46, %v3586_v1 }
 0x3cc   : > { %2438 = vmatmul.msk.f32.gmra.mxu2 %vm995_vm0, %v1606_v35 }
 0x3cf   : > { %v1543_v10 = vpop.f32.mrf.mxu2  ;;  %v1836_v9 = vpop.f32.mrf.mxu3 }
 0x3d0   : > { %1572 = vst [vmem:[%s3594_s26] sm:$0xff] %v1543_v10  ;;  %v3597_v17 = vmul.f32 0.088388346, %v1836_v9 }
 0x3d2   : > { %v2020_v47 = vmax.f32 %v3591_v51, %v3597_v17 }
 0x3d4   : > { %2439 = vmatmul.msk.f32.gmra.mxu2 %vm995_vm0, %v1607_v62 }
 0x3d7   : > { %v1546_v59 = vpop.f32.mrf.mxu2  ;;  %v1839_v53 = vpop.f32.mrf.mxu3 }
 0x3d8   : > { %1573 = vst [vmem:[%s3594_s26 + $0x10] sm:$0xff] %v1546_v59  ;;  %v2009_v44 = vmul.f32 0.088388346, %v1839_v53 }
 0x3da   : > { %v2021_v49 = vmax.f32 %v2005_v43, %v2009_v44 }
 0x3df   : > { %v1673_v50 = vpop.f32.mrf.mxu2  ;;  %v1842_v18 = vpop.f32.mrf.mxu3 }
 0x3e0   : > { %v3605_v57 = vmul.f32 0.088388346, %v1673_v50  ;;  %v3611_v19 = vmul.f32 0.088388346, %v1842_v18 }
 0x3e2   : > { %v2022_v22 = vmax.f32 %v2018_v45, %v3611_v19 }
 0x3e7   : > { %v1676_v55 = vpop.f32.mrf.mxu2  ;;  %v1845_v25 = vpop.f32.mrf.mxu3 }
 0x3e8   : > { %v3613_v36 = vmul.f32 0.088388346, %v1845_v25  ;;  %v3617_v34 = vmul.f32 0.088388346, %v1676_v55 }
 0x3ea   : > { %v2023_v31 = vmax.f32 %v2019_v52, %v3613_v36 }
 0x3ef   : > { %v1679_v14 = vpop.f32.mrf.mxu2  ;;  %v1848_v21 = vpop.f32.mrf.mxu3 }
 0x3f0   : > { %v3629_v6 = vmul.f32 0.088388346, %v1679_v14  ;;  %v3635_v23 = vmul.f32 0.088388346, %v1848_v21 }
 0x3f2   : > { %v2024_v16 = vmax.f32 %v2020_v47, %v3635_v23 }
 0x3f7   : > { %v3603_v56 = vpop.f32.mrf.mxu2  ;;  %v1851_v48 = vpop.f32.mrf.mxu3 }
 0x3f8   : > { %v3637_v5 = vmul.f32 0.088388346, %v1851_v48 }
 0x3fa   : > { %v2025_v24 = vmax.f32 %v2021_v49, %v3637_v5 }
 0x3ff   : > { %v1685_v40 = vpop.f32.mrf.mxu2  ;;  %v1854_v29 = vpop.f32.mrf.mxu3 }
 0x400   : > { %v3607_v37 = vmul.f32 0.088388346, %v1685_v40  ;;  %v3615_v61 = vmul.f32 0.088388346, %v1854_v29 }
 0x402   : > { %v1882_v20 = vmax.f32 %v3605_v57, %v3607_v37  ;;  %v2026_v8 = vmax.f32 %v2022_v22, %v3615_v61 }
 0x407   : > { %v1688_v41 = vpop.f32.mrf.mxu2  ;;  %v1857_v58 = vpop.f32.mrf.mxu3 }
 0x408   : > { %v3619_v13 = vmul.f32 0.088388346, %v1688_v41  ;;  %v3623_v38 = vmul.f32 0.088388346, %v1857_v58 }
 0x40a   : > { %v1883_v33 = vmax.f32 %v3617_v34, %v3619_v13  ;;  %v2027_v39 = vmax.f32 %v2023_v31, %v3623_v38 }
 0x40c   : > { %v2030_v12 = vmax.f32 %v2026_v8, %v2027_v39 }
 0x40f   : > { %v1691_v15 = vpop.f32.mrf.mxu2  ;;  %v1860_v28 = vpop.f32.mrf.mxu3 }
 0x410   : > { %v3631_v32 = vmul.f32 0.088388346, %v1691_v15  ;;  %v3639_v63 = vmul.f32 0.088388346, %v1860_v28 }
 0x412   : > { %v1884_v60 = vmax.f32 %v3629_v6, %v3631_v32  ;;  %v2028_v30 = vmax.f32 %v2024_v16, %v3639_v63 }
 0x417   : > { %v3641_v27 = vpop.f32.mrf.mxu2  ;;  %v1863_v7 = vpop.f32.mrf.mxu3 }
 0x418   : > { %v3645_v42 = vmul.f32 0.088388346, %v1863_v7 }
 0x41a   : > { %v2029_v11 = vmax.f32 %v2025_v24, %v3645_v42 }
 0x41c   : > { %v2031_v0 = vmax.f32 %v2028_v30, %v2029_v11 }
 0x41e   : > { %v2032_v3 = vmax.f32 %v2030_v12, %v2031_v0 }
 0x41f   : > { %v1697_v4 = vpop.f32.mrf.mxu2 }
 0x420   : > { %v2033_v45 = vrot.slane %v2032_v3, 4  ;;  %v3697_v0 = vmul.f32 0.088388346, %v1697_v4 }
 0x422   : > { %v2034_v35 = vmax.f32 %v2032_v3, %v2033_v45 }
 0x424   : > { %v2035_v2 = vrot.slane %v2034_v35, 2 }
 0x426   : > { %v2036_v52 = vmax.f32 %v2034_v35, %v2035_v2 }
 0x427   : > { %v1700_v10 = vpop.f32.mrf.mxu2 }
 0x428   : > { %v2037_v9 = vrot.slane %v2036_v52, 1  ;;  %v3699_v3 = vmul.f32 0.088388346, %v1700_v10 }
 0x42a   : > { %v3649_v62 = vmax.f32 %v2036_v52, %v2037_v9 }
 0x42c   : > { %v2039_v47 = vsub.f32 %v3577_v54, %v3649_v62  ;;  %v2040_v59 = vsub.f32 %v3584_v46, %v3649_v62  ;;  %v2041_v53 = vsub.f32 %v3591_v51, %v3649_v62  ;;  %v2042_v50 = vsub.f32 %v2005_v43, %v3649_v62 }
 0x42d   : > { %v2043_v18 = vsub.f32 %v3579_v26, %v3649_v62  ;;  %v2044_v55 = vsub.f32 %v3586_v1, %v3649_v62  ;;  %v2045_v25 = vsub.f32 %v3597_v17, %v3649_v62  ;;  %v2046_v26 = vsub.f32 %v2009_v44, %v3649_v62 }
 0x42e   : > { %v2055_v54 = vmul.f32 1.442695, %v2039_v47  ;;  %v2057_v21 = vmul.f32 1.442695, %v2040_v59  ;;  %v2059_v48 = vmul.f32 1.442695, %v2041_v53  ;;  %v2047_v17 = vsub.f32 %v3611_v19, %v3649_v62 }
 0x42f   : > { %v3664_v14 = vpop.f32.mrf.mxu2  ;;  %v2061_v46 = vmul.f32 1.442695, %v2042_v50  ;;  %v2063_v51 = vmul.f32 1.442695, %v2043_v18  ;;  %v2065_v29 = vmul.f32 1.442695, %v2044_v55  ;;  %v2048_v8 = vsub.f32 %v3613_v36, %v3649_v62 }
 0x430   : > { %2620 = vpow2.f32 %v2055_v54  ;;  %v2067_v58 = vmul.f32 1.442695, %v2045_v25  ;;  %v2069_v39 = vmul.f32 1.442695, %v2046_v26  ;;  %v2049_v28 = vsub.f32 %v3635_v23, %v3649_v62 }
 0x431   : > { %2622 = vpow2.f32 %v2057_v21  ;;  %v2071_v19 = vmul.f32 1.442695, %v2047_v17  ;;  %v2050_v7 = vsub.f32 %v3637_v5, %v3649_v62  ;;  %v2073_v36 = vmul.f32 1.442695, %v2048_v8 }
 0x432   : > { %2624 = vpow2.f32 %v2059_v48  ;;  %v2051_v30 = vsub.f32 %v3615_v61, %v3649_v62  ;;  %v2075_v23 = vmul.f32 1.442695, %v2049_v28  ;;  %v2052_v5 = vsub.f32 %v3623_v38, %v3649_v62 }
 0x433   : > { %2626 = vpow2.f32 %v2061_v46  ;;  %v2077_v35 = vmul.f32 1.442695, %v2050_v7  ;;  %v2053_v61 = vsub.f32 %v3639_v63, %v3649_v62  ;;  %v1886_v38 = vmax.f32 %v1882_v20, %v3697_v0 }
 0x434   : > { %2628 = vpow2.f32 %v2063_v51  ;;  %v2079_v9 = vmul.f32 1.442695, %v2051_v30  ;;  %v1887_v47 = vmax.f32 %v1883_v33, %v3699_v3  ;;  %v2054_v63 = vsub.f32 %v3645_v42, %v3649_v62 }
 0x435   : > { %2630 = vpow2.f32 %v2065_v29  ;;  %v2081_v50 = vmul.f32 1.442695, %v2052_v5  ;;  %v2083_v20 = vmul.f32 1.442695, %v2053_v61  ;;  %v3745_v8 = vmul.f32 0.088388346, %v3641_v27 }
 0x436   : > { %v3669_v1 = vpop.eup %2620  ;;  %2632 = vpow2.f32 %v2067_v58  ;;  %v2085_v42 = vmul.f32 1.442695, %v2054_v63  ;;  %v1869_v28 = vmul.f32 0.088388346, %v3603_v56 }
 0x437   : > { %v3666_v40 = vpop.f32.mrf.mxu2  ;;  %v3671_v41 = vpop.eup %2622  ;;  %2634 = vpow2.f32 %v2069_v39 }
 0x438   : > { %v2087_v22 = vadd.f32 %v3671_v41, %v3669_v1  ;;  %v3677_v31 = vpop.eup %2624  ;;  %2636 = vpow2.f32 %v2071_v19  ;;  %v3752_v19 = vmul.f32 0.088388346, %v3664_v14 }
 0x439   : > { %v3682_v15 = vpop.eup %2626  ;;  %2638 = vpow2.f32 %v2073_v36  ;;  %v1885_v36 = vmax.f32 %v1869_v28, %v3745_v8 }
 0x43a   : > { %v2088_v12 = vadd.f32 %v3677_v31, %v2087_v22  ;;  %v3687_v49 = vpop.eup %2628  ;;  %2640 = vpow2.f32 %v2075_v23  ;;  %v1888_v56 = vmax.f32 %v1884_v60, %v3752_v19 }
 0x43b   : > { %v3692_v24 = vpop.eup %2630  ;;  %2642 = vpow2.f32 %v2077_v35 }
 0x43c   : > { %v2089_v43 = vadd.f32 %v3682_v15, %v2088_v12  ;;  %v3701_v45 = vpop.eup %2632  ;;  %2644 = vpow2.f32 %v2079_v9 }
 0x43d   : > { %v3706_v52 = vpop.eup %2634  ;;  %2646 = vpow2.f32 %v2081_v50 }
 0x43e   : > { %v2090_v16 = vadd.f32 %v3687_v49, %v2089_v43  ;;  %v3721_v53 = vpop.eup %2636  ;;  %2648 = vpow2.f32 %v2083_v20  ;;  %v3755_v43 = vmul.f32 0.088388346, %v3666_v40 }
 0x43f   : > { %v1709_v44 = vpop.f32.mrf.mxu2  ;;  %v3728_v25 = vpop.eup %2638  ;;  %2650 = vpow2.f32 %v2085_v42 }
 0x440   : > { %v2091_v11 = vadd.f32 %v3692_v24, %v2090_v16  ;;  %v3710_v4 = vmul.f32 0.088388346, %v1709_v44  ;;  %v3733_v48 = vpop.eup %2640  ;;  %v1889_v14 = vmax.f32 %v1885_v36, %v3755_v43 }
 0x441   : > { %v3736_v51 = vpop.eup %2642 }
 0x442   : > { %v2092_v2 = vadd.f32 %v3701_v45, %v2091_v11  ;;  %v1890_v54 = vmax.f32 %v1886_v38, %v3710_v4  ;;  %v3739_v17 = vpop.eup %2644 }
 0x443   : > { %v3742_v22 = vpop.eup %2646 }
 0x444   : > { %v2093_v10 = vadd.f32 %v3706_v52, %v2092_v2  ;;  %v3748_v12 = vpop.eup %2648 }
 0x445   : > { %v2651_v7 = vpop.eup %2650 }
 0x446   : > { %v2094_v55 = vadd.f32 %v3721_v53, %v2093_v10 }
 0x447   : > { %v1712_v59 = vpop.f32.mrf.mxu2 }
 0x448   : > { %v3725_v18 = vmul.f32 0.088388346, %v1712_v59  ;;  %v2095_v21 = vadd.f32 %v3728_v25, %v2094_v55 }
 0x44a   : > { %v1891_v33 = vmax.f32 %v1887_v47, %v3725_v18  ;;  %v2096_v46 = vadd.f32 %v3733_v48, %v2095_v21 }
 0x44c   : > { %v1894_v62 = vmax.f32 %v1890_v54, %v1891_v33  ;;  %v2097_v26 = vadd.f32 %v3736_v51, %v2096_v46 }
 0x44e   : > { %v2098_v58 = vadd.f32 %v3739_v17, %v2097_v26 }
 0x44f   : > { %v1715_v29 = vpop.f32.mrf.mxu2 }
 0x450   : > { %v2099_v39 = vadd.f32 %v3742_v22, %v2098_v58  ;;  %v3759_v16 = vmul.f32 0.088388346, %v1715_v29 }
 0x452   : > { %v2100_v44 = vadd.f32 %v3748_v12, %v2099_v39  ;;  %v1892_v11 = vmax.f32 %v1888_v56, %v3759_v16 }
 0x454   : > { %v2101_v27 = vadd.f32 %v2651_v7, %v2100_v44 }
 0x456   : > { %v2102_v40 = vrot.slane %v2101_v27, 4 }
 0x457   : > { %v1718_v30 = vpop.f32.mrf.mxu2 }
 0x458   : > { %v3766_v23 = vmul.f32 0.088388346, %v1718_v30  ;;  %v2103_v35 = vadd.f32 %v2102_v40, %v2101_v27 }
 0x45a   : > { %v1893_v5 = vmax.f32 %v1889_v14, %v3766_v23  ;;  %v2104_v61 = vrot.slane %v2103_v35, 2 }
 0x45c   : > { %v1895_v2 = vmax.f32 %v1892_v11, %v1893_v5  ;;  %v2105_v10 = vadd.f32 %v2104_v61, %v2103_v35 }
 0x45e   : > { %v1896_v9 = vmax.f32 %v1894_v62, %v1895_v2  ;;  %v2106_v47 = vrot.slane %v2105_v10, 1 }
 0x460   : > { %v1897_v38 = vrot.slane %v1896_v9, 4  ;;  %v2107_v63 = vadd.f32 %v2106_v47, %v2105_v10 }
 0x462   : > { %v1898_v59 = vmax.f32 %v1896_v9, %v1897_v38  ;;  %2652 = vrcp.f32 %v2107_v63  ;;  %v2119_v44 = vand.u32 2147483648, %v2107_v63  ;;  %v2117_v36 = vand.u32 2147483647, %v2107_v63 }
 0x463   : > { %vm2113_vm10 = vweird.f32 %v2107_v63 }
 0x464   : > { %v1899_v50 = vrot.slane %v1898_v59, 2  ;;  %vm2118_vm12 = vcmp.eq.f32.partialorder %v2117_v36, 8.507059e+37 }
 0x466   : > { %v1900_v60 = vmax.f32 %v1898_v59, %v1899_v50 }
 0x468   : > { %v1901_v55 = vrot.slane %v1900_v60, 1  ;;  %v2653_v54 = vpop.eup %2652 }
 0x469   : > { %v2109_v33 = vmul.f32 %v2653_v54, %v2107_v63  ;;  %vm2114_vm9 = vweird.f32 %v2653_v54 }
 0x46a   : > { %v3770_v20 = vmax.f32 %v1900_v60, %v1901_v55  ;;  %vm2115_vm11 = vmor %vm2113_vm10, %vm2114_vm9 }
 0x46b   : > { %v2110_v58 = vsub.f32 1.0, %v2109_v33 }
 0x46c   : > { %v1903_v21 = vsub.f32 %v3605_v57, %v3770_v20  ;;  %v1904_v42 = vsub.f32 %v3617_v34, %v3770_v20  ;;  %v1905_v62 = vsub.f32 %v3629_v6, %v3770_v20  ;;  %v1906_v46 = vsub.f32 %v1869_v28, %v3770_v20 }
 0x46d   : > { %v1907_v26 = vsub.f32 %v3607_v37, %v3770_v20  ;;  %v1908_v29 = vsub.f32 %v3619_v13, %v3770_v20  ;;  %v1909_v39 = vsub.f32 %v3631_v32, %v3770_v20  ;;  %v2111_v57 = vmul.f32 %v2653_v54, %v2110_v58 }
 0x46e   : > { %v1919_v34 = vmul.f32 1.442695, %v1903_v21  ;;  %v1921_v27 = vmul.f32 1.442695, %v1904_v42  ;;  %v1923_v6 = vmul.f32 1.442695, %v1905_v62  ;;  %v1910_v32 = vsub.f32 %v3745_v8, %v3770_v20 }
 0x46f   : > { %v2112_v30 = vadd.f32 %v2653_v54, %v2111_v57  ;;  %v2120_v28 = vor.u32 1.1754944e-38, %v2119_v44  ;;  %v1925_v13 = vmul.f32 1.442695, %v1906_v46  ;;  %v1911_v14 = vsub.f32 %v3697_v0, %v3770_v20 }
 0x470   : > { %2654 = vpow2.f32 %v1919_v34  ;;  %v1927_v40 = vmul.f32 1.442695, %v1907_v26  ;;  %v1929_v11 = vmul.f32 1.442695, %v1908_v29  ;;  %v1931_v10 = vmul.f32 1.442695, %v1909_v39 }
 0x471   : > { %v2116_v37 = vsel %vm2115_vm11, %v2653_v54, %v2112_v30  ;;  %2656 = vpow2.f32 %v1921_v27  ;;  %v1913_v63 = vsub.f32 %v3752_v19, %v3770_v20  ;;  %v1915_v19 = vsub.f32 %v3710_v4, %v3770_v20 }
 0x472   : > { %v3785_v56 = vsel %vm2118_vm12, %v2120_v28, %v2116_v37  ;;  %2658 = vpow2.f32 %v1923_v6  ;;  %v1917_v4 = vsub.f32 %v3759_v16, %v3770_v20 }
 0x473   : > { %v2137_v5 = vmul.f32 %v2651_v7, %v3785_v56  ;;  %v2136_v35 = vmul.f32 %v3748_v12, %v3785_v56  ;;  %v2135_v2 = vmul.f32 %v3742_v22, %v3785_v56  ;;  %2660 = vpow2.f32 %v1925_v13 }
 0x474   : > { %v2134_v61 = vmul.f32 %v3739_v17, %v3785_v56  ;;  %v2133_v8 = vmul.f32 %v3736_v51, %v3785_v56  ;;  %v2132_v0 = vmul.f32 %v3733_v48, %v3785_v56  ;;  %v2131_v12 = vmul.f32 %v3728_v25, %v3785_v56 }
 0x475   : > { %2138 = vmatpush.msrb.mxu0 %v2137_v5  ;;  %v2130_v22 = vmul.f32 %v3721_v53, %v3785_v56  ;;  %v2129_v7 = vmul.f32 %v3706_v52, %v3785_v56  ;;  %2662 = vpow2.f32 %v1927_v40  ;;  %v2128_v51 = vmul.f32 %v3701_v45, %v3785_v56 }
 0x476   : > { %v3802_v9 = vpop.eup %2654  ;;  %v2127_v48 = vmul.f32 %v3692_v24, %v3785_v56  ;;  %v2126_v38 = vmul.f32 %v3687_v49, %v3785_v56  ;;  %v2125_v53 = vmul.f32 %v3682_v15, %v3785_v56  ;;  %v3824_v52 = vmul.f32 %v3677_v31, %v3785_v56 }
 0x477   : > { %v3810_v17 = vpop.eup %2656  ;;  %2139 = vmatpush.msrb.mxu0 %v2136_v35  ;;  %v1912_v45 = vsub.f32 %v3699_v3, %v3770_v20  ;;  %2664 = vpow2.f32 %v1929_v11  ;;  %v1933_v24 = vmul.f32 1.442695, %v1910_v32  ;;  %v1935_v15 = vmul.f32 1.442695, %v1911_v14 }
 0x478   : > { %v1951_v25 = vadd.f32 %v3810_v17, %v3802_v9  ;;  %v3826_v47 = vpop.eup %2658  ;;  %2666 = vpow2.f32 %v1931_v10  ;;  %v1914_v3 = vsub.f32 %v3755_v43, %v3770_v20  ;;  %v1939_v33 = vmul.f32 1.442695, %v1913_v63 }
 0x479   : > { %2140 = vmatpush.msrb.mxu0 %v2135_v2  ;;  %v3831_v59 = vpop.eup %2660  ;;  %2668 = vpow2.f32 %v1933_v24  ;;  %v1937_v60 = vmul.f32 1.442695, %v1912_v45  ;;  %v1916_v43 = vsub.f32 %v3725_v18, %v3770_v20  ;;  %v1943_v29 = vmul.f32 1.442695, %v1915_v19 }
 0x47a   : > { %v1952_v49 = vadd.f32 %v3826_v47, %v1951_v25  ;;  %2670 = vpow2.f32 %v1935_v15  ;;  %v1941_v62 = vmul.f32 1.442695, %v1914_v3  ;;  %v1918_v18 = vsub.f32 %v3766_v23, %v3770_v20 }
 0x47b   : > { %2141 = vmatpush.msrb.mxu0 %v2134_v61  ;;  %v3836_v50 = vpop.eup %2662  ;;  %2672 = vpow2.f32 %v1937_v60  ;;  %v1945_v44 = vmul.f32 1.442695, %v1916_v43  ;;  %v1947_v34 = vmul.f32 1.442695, %v1917_v4  ;;  %v2123_v14 = vmul.f32 %v3671_v41, %v3785_v56  ;;  %v2692_v61 = vld [vmem:[%s3095_s23 + $0x8] sm:$0xff] }
 0x47c   : > { %v1953_v31 = vadd.f32 %v3831_v59, %v1952_v49  ;;  %2674 = vpow2.f32 %v1939_v33  ;;  %v1949_v30 = vmul.f32 1.442695, %v1918_v18  ;;  %v2122_v5 = vmul.f32 %v3669_v1, %v3785_v56 }
 0x47d   : > { %2142 = vmatpush.msrb.mxu0 %v2133_v8  ;;  %v3841_v54 = vpop.eup %2664  ;;  %2676 = vpow2.f32 %v1941_v62 }
 0x47e   : > { %v1954_v55 = vadd.f32 %v3836_v50, %v1953_v31  ;;  %v3846_v42 = vpop.eup %2666  ;;  %2678 = vpow2.f32 %v1943_v29 }
 0x47f   : > { %2143 = vmatpush.msrb.mxu0 %v2132_v0  ;;  %v3851_v26 = vpop.eup %2668  ;;  %2680 = vpow2.f32 %v1945_v44 }
 0x480   : > { %v1955_v21 = vadd.f32 %v3841_v54, %v1954_v55  ;;  %v3856_v39 = vpop.eup %2670  ;;  %2682 = vpow2.f32 %v1947_v34 }
 0x481   : > { %2144 = vmatpush.msrb.mxu0 %v2131_v12  ;;  %v2673_v36 = vpop.eup %2672  ;;  %2684 = vpow2.f32 %v1949_v30 }
 0x482   : > { %v1956_v46 = vadd.f32 %v3846_v42, %v1955_v21  ;;  %v2675_v16 = vpop.eup %2674 }
 0x483   : > { %2145 = vmatpush.msrb.mxu0 %v2130_v22  ;;  %v2677_v28 = vpop.eup %2676  ;;  %v2693_v22 = vld [vmem:[%s3095_s23 + $0x18] sm:$0xff] }
 0x484   : > { %v1957_v58 = vadd.f32 %v3851_v26, %v1956_v46  ;;  %v2679_v23 = vpop.eup %2678 }
 0x485   : > { %2146 = vmatpush.msrb.mxu0 %v2129_v7  ;;  %v2681_v13 = vpop.eup %2680 }
 0x486   : > { %v1958_v57 = vadd.f32 %v3856_v39, %v1957_v58  ;;  %v2683_v40 = vpop.eup %2682 }
 0x487   : > { %2147 = vmatpush.msrb.mxu0 %v2128_v51  ;;  %v2685_v35 = vpop.eup %2684 }
 0x488   : > { %v1959_v27 = vadd.f32 %v2673_v36, %v1958_v57 }
 0x489   : > { %2148 = vmatpush.msrb.mxu0 %v2127_v48 }
 0x48a   : > { %v1960_v6 = vadd.f32 %v2675_v16, %v1959_v27 }
 0x48b   : > { %2149 = vmatpush.msrb.mxu0 %v2126_v38 }
 0x48c   : > { %v1961_v37 = vadd.f32 %v2677_v28, %v1960_v6 }
 0x48d   : > { %2150 = vmatpush.msrb.mxu0 %v2125_v53 }
 0x48e   : > { %v1962_v20 = vadd.f32 %v2679_v23, %v1961_v37 }
 0x48f   : > { %2151 = vmatpush.msrb.mxu0 %v3824_v52 }
 0x490   : > { %v1963_v32 = vadd.f32 %v2681_v13, %v1962_v20 }
 0x491   : > { %2152 = vmatpush.msrb.mxu0 %v2123_v14 }
 0x492   : > { %v1964_v11 = vadd.f32 %v2683_v40, %v1963_v32 }
 0x493   : > { %2153 = vmatpush.msrb.mxu0 %v2122_v5 }
 0x494   : > { %v1965_v2 = vadd.f32 %v2685_v35, %v1964_v11  ;;  %2154 = vmatmul.f32.vlgmr.msrb.gmra.mxu0 %v2692_v61 }
 0x496   : > { %v1966_v8 = vrot.slane %v1965_v2, 4 }
 0x498   : > { %v1967_v0 = vadd.f32 %v1966_v8, %v1965_v2 }
 0x49a   : > { %v1968_v10 = vrot.slane %v1967_v0, 2 }
 0x49c   : > { %v1969_v12 = vadd.f32 %v1968_v10, %v1967_v0  ;;  %2157 = vmatmul.f32.gmra.mxu0 %v2693_v22 }
 0x49e   : > { %v1970_v7 = vrot.slane %v1969_v12, 1 }
 0x4a0   : > { %v1971_v51 = vadd.f32 %v1970_v7, %v1969_v12 }
 0x4a2   : > { %2686 = vrcp.f32 %v1971_v51  ;;  %v1983_v25 = vand.u32 2147483648, %v1971_v51  ;;  %v1981_v1 = vand.u32 2147483647, %v1971_v51  ;;  %vm1977_vm14 = vweird.f32 %v1971_v51 }
 0x4a4   : > { %v1984_v52 = vor.u32 1.1754944e-38, %v1983_v25  ;;  %vm1982_vm0 = vcmp.eq.f32.partialorder %v1981_v1, 8.507059e+37 }
 0x4a8   : > { %v2687_v41 = vpop.eup %2686 }
 0x4a9   : > { %v1973_v48 = vmul.f32 %v2687_v41, %v1971_v51  ;;  %vm1978_vm13 = vweird.f32 %v2687_v41 }
 0x4aa   : > { %vm1979_vm15 = vmor %vm1977_vm14, %vm1978_vm13 }
 0x4ab   : > { %v1974_v38 = vsub.f32 1.0, %v1973_v48 }
 0x4ad   : > { %v1975_v53 = vmul.f32 %v2687_v41, %v1974_v38 }
 0x4af   : > { %v1976_v56 = vadd.f32 %v2687_v41, %v1975_v53 }
 0x4b1   : > { %v1980_v45 = vsel %vm1979_vm15, %v2687_v41, %v1976_v56 }
 0x4b2   : > { %v1985_v24 = vsel %vm1982_vm0, %v1984_v52, %v1980_v45 }
 0x4b3   : > { %v2001_v49 = vmul.f32 %v2685_v35, %v1985_v24  ;;  %v2000_v63 = vmul.f32 %v2683_v40, %v1985_v24  ;;  %v1999_v15 = vmul.f32 %v2681_v13, %v1985_v24  ;;  %v1998_v31 = vmul.f32 %v2679_v23, %v1985_v24 }
 0x4b4   : > { %v1997_v3 = vmul.f32 %v2677_v28, %v1985_v24  ;;  %v1996_v60 = vmul.f32 %v2675_v16, %v1985_v24  ;;  %v1995_v55 = vmul.f32 %v2673_v36, %v1985_v24  ;;  %v1994_v19 = vmul.f32 %v3856_v39, %v1985_v24 }
 0x4b5   : > { %2161 = vmatpush.msrb.mxu1 %v2001_v49  ;;  %v1993_v33 = vmul.f32 %v3851_v26, %v1985_v24  ;;  %v1992_v21 = vmul.f32 %v3846_v42, %v1985_v24  ;;  %v1991_v43 = vmul.f32 %v3841_v54, %v1985_v24  ;;  %v1990_v62 = vmul.f32 %v3836_v50, %v1985_v24 }
 0x4b6   : > { %v1989_v46 = vmul.f32 %v3831_v59, %v1985_v24  ;;  %v1988_v4 = vmul.f32 %v3826_v47, %v1985_v24  ;;  %v1987_v29 = vmul.f32 %v3810_v17, %v1985_v24  ;;  %v1986_v58 = vmul.f32 %v3802_v9, %v1985_v24  ;;  %v2694_v9 = vld [vmem:[%s3103_s11 + $0x8] sm:$0xff]  ;;  %v2695_v17 = vld [vmem:[%s3103_s11 + $0x18] sm:$0xff] }
 0x4b7   : > { %2162 = vmatpush.msrb.mxu1 %v2000_v63 }
 0x4b9   : > { %2163 = vmatpush.msrb.mxu1 %v1999_v15 }
 0x4bb   : > { %2164 = vmatpush.msrb.mxu1 %v1998_v31 }
 0x4bd   : > { %2165 = vmatpush.msrb.mxu1 %v1997_v3 }
 0x4bf   : > { %2166 = vmatpush.msrb.mxu1 %v1996_v60 }
 0x4c1   : > { %2167 = vmatpush.msrb.mxu1 %v1995_v55 }
 0x4c3   : > { %2168 = vmatpush.msrb.mxu1 %v1994_v19 }
 0x4c5   : > { %2169 = vmatpush.msrb.mxu1 %v1993_v33 }
 0x4c7   : > { %2170 = vmatpush.msrb.mxu1 %v1992_v21 }
 0x4c9   : > { %2171 = vmatpush.msrb.mxu1 %v1991_v43 }
 0x4cb   : > { %2172 = vmatpush.msrb.mxu1 %v1990_v62 }
 0x4cd   : > { %2173 = vmatpush.msrb.mxu1 %v1989_v46 }
 0x4cf   : > { %2174 = vmatpush.msrb.mxu1 %v1988_v4 }
 0x4d1   : > { %2175 = vmatpush.msrb.mxu1 %v1987_v29 }
 0x4d3   : > { %2176 = vmatpush.msrb.mxu1 %v1986_v58 }
 0x4d4   : > { %2177 = vmatmul.f32.vlgmr.msrb.gmra.mxu1 %v2694_v9 }
 0x4dc   : > { %2180 = vmatmul.f32.gmra.mxu1 %v2695_v17 }
 0x511   : > { %v2155_v47 = vpop.f32.mrf.mxu0 }
 0x512   : > { %2184 = vst [vmem:[%s3594_s26 + $0x8] sm:$0xff] %v2155_v47 }
 0x519   : > { %v2158_v59 = vpop.f32.mrf.mxu0 }
 0x51a   : > { %2185 = vst [vmem:[%s3594_s26 + $0x18] sm:$0xff] %v2158_v59 }
 0x51b   : > { %2843 = shalt.err (!%p2840_p9)
}
 0x51c   : > { %s2934_s23 = smov 256   ;;  %s2935_s29 = smov 16  }
 0x51d   : > { %2480 = dma.vmem_to_hbm [thread:$0]  (%p3032_p3), %s2207_s6, 512, %s2209_s8, %s2189_s9, %s2934_s23, %s2934_s23, %s2935_s29  }
 0x51e   : > { %s2222_s26 = scalar_lea.hbm %s3937_s5, %s2466_s30  ;;  %s2223_s7 = sshll.u32 %s3566_s24, 4  ;;  %s2224_s7 = int_to_ptr.vmem [resolvable:$true] %s2223_s7 }
 0x51f   : > { %s2225_s13 = sshll.u32 %s2222_s26, 4  ;;  %s2194_s15 = scalar_lea.sflag [#allocation12], %s3088_s3  ;;  %s2226_s13 = int_to_ptr.hbm [resolvable:$true] %s2225_s13 }
 0x520   : > { %s2858_s10 = sshra.s32 %s2226_s13, 4  ;;  %s2864_s9 = scalar_lea.hbm %s3937_s5, 64  ;;  %s2859_s10 = int_to_ptr.hbm [resolvable:$true] %s2858_s10 }
 0x521   : > { %s2860_s12 = scalar_lea.hbm %s2859_s10, 32  ;;  %p2865_p5 = scmp.lt.s32.totalorder %s2859_s10, %s3937_s5 }
 0x522   : > { %p2861_p12 = scmp.ne.s32.totalorder %s2859_s10, %s2860_s12  ;;  %p2866_p7 = scmp.lt.s32.totalorder %s2864_s9, %s2860_s12 }
 0x524   : > { %p2862_p13 = pnand %p2861_p12, %p3032_p3  ;;  %p2867_p1 = por %p2866_p7, %p2865_p5 }
 0x526   : > { %p2863_p0 = pneg %p2862_p13 }
 0x528   : > { %p2868_p4 = pnand %p2867_p1, %p2863_p0 }
 0x551   : > { %v2178_v50 = vpop.f32.mrf.mxu1 }
 0x552   : > { %2186 = vst [vmem:[%s3566_s24 + $0x8] sm:$0xff] %v2178_v50 }
 0x559   : > { %v2181_v54 = vpop.f32.mrf.mxu1 }
 0x55a   : > { %2187 = vst [vmem:[%s3566_s24 + $0x18] sm:$0xff] %v2181_v54 }
 0x55b   : > { %2871 = shalt.err (!%p2868_p4)
}
 0x55c   : > { %2481 = dma.vmem_to_hbm [thread:$0]  (%p3032_p3), %s2224_s7, 512, %s2226_s13, %s2194_s15, %s2934_s23, %s2934_s23, %s2935_s29  }
 0x55d PF: > { %s2240_s3 = sand.u32 1, %s2914_s18   ;;  %p3952_p8 = scmp.ge.s32.totalorder %s2926_s21, 2 }
 0x55e   : > { %s2241_s24 = scalar_lea.sflag [#allocation4], %s2240_s3 }
 0x55f   : > { %p2499_p2 = pnand %p3952_p8, %p3001_p6 }
 0x561   : > { %p2500_p10 = pneg %p2499_p2 }
 0x563   : > { %2905 = dma.done.wait (%p2500_p10), %s2241_s24, 512  }
 0x564   : > { %2907 = vsyncadd (%p2500_p10), %s2241_s24, 4294966784  ;;  %s2251_s22 = scalar_lea.sflag [#allocation12], %s2240_s3 }
 0x565   : > { %2909 = dma.done.wait (%p2500_p10), %s2251_s22, 512  }
 0x566   : > { %2911 = vsyncadd (%p2500_p10), %s2251_s22, 4294966784  ;;  %s3953_s17 = sld [smem:[#allocation19_spill]]  ;;  %p26_p3 = scmp.ge.s32.totalorder %s3022_s14, 4  }
 0x567   : > { %s3954_s18 = smov %s2918_s19  ;;  %s3955_s19 = smov %s2922_s20 }
 0x568   : > { %s3957_s21 = smov %s3022_s14  ;;  %28 = sbr.rel (!%p26_p3) target bundleno = 14 (0xe), region = 119 }
 0x56c   : > { %s3956_s20 = smov %s3953_s17 }
 0x56d   :  { %2257 = vsyncpa [#allocation3], 1 }
 0x56e   :  { %2259 = vsyncpa [#allocation3 + $0x1], 1 }
 0x56f   :  { %2260 = vsyncpa [#allocation6], 1 }
 0x570   :  { %2262 = vsyncpa [#allocation6 + $0x1], 1 }
 0x571   :  { %2263 = vsyncpa [#allocation9], 1 }
 0x572   :  { %2264 = vsyncpa [#allocation4], 1 }
 0x573   :  { %2266 = vsyncpa [#allocation4 + $0x1], 1 }
 0x574   :  { %2267 = vsyncpa [#allocation12], 1 }
 0x575   :  { %2269 = vsyncpa [#allocation12 + $0x1], 1 }

// kernel: tpu_custom_call.1
= control target key start
LH: loop header
LB: loop body
LE: loop exit
PB: predicated region body
PF: predicated region fallthrough
CT: control target
= control target key end

     0   :  { %s3932_s0 = inlined_call_operand.hbm [shape: f32[2,16,256], index: 0, kind: input, shape index: {}]   ;;  %s3933_s1 = inlined_call_operand.hbm [shape: f32[2,16,256], index: 1, kind: input, shape index: {}]   ;;  %s3934_s2 = inlined_call_operand.hbm [shape: f32[256,512], index: 2, kind: input, shape index: {}]   ;;  %s3935_s3 = inlined_call_operand.hbm [shape: f32[256,512], index: 3, kind: input, shape index: {}]   ;;  %s3936_s4 = inlined_call_operand.hbm [shape: f32[2,16,256], index: 4, kind: output, shape index: {0}]   ;;  %s3937_s5 = inlined_call_operand.hbm [shape: f32[2,16,256], index: 5, kind: output, shape index: {1}]  }
   0x1   :  { %3939 = sst [smem:[#allocation20_spill]] %s3932_s0 }
   0x2   :  { %3940 = sst [smem:[#allocation21_spill]] %s3934_s2 }
   0x3   :  { %3941 = sst [smem:[#allocation22_spill]] %s3935_s3 }
   0x4   :  { %11 = vsyncpa [#allocation3], 0 }
   0x5   :  { %13 = vsyncpa [#allocation3 + $0x1], 0 }
   0x6   :  { %14 = vsyncpa [#allocation6], 0 }
   0x7   :  { %16 = vsyncpa [#allocation6 + $0x1], 0 }
   0x8   :  { %17 = vsyncpa [#allocation9], 0 }
   0x9   :  { %18 = vsyncpa [#allocation4], 0 }
   0xa   :  { %20 = vsyncpa [#allocation4 + $0x1], 0 }
   0xb   :  { %21 = vsyncpa [#allocation12], 0 }
   0xc   :  { %23 = vsyncpa [#allocation12 + $0x1], 0  ;;  %s2966_s18 = smov 0   ;;  %s2968_s19 = smov 0  }
   0xd   :  { %s2970_s20 = smov 0   ;;  %s2972_s21 = smov 0  }
   0xe LB: > { %s2987_s22 = sadd.s32 4294967295, %s2926_s21   ;;  %s2374_s23 = sadd.s32 4294967294, %s2926_s21   ;;  %s2926_s21 = sphi %s2972_s21, %s3957_s21   ;;  %s2922_s20 = sphi %s2970_s20, %s3956_s20   ;;  %s2918_s19 = sphi %s2968_s19, %s3955_s19   ;;  %s2914_s18 = sphi %s2966_s18, %s3954_s18  }
   0xf   : > { %p49_p0 = scmp.ne.s32.totalorder %s2918_s19, %s2914_s18  ;;  %p50_p1 = scmp.eq.s32.totalorder %s2987_s22, 0 }
  0x10   : > { %p141_p2 = scmp.eq.s32.totalorder %s2987_s22, 1  ;;  %p147_p3 = scmp.eq.s32.totalorder %s2374_s23, 1 }
  0x11   : > { %p2996_p4 = por %p50_p1, %p49_p0  ;;  %p2375_p5 = scmp.ge.s32.totalorder %s2926_s21, 1 }
  0x12   : > { %p3001_p6 = por %p147_p3, %p49_p0  ;;  %p180_p7 = scmp.lt.s32.totalorder %s2926_s21, 3 }
  0x13   : > { %s3944_s2 = sld [smem:[#allocation21_spill]]  ;;  %s2928_s30 = smov [#allocation7]  }
  0x14   : > { %p3009_p8 = pnand %p2375_p5, %p180_p7  ;;  %s193_s6 = sshll.u32 %s2928_s30, 4  ;;  %s194_s6 = int_to_ptr.vmem [resolvable:$true] %s193_s6 }
  0x15   : > { %s3946_s3 = sld [smem:[#allocation22_spill]]  ;;  %s2929_s10 = smov 512  }
  0x16   : > { %p2484_p9 = pneg %p3009_p8  ;;  %s2930_s11 = smov 32  }
  0x17   : > { %s2931_s12 = smov [#allocation8]   ;;  %s3022_s14 = sadd.s32 1, %s2926_s21  }
  0x18   : > { %p2485_p10 = pnand %p2484_p9, %p50_p1  ;;  %s207_s13 = sshll.u32 %s2931_s12, 4  ;;  %s208_s13 = int_to_ptr.vmem [resolvable:$true] %s207_s13 }
  0x19   : > { %s191_s28 = sshll.u32 %s3944_s2, 4  ;;  %s36_s15 = sadd.s32 1, %s2922_s20  ;;  %s192_s28 = int_to_ptr.hbm [resolvable:$true] %s191_s28 }
  0x1a   : > { %2487 = dma.hbm_to_vmem [thread:$0]  (!%p2485_p10), %s192_s28, 16384, %s194_s6, [#allocation6], %s2929_s10, %s2929_s10, %s2930_s11  }
  0x1b   : > { %s205_s9 = sshll.u32 %s3946_s3, 4  ;;  %s33_s16 = ssub.s32 %s2926_s21, %s3022_s14  ;;  %s206_s9 = int_to_ptr.hbm [resolvable:$true] %s205_s9 }
  0x1c   : > { %2490 = dma.hbm_to_vmem [thread:$0]  (!%p2485_p10), %s206_s9, 16384, %s208_s13, [#allocation9], %s2929_s10, %s2929_s10, %s2930_s11  }
  0x1d   : > { %p43_p12 = scmp.ne.s32.totalorder %s2922_s20, %s2918_s19  ;;  %p34_p13 = scmp.eq.s32.totalorder %s33_s16, 0 }
  0x1e   : > { %p44_p0 = scmp.eq.s32.totalorder %s2926_s21, 0  ;;  %p2507_p5 = scmp.lt.s32.totalorder %s2926_s21, 2 }
  0x1f   : > { %p3032_p3 = por %p141_p2, %p43_p12  ;;  %s221_s26 = sand.u32 1, %s2922_s20  }
  0x20   : > { %s3038_s23 = scalar_select %p34_p13, %s2922_s20, %s36_s15  }
  0x21   : > { %p45_p7 = por %p44_p0, %p43_p12  ;;  %s3041_s27 = sshll.u32 %s221_s26, 5 }
  0x22   : > { %3948 = sst [smem:[#allocation19_spill]] %s3038_s23  ;;  %s3938_s28 = sshll.u32 %s2926_s21, 5 }
  0x23   : > { %s3949_s0 = sld [smem:[#allocation20_spill]]  ;;  %s225_s8 = scalar_lea.vmem [#allocation2], %s3041_s27 }
  0x24   : > { %s233_s9 = sshll.u32 %s225_s8, 4  ;;  %p3050_p2 = pnand %p2507_p5, %p45_p7  ;;  %s234_s9 = int_to_ptr.vmem [resolvable:$true] %s233_s9 }
  0x25   : > { %s222_s12 = scalar_lea.sflag [#allocation3], %s221_s26 }
  0x26   : > { %p2760_p10 = pneg %p3050_p2 }
  0x29   : > { %s230_s7 = scalar_lea.hbm %s3949_s0, %s3938_s28  ;;  %s2763_s6 = scalar_lea.hbm %s3949_s0, 64 }
  0x2a   : > { %s231_s10 = sshll.u32 %s230_s7, 4  ;;  %s232_s10 = int_to_ptr.hbm [resolvable:$true] %s231_s10 }
  0x2b   : > { %s2756_s13 = sshra.s32 %s232_s10, 4  ;;  %s2757_s13 = int_to_ptr.hbm [resolvable:$true] %s2756_s13 }
  0x2c   : > { %s2758_s15 = scalar_lea.hbm %s2757_s13, 32  ;;  %p2764_p0 = scmp.lt.s32.totalorder %s2757_s13, %s3949_s0 }
  0x2d   : > { %p2759_p9 = scmp.ne.s32.totalorder %s2757_s13, %s2758_s15  ;;  %p2765_p5 = scmp.lt.s32.totalorder %s2763_s6, %s2758_s15 }
  0x2f   : > { %p2761_p12 = pnand %p2760_p10, %p2759_p9  ;;  %p2766_p7 = por %p2765_p5, %p2764_p0 }
  0x31   : > { %p2762_p13 = pneg %p2761_p12 }
  0x33   : > { %p2767_p11 = pnand %p2766_p7, %p2762_p13 }
  0x35   : > { %2770 = shalt.err (!%p2767_p11)
}
  0x36   : > { %s2932_s26 = smov 256   ;;  %s2933_s28 = smov 16  }
  0x37   : > { %2494 = dma.hbm_to_vmem [thread:$0]  (!%p3050_p2), %s232_s10, 512, %s234_s9, %s222_s12, %s2932_s26, %s2932_s26, %s2933_s28  }
  0x38   : > { %s3951_s2 = sshll.u32 %s2926_s21, 5  ;;  %s247_s7 = scalar_lea.vmem [#allocation5], %s3041_s27 }
  0x39   : > { %s252_s3 = scalar_lea.hbm %s3933_s1, %s3951_s2  ;;  %s255_s13 = sshll.u32 %s247_s7, 4  ;;  %s256_s13 = int_to_ptr.vmem [resolvable:$true] %s255_s13 }
  0x3a   : > { %s253_s15 = sshll.u32 %s252_s3, 4  ;;  %s243_s6 = sand.u32 1, %s2926_s21   ;;  %s254_s15 = int_to_ptr.hbm [resolvable:$true] %s253_s15 }
  0x3b   : > { %s244_s8 = scalar_lea.sflag [#allocation6], %s243_s6  ;;  %s2786_s0 = sshra.s32 %s254_s15, 4  ;;  %s2787_s0 = int_to_ptr.hbm [resolvable:$true] %s2786_s0 }
  0x3c   : > { %s2788_s23 = scalar_lea.hbm %s2787_s0, 32  ;;  %s2793_s12 = scalar_lea.hbm %s3933_s1, 64 }
  0x3d   : > { %p2789_p11 = scmp.ne.s32.totalorder %s2787_s0, %s2788_s23  ;;  %p2794_p13 = scmp.lt.s32.totalorder %s2787_s0, %s3933_s1 }
  0x3e   : > { %p2795_p0 = scmp.lt.s32.totalorder %s2793_s12, %s2788_s23 }
  0x3f   : > { %p2791_p9 = pnand %p2789_p11, %p2760_p10 }
  0x40   : > { %p2796_p5 = por %p2795_p0, %p2794_p13 }
  0x41   : > { %p2792_p12 = pneg %p2791_p9 }
  0x43   : > { %p2797_p7 = pnand %p2796_p5, %p2792_p12 }
  0x45   : > { %2800 = shalt.err (!%p2797_p7)
}
  0x46   : > { %2497 = dma.hbm_to_vmem [thread:$0]  (!%p3050_p2), %s254_s15, 512, %s256_s13, %s244_s8, %s2932_s26, %s2932_s26, %s2933_s28  }
  0x47   : > { %267 = sbr.rel (%p3009_p8) target bundleno = 1373 (0x55d), region = 36  ;;  %s3088_s3 = sand.u32 (!%p3009_p8), 1, %s2918_s19  }
  0x48   : > { %s3091_s16 = sshll.u32 (!%p3009_p8), %s3088_s3, 5  ;;  %s270_s0 = scalar_lea.sflag (!%p3009_p8), [#allocation3], %s3088_s3 }
  0x49   : > { %s3095_s23 = scalar_lea.vmem (!%p3009_p8), [#allocation2], %s3091_s16 }
  0x4c   : > { %2889 = dma.done.wait (%p2996_p4), %s270_s0, 512  }
  0x4d   : > { %2891 = vsyncadd (%p2996_p4), %s270_s0, 4294966784  ;;  %s279_s29 = sand.u32 1, %s2987_s22   ;;  %s3103_s11 = scalar_lea.vmem [#allocation5], %s3091_s16 }
  0x4e   : > { %s280_s28 = scalar_lea.sflag [#allocation6], %s279_s29 }
  0x4f   : > { %2893 = dma.done.wait (%p2996_p4), %s280_s28, 512  }
  0x50   : > { %2895 = vsyncadd (%p2996_p4), %s280_s28, 4294966784 }
  0x51   : > { %2897 = dma.done.wait (%p50_p1), [#allocation6], 16384  }
  0x52   : > { %2899 = vsyncadd (%p50_p1), [#allocation6], 4294950912 }
  0x53   : > { %2901 = dma.done.wait (%p50_p1), [#allocation9], 16384  }
  0x54   : > { %2903 = vsyncadd (%p50_p1), [#allocation9], 4294950912  ;;  %v399_v0 = vld [vmem:[#allocation7 + $0x1e0] sm:$0xff]  ;;  %v3121_v33 = vld [vmem:[%s3095_s23 + $0x8] sm:$0xff]  ;;  %vm995_vm0 = vcmask 130048   ;;  %s3566_s24 = scalar_lea.vmem [#allocation11], %s3091_s16 }
  0x55   : > { %v463_v1 = vld [vmem:[#allocation7 + $0x3e0] sm:$0xff]  ;;  %467 = vmatpush.msra.mxu0 %v399_v0  ;;  %v401_v34 = vld [vmem:[#allocation7 + $0x1f0] sm:$0xff]  ;;  %v3129_v43 = vld [vmem:[%s3095_s23 + $0x18] sm:$0xff]  ;;  %s3594_s26 = scalar_lea.vmem [#allocation10], %s3091_s16  ;;  %s2466_s30 = sshll.u32 %s2987_s22, 5 }
  0x56   : > { %v395_v2 = vld [vmem:[#allocation7 + $0x1c0] sm:$0xff]  ;;  %490 = vmatpush.msra.mxu1 %v463_v1  ;;  %v465_v35 = vld [vmem:[#allocation7 + $0x3f0] sm:$0xff]  ;;  %s2205_s15 = scalar_lea.hbm %s3936_s4, %s2466_s30  ;;  %s2206_s6 = sshll.u32 %s3594_s26, 4  ;;  %s2207_s6 = int_to_ptr.vmem [resolvable:$true] %s2206_s6 }
  0x57   : > { %v459_v3 = vld [vmem:[#allocation7 + $0x3c0] sm:$0xff]  ;;  %468 = vmatpush.msra.mxu0 %v395_v2  ;;  %v397_v36 = vld [vmem:[#allocation7 + $0x1d0] sm:$0xff]  ;;  %s2208_s8 = sshll.u32 %s2205_s15, 4  ;;  %s2189_s9 = scalar_lea.sflag [#allocation4], %s3088_s3  ;;  %s2209_s8 = int_to_ptr.hbm [resolvable:$true] %s2208_s8 }
  0x58   : > { %v391_v4 = vld [vmem:[#allocation7 + $0x1a0] sm:$0xff]  ;;  %491 = vmatpush.msra.mxu1 %v459_v3  ;;  %v461_v37 = vld [vmem:[#allocation7 + $0x3d0] sm:$0xff]  ;;  %s2830_s10 = sshra.s32 %s2209_s8, 4  ;;  %s2836_s27 = scalar_lea.hbm %s3936_s4, 64  ;;  %s2831_s10 = int_to_ptr.hbm [resolvable:$true] %s2830_s10 }
  0x59   : > { %v455_v5 = vld [vmem:[#allocation7 + $0x3a0] sm:$0xff]  ;;  %469 = vmatpush.msra.mxu0 %v391_v4  ;;  %v393_v38 = vld [vmem:[#allocation7 + $0x1b0] sm:$0xff]  ;;  %s2832_s12 = scalar_lea.hbm %s2831_s10, 32  ;;  %p2837_p2 = scmp.lt.s32.totalorder %s2831_s10, %s3936_s4 }
  0x5a   : > { %v387_v6 = vld [vmem:[#allocation7 + $0x180] sm:$0xff]  ;;  %492 = vmatpush.msra.mxu1 %v455_v5  ;;  %v457_v39 = vld [vmem:[#allocation7 + $0x3b0] sm:$0xff]  ;;  %p2833_p1 = scmp.ne.s32.totalorder %s2831_s10, %s2832_s12  ;;  %p2838_p10 = scmp.lt.s32.totalorder %s2836_s27, %s2832_s12 }
  0x5b   : > { %v451_v7 = vld [vmem:[#allocation7 + $0x380] sm:$0xff]  ;;  %470 = vmatpush.msra.mxu0 %v387_v6  ;;  %v389_v40 = vld [vmem:[#allocation7 + $0x190] sm:$0xff] }
  0x5c   : > { %v383_v8 = vld [vmem:[#allocation7 + $0x160] sm:$0xff]  ;;  %493 = vmatpush.msra.mxu1 %v451_v7  ;;  %v453_v41 = vld [vmem:[#allocation7 + $0x390] sm:$0xff]  ;;  %p2834_p4 = pnand %p2833_p1, %p3032_p3  ;;  %p2839_p11 = por %p2838_p10, %p2837_p2 }
  0x5d   : > { %v447_v9 = vld [vmem:[#allocation7 + $0x360] sm:$0xff]  ;;  %471 = vmatpush.msra.mxu0 %v383_v8  ;;  %v3126_v42 = vld [vmem:[%s3095_s23 + $0x10] sm:$0xff] }
  0x5e   : > { %v379_v10 = vld [vmem:[#allocation7 + $0x140] sm:$0xff]  ;;  %494 = vmatpush.msra.mxu1 %v447_v9  ;;  %v385_v44 = vld [vmem:[#allocation7 + $0x170] sm:$0xff]  ;;  %p2835_p8 = pneg %p2834_p4 }
  0x5f   : > { %v443_v11 = vld [vmem:[#allocation7 + $0x340] sm:$0xff]  ;;  %472 = vmatpush.msra.mxu0 %v379_v10  ;;  %v449_v45 = vld [vmem:[#allocation7 + $0x370] sm:$0xff] }
  0x60   : > { %v375_v12 = vld [vmem:[#allocation7 + $0x120] sm:$0xff]  ;;  %495 = vmatpush.msra.mxu1 %v443_v11  ;;  %v381_v46 = vld [vmem:[#allocation7 + $0x150] sm:$0xff]  ;;  %p2840_p9 = pnand %p2839_p11, %p2835_p8 }
  0x61   : > { %v439_v13 = vld [vmem:[#allocation7 + $0x320] sm:$0xff]  ;;  %473 = vmatpush.msra.mxu0 %v375_v12  ;;  %v445_v47 = vld [vmem:[#allocation7 + $0x350] sm:$0xff] }
  0x62   : > { %v371_v14 = vld [vmem:[#allocation7 + $0x100] sm:$0xff]  ;;  %496 = vmatpush.msra.mxu1 %v439_v13  ;;  %v377_v48 = vld [vmem:[#allocation7 + $0x130] sm:$0xff] }
  0x63   : > { %v435_v15 = vld [vmem:[#allocation7 + $0x300] sm:$0xff]  ;;  %474 = vmatpush.msra.mxu0 %v371_v14  ;;  %v441_v49 = vld [vmem:[#allocation7 + $0x330] sm:$0xff] }
  0x64   : > { %v367_v16 = vld [vmem:[#allocation7 + $0xe0] sm:$0xff]  ;;  %497 = vmatpush.msra.mxu1 %v435_v15  ;;  %v373_v50 = vld [vmem:[#allocation7 + $0x110] sm:$0xff] }
  0x65   : > { %v431_v17 = vld [vmem:[#allocation7 + $0x2e0] sm:$0xff]  ;;  %475 = vmatpush.msra.mxu0 %v367_v16  ;;  %v437_v51 = vld [vmem:[#allocation7 + $0x310] sm:$0xff] }
  0x66   : > { %v363_v18 = vld [vmem:[#allocation7 + $0xc0] sm:$0xff]  ;;  %498 = vmatpush.msra.mxu1 %v431_v17  ;;  %v369_v52 = vld [vmem:[#allocation7 + $0xf0] sm:$0xff] }
  0x67   : > { %v427_v19 = vld [vmem:[#allocation7 + $0x2c0] sm:$0xff]  ;;  %476 = vmatpush.msra.mxu0 %v363_v18  ;;  %v433_v53 = vld [vmem:[#allocation7 + $0x2f0] sm:$0xff] }
  0x68   : > { %v359_v20 = vld [vmem:[#allocation7 + $0xa0] sm:$0xff]  ;;  %499 = vmatpush.msra.mxu1 %v427_v19  ;;  %v365_v54 = vld [vmem:[#allocation7 + $0xd0] sm:$0xff] }
  0x69   : > { %v423_v21 = vld [vmem:[#allocation7 + $0x2a0] sm:$0xff]  ;;  %477 = vmatpush.msra.mxu0 %v359_v20  ;;  %v429_v55 = vld [vmem:[#allocation7 + $0x2d0] sm:$0xff] }
  0x6a   : > { %v355_v22 = vld [vmem:[#allocation7 + $0x80] sm:$0xff]  ;;  %500 = vmatpush.msra.mxu1 %v423_v21  ;;  %v361_v56 = vld [vmem:[#allocation7 + $0xb0] sm:$0xff] }
  0x6b   : > { %v419_v23 = vld [vmem:[#allocation7 + $0x280] sm:$0xff]  ;;  %478 = vmatpush.msra.mxu0 %v355_v22  ;;  %v425_v57 = vld [vmem:[#allocation7 + $0x2b0] sm:$0xff] }
  0x6c   : > { %v351_v24 = vld [vmem:[#allocation7 + $0x60] sm:$0xff]  ;;  %501 = vmatpush.msra.mxu1 %v419_v23  ;;  %v357_v58 = vld [vmem:[#allocation7 + $0x90] sm:$0xff] }
  0x6d   : > { %v415_v25 = vld [vmem:[#allocation7 + $0x260] sm:$0xff]  ;;  %479 = vmatpush.msra.mxu0 %v351_v24  ;;  %v421_v59 = vld [vmem:[#allocation7 + $0x290] sm:$0xff] }
  0x6e   : > { %v347_v26 = vld [vmem:[#allocation7 + $0x40] sm:$0xff]  ;;  %502 = vmatpush.msra.mxu1 %v415_v25  ;;  %v353_v60 = vld [vmem:[#allocation7 + $0x70] sm:$0xff] }
  0x6f   : > { %v411_v27 = vld [vmem:[#allocation7 + $0x240] sm:$0xff]  ;;  %480 = vmatpush.msra.mxu0 %v347_v26  ;;  %v417_v61 = vld [vmem:[#allocation7 + $0x270] sm:$0xff] }
  0x70   : > { %v343_v28 = vld [vmem:[#allocation7 + $0x20] sm:$0xff]  ;;  %503 = vmatpush.msra.mxu1 %v411_v27  ;;  %v349_v62 = vld [vmem:[#allocation7 + $0x50] sm:$0xff] }
  0x71   : > { %v407_v29 = vld [vmem:[#allocation7 + $0x220] sm:$0xff]  ;;  %481 = vmatpush.msra.mxu0 %v343_v28  ;;  %v413_v63 = vld [vmem:[#allocation7 + $0x250] sm:$0xff] }
  0x72   : > { %v339_v30 = vld [vmem:[#allocation7] sm:$0xff]  ;;  %504 = vmatpush.msra.mxu1 %v407_v29  ;;  %v345_v0 = vld [vmem:[#allocation7 + $0x30] sm:$0xff] }
  0x73   : > { %v403_v31 = vld [vmem:[#allocation7 + $0x200] sm:$0xff]  ;;  %482 = vmatpush.msra.mxu0 %v339_v30  ;;  %v409_v1 = vld [vmem:[#allocation7 + $0x230] sm:$0xff] }
  0x74   : > { %v3118_v32 = vld [vmem:[%s3095_s23] sm:$0xff]  ;;  %505 = vmatpush.msra.mxu1 %v403_v31  ;;  %v341_v2 = vld [vmem:[#allocation7 + $0x10] sm:$0xff] }
  0x75   : > { %483 = vmatmul.f32.vlgmr.msra.gmra.mxu0 %v3118_v32  ;;  %506 = vmatmul.f32.vlgmr.msra.gmra.mxu1 %v3121_v33  ;;  %v405_v3 = vld [vmem:[#allocation7 + $0x210] sm:$0xff]  ;;  %v711_v4 = vld [vmem:[#allocation8 + $0x1e0] sm:$0xff] }
  0x76   : > { %559 = vmatpush.msrb.mxu0 %v401_v34  ;;  %582 = vmatpush.msrb.mxu1 %v465_v35  ;;  %v775_v5 = vld [vmem:[#allocation8 + $0x3e0] sm:$0xff] }
  0x77   : > { %v707_v6 = vld [vmem:[#allocation8 + $0x1c0] sm:$0xff] }
  0x78   : > { %560 = vmatpush.msrb.mxu0 %v397_v36  ;;  %583 = vmatpush.msrb.mxu1 %v461_v37  ;;  %v771_v7 = vld [vmem:[#allocation8 + $0x3c0] sm:$0xff] }
  0x79   : > { %v703_v8 = vld [vmem:[#allocation8 + $0x1a0] sm:$0xff] }
  0x7a   : > { %561 = vmatpush.msrb.mxu0 %v393_v38  ;;  %584 = vmatpush.msrb.mxu1 %v457_v39  ;;  %v767_v9 = vld [vmem:[#allocation8 + $0x3a0] sm:$0xff]  ;;  %v3141_v39 = vld [vmem:[%s3103_s11 + $0x8] sm:$0xff] }
  0x7b   : > { %v699_v10 = vld [vmem:[#allocation8 + $0x180] sm:$0xff] }
  0x7c   : > { %562 = vmatpush.msrb.mxu0 %v389_v40  ;;  %585 = vmatpush.msrb.mxu1 %v453_v41  ;;  %v763_v11 = vld [vmem:[#allocation8 + $0x380] sm:$0xff]  ;;  %v3146_v40 = vld [vmem:[%s3103_s11 + $0x10] sm:$0xff]  ;;  %v3149_v41 = vld [vmem:[%s3103_s11 + $0x18] sm:$0xff] }
  0x7d   : > { %486 = vmatmul.f32.gmra.mxu0 %v3126_v42  ;;  %509 = vmatmul.f32.gmra.mxu1 %v3129_v43  ;;  %v695_v12 = vld [vmem:[#allocation8 + $0x160] sm:$0xff] }
  0x7e   : > { %563 = vmatpush.msrb.mxu0 %v385_v44  ;;  %586 = vmatpush.msrb.mxu1 %v449_v45  ;;  %v759_v13 = vld [vmem:[#allocation8 + $0x360] sm:$0xff]  ;;  %v713_v44 = vld [vmem:[#allocation8 + $0x1f0] sm:$0xff] }
  0x7f   : > { %v691_v14 = vld [vmem:[#allocation8 + $0x140] sm:$0xff]  ;;  %v709_v45 = vld [vmem:[#allocation8 + $0x1d0] sm:$0xff] }
  0x80   : > { %564 = vmatpush.msrb.mxu0 %v381_v46  ;;  %587 = vmatpush.msrb.mxu1 %v445_v47  ;;  %v755_v15 = vld [vmem:[#allocation8 + $0x340] sm:$0xff]  ;;  %v705_v46 = vld [vmem:[#allocation8 + $0x1b0] sm:$0xff] }
  0x81   : > { %v687_v16 = vld [vmem:[#allocation8 + $0x120] sm:$0xff]  ;;  %v701_v47 = vld [vmem:[#allocation8 + $0x190] sm:$0xff] }
  0x82   : > { %565 = vmatpush.msrb.mxu0 %v377_v48  ;;  %588 = vmatpush.msrb.mxu1 %v441_v49  ;;  %v751_v17 = vld [vmem:[#allocation8 + $0x320] sm:$0xff]  ;;  %v697_v48 = vld [vmem:[#allocation8 + $0x170] sm:$0xff] }
  0x83   : > { %v683_v18 = vld [vmem:[#allocation8 + $0x100] sm:$0xff]  ;;  %v693_v49 = vld [vmem:[#allocation8 + $0x150] sm:$0xff] }
  0x84   : > { %566 = vmatpush.msrb.mxu0 %v373_v50  ;;  %589 = vmatpush.msrb.mxu1 %v437_v51  ;;  %v747_v19 = vld [vmem:[#allocation8 + $0x300] sm:$0xff]  ;;  %v689_v50 = vld [vmem:[#allocation8 + $0x130] sm:$0xff] }
  0x85   : > { %v679_v20 = vld [vmem:[#allocation8 + $0xe0] sm:$0xff]  ;;  %v685_v51 = vld [vmem:[#allocation8 + $0x110] sm:$0xff] }
  0x86   : > { %567 = vmatpush.msrb.mxu0 %v369_v52  ;;  %590 = vmatpush.msrb.mxu1 %v433_v53  ;;  %v743_v21 = vld [vmem:[#allocation8 + $0x2e0] sm:$0xff]  ;;  %v681_v52 = vld [vmem:[#allocation8 + $0xf0] sm:$0xff] }
  0x87   : > { %v675_v22 = vld [vmem:[#allocation8 + $0xc0] sm:$0xff]  ;;  %v677_v53 = vld [vmem:[#allocation8 + $0xd0] sm:$0xff] }
  0x88   : > { %568 = vmatpush.msrb.mxu0 %v365_v54  ;;  %591 = vmatpush.msrb.mxu1 %v429_v55  ;;  %v739_v23 = vld [vmem:[#allocation8 + $0x2c0] sm:$0xff] }
  0x89   : > { %v671_v24 = vld [vmem:[#allocation8 + $0xa0] sm:$0xff] }
  0x8a   : > { %569 = vmatpush.msrb.mxu0 %v361_v56  ;;  %592 = vmatpush.msrb.mxu1 %v425_v57  ;;  %v735_v25 = vld [vmem:[#allocation8 + $0x2a0] sm:$0xff]  ;;  %v673_v57 = vld [vmem:[#allocation8 + $0xb0] sm:$0xff] }
  0x8b   : > { %v667_v26 = vld [vmem:[#allocation8 + $0x80] sm:$0xff] }
  0x8c   : > { %570 = vmatpush.msrb.mxu0 %v357_v58  ;;  %593 = vmatpush.msrb.mxu1 %v421_v59  ;;  %v731_v27 = vld [vmem:[#allocation8 + $0x280] sm:$0xff]  ;;  %v669_v58 = vld [vmem:[#allocation8 + $0x90] sm:$0xff] }
  0x8d   : > { %v663_v28 = vld [vmem:[#allocation8 + $0x60] sm:$0xff]  ;;  %v665_v59 = vld [vmem:[#allocation8 + $0x70] sm:$0xff] }
  0x8e   : > { %571 = vmatpush.msrb.mxu0 %v353_v60  ;;  %594 = vmatpush.msrb.mxu1 %v417_v61  ;;  %v727_v29 = vld [vmem:[#allocation8 + $0x260] sm:$0xff]  ;;  %v661_v60 = vld [vmem:[#allocation8 + $0x50] sm:$0xff] }
  0x8f   : > { %v659_v30 = vld [vmem:[#allocation8 + $0x40] sm:$0xff] }
  0x90   : > { %572 = vmatpush.msrb.mxu0 %v349_v62  ;;  %595 = vmatpush.msrb.mxu1 %v413_v63  ;;  %v723_v31 = vld [vmem:[#allocation8 + $0x240] sm:$0xff] }
  0x91   : > { %v655_v34 = vld [vmem:[#allocation8 + $0x20] sm:$0xff] }
  0x92   : > { %573 = vmatpush.msrb.mxu0 %v345_v0  ;;  %596 = vmatpush.msrb.mxu1 %v409_v1  ;;  %v719_v35 = vld [vmem:[#allocation8 + $0x220] sm:$0xff]  ;;  %v657_v0 = vld [vmem:[#allocation8 + $0x30] sm:$0xff] }
  0x93   : > { %v651_v36 = vld [vmem:[#allocation8] sm:$0xff]  ;;  %v653_v1 = vld [vmem:[#allocation8 + $0x10] sm:$0xff] }
  0x94   : > { %574 = vmatpush.msrb.mxu0 %v341_v2  ;;  %597 = vmatpush.msrb.mxu1 %v405_v3  ;;  %v715_v37 = vld [vmem:[#allocation8 + $0x200] sm:$0xff]  ;;  %v777_v2 = vld [vmem:[#allocation8 + $0x3f0] sm:$0xff] }
  0x95   : > { %575 = vmatmul.f32.vlgmr.msrb.gmra.mxu0 %v3118_v32  ;;  %598 = vmatmul.f32.vlgmr.msrb.gmra.mxu1 %v3121_v33  ;;  %v3138_v38 = vld [vmem:[%s3103_s11] sm:$0xff]  ;;  %v773_v3 = vld [vmem:[#allocation8 + $0x3d0] sm:$0xff] }
  0x96   : > { %779 = vmatpush.msra.mxu0 %v711_v4  ;;  %802 = vmatpush.msra.mxu1 %v775_v5  ;;  %v769_v4 = vld [vmem:[#allocation8 + $0x3b0] sm:$0xff] }
  0x97   : > { %v765_v5 = vld [vmem:[#allocation8 + $0x390] sm:$0xff] }
  0x98   : > { %780 = vmatpush.msra.mxu0 %v707_v6  ;;  %803 = vmatpush.msra.mxu1 %v771_v7  ;;  %v761_v6 = vld [vmem:[#allocation8 + $0x370] sm:$0xff] }
  0x99   : > { %v757_v7 = vld [vmem:[#allocation8 + $0x350] sm:$0xff] }
  0x9a   : > { %781 = vmatpush.msra.mxu0 %v703_v8  ;;  %804 = vmatpush.msra.mxu1 %v767_v9  ;;  %v753_v8 = vld [vmem:[#allocation8 + $0x330] sm:$0xff] }
  0x9b   : > { %v749_v9 = vld [vmem:[#allocation8 + $0x310] sm:$0xff] }
  0x9c   : > { %782 = vmatpush.msra.mxu0 %v699_v10  ;;  %805 = vmatpush.msra.mxu1 %v763_v11 }
  0x9d   : > { %578 = vmatmul.f32.gmra.mxu0 %v3126_v42  ;;  %601 = vmatmul.f32.gmra.mxu1 %v3129_v43 }
  0x9e   : > { %783 = vmatpush.msra.mxu0 %v695_v12  ;;  %806 = vmatpush.msra.mxu1 %v759_v13  ;;  %v745_v12 = vld [vmem:[#allocation8 + $0x2f0] sm:$0xff] }
  0x9f   : > { %v741_v13 = vld [vmem:[#allocation8 + $0x2d0] sm:$0xff] }
  0xa0   : > { %784 = vmatpush.msra.mxu0 %v691_v14  ;;  %807 = vmatpush.msra.mxu1 %v755_v15  ;;  %v737_v14 = vld [vmem:[#allocation8 + $0x2b0] sm:$0xff] }
  0xa1   : > { %v733_v15 = vld [vmem:[#allocation8 + $0x290] sm:$0xff] }
  0xa2   : > { %785 = vmatpush.msra.mxu0 %v687_v16  ;;  %808 = vmatpush.msra.mxu1 %v751_v17 }
  0xa4   : > { %786 = vmatpush.msra.mxu0 %v683_v18  ;;  %809 = vmatpush.msra.mxu1 %v747_v19 }
  0xa6   : > { %787 = vmatpush.msra.mxu0 %v679_v20  ;;  %810 = vmatpush.msra.mxu1 %v743_v21  ;;  %v729_v20 = vld [vmem:[#allocation8 + $0x270] sm:$0xff] }
  0xa7   : > { %v725_v21 = vld [vmem:[#allocation8 + $0x250] sm:$0xff] }
  0xa8   : > { %788 = vmatpush.msra.mxu0 %v675_v22  ;;  %811 = vmatpush.msra.mxu1 %v739_v23  ;;  %v400_v22 = vld [vmem:[#allocation7 + $0x1e8] sm:$0xff] }
  0xa9   : > { %v464_v23 = vld [vmem:[#allocation7 + $0x3e8] sm:$0xff]  ;;  %513 = vmatpush.msra.mxu2 %v400_v22 }
  0xaa   : > { %789 = vmatpush.msra.mxu0 %v671_v24  ;;  %812 = vmatpush.msra.mxu1 %v735_v25  ;;  %v721_v24 = vld [vmem:[#allocation8 + $0x230] sm:$0xff]  ;;  %v396_v25 = vld [vmem:[#allocation7 + $0x1c8] sm:$0xff] }
  0xab   : > { %536 = vmatpush.msra.mxu3 %v464_v23  ;;  %514 = vmatpush.msra.mxu2 %v396_v25  ;;  %v438_v23 = vld [vmem:[#allocation7 + $0x318] sm:$0xff] }
  0xac   : > { %790 = vmatpush.msra.mxu0 %v667_v26  ;;  %813 = vmatpush.msra.mxu1 %v731_v27  ;;  %v460_v26 = vld [vmem:[#allocation7 + $0x3c8] sm:$0xff] }
  0xad   : > { %v392_v27 = vld [vmem:[#allocation7 + $0x1a8] sm:$0xff]  ;;  %537 = vmatpush.msra.mxu3 %v460_v26  ;;  %v370_v26 = vld [vmem:[#allocation7 + $0xf8] sm:$0xff] }
  0xae   : > { %791 = vmatpush.msra.mxu0 %v663_v28  ;;  %814 = vmatpush.msra.mxu1 %v727_v29  ;;  %v717_v28 = vld [vmem:[#allocation8 + $0x210] sm:$0xff]  ;;  %v456_v29 = vld [vmem:[#allocation7 + $0x3a8] sm:$0xff] }
  0xaf   : > { %515 = vmatpush.msra.mxu2 %v392_v27  ;;  %538 = vmatpush.msra.mxu3 %v456_v29  ;;  %v434_v27 = vld [vmem:[#allocation7 + $0x2f8] sm:$0xff] }
  0xb0   : > { %792 = vmatpush.msra.mxu0 %v659_v30  ;;  %815 = vmatpush.msra.mxu1 %v723_v31  ;;  %v388_v30 = vld [vmem:[#allocation7 + $0x188] sm:$0xff]  ;;  %v430_v29 = vld [vmem:[#allocation7 + $0x2d8] sm:$0xff] }
  0xb1   : > { %v452_v31 = vld [vmem:[#allocation7 + $0x388] sm:$0xff]  ;;  %516 = vmatpush.msra.mxu2 %v388_v30  ;;  %v362_v30 = vld [vmem:[#allocation7 + $0xb8] sm:$0xff] }
  0xb2   : > { %793 = vmatpush.msra.mxu0 %v655_v34  ;;  %816 = vmatpush.msra.mxu1 %v719_v35 }
  0xb3   : > { %539 = vmatpush.msra.mxu3 %v452_v31  ;;  %v426_v31 = vld [vmem:[#allocation7 + $0x2b8] sm:$0xff] }
  0xb4   : > { %794 = vmatpush.msra.mxu0 %v651_v36  ;;  %817 = vmatpush.msra.mxu1 %v715_v37 }
  0xb5   : > { %795 = vmatmul.f32.vlgmr.msra.gmra.mxu0 %v3138_v38  ;;  %818 = vmatmul.f32.vlgmr.msra.gmra.mxu1 %v3141_v39 }
  0xb6   : > { %871 = vmatpush.msrb.mxu0 %v713_v44  ;;  %894 = vmatpush.msrb.mxu1 %v777_v2  ;;  %v344_v2 = vld [vmem:[#allocation7 + $0x28] sm:$0xff] }
  0xb8   : > { %872 = vmatpush.msrb.mxu0 %v709_v45  ;;  %895 = vmatpush.msrb.mxu1 %v773_v3  ;;  %v408_v3 = vld [vmem:[#allocation7 + $0x228] sm:$0xff] }
  0xba   : > { %873 = vmatpush.msrb.mxu0 %v705_v46  ;;  %896 = vmatpush.msrb.mxu1 %v769_v4  ;;  %v384_v46 = vld [vmem:[#allocation7 + $0x168] sm:$0xff] }
  0xbb   : > { %517 = vmatpush.msra.mxu2 %v384_v46  ;;  %v340_v4 = vld [vmem:[#allocation7 + $0x8] sm:$0xff]  ;;  %v418_v46 = vld [vmem:[#allocation7 + $0x278] sm:$0xff] }
  0xbc   : > { %874 = vmatpush.msrb.mxu0 %v701_v47  ;;  %897 = vmatpush.msrb.mxu1 %v765_v5  ;;  %v448_v47 = vld [vmem:[#allocation7 + $0x368] sm:$0xff] }
  0xbd   : > { %798 = vmatmul.f32.gmra.mxu0 %v3146_v40  ;;  %821 = vmatmul.f32.gmra.mxu1 %v3149_v41  ;;  %v404_v5 = vld [vmem:[#allocation7 + $0x208] sm:$0xff] }
  0xbe   : > { %875 = vmatpush.msrb.mxu0 %v697_v48  ;;  %898 = vmatpush.msrb.mxu1 %v761_v6  ;;  %v380_v48 = vld [vmem:[#allocation7 + $0x148] sm:$0xff]  ;;  %v402_v6 = vld [vmem:[#allocation7 + $0x1f8] sm:$0xff] }
  0xbf   : > { %540 = vmatpush.msra.mxu3 %v448_v47  ;;  %518 = vmatpush.msra.mxu2 %v380_v48 }
  0xc0   : > { %876 = vmatpush.msrb.mxu0 %v693_v49  ;;  %899 = vmatpush.msrb.mxu1 %v757_v7  ;;  %v444_v49 = vld [vmem:[#allocation7 + $0x348] sm:$0xff]  ;;  %v466_v7 = vld [vmem:[#allocation7 + $0x3f8] sm:$0xff] }
  0xc1   : > { %541 = vmatpush.msra.mxu3 %v444_v49  ;;  %v350_v49 = vld [vmem:[#allocation7 + $0x58] sm:$0xff] }
  0xc2   : > { %877 = vmatpush.msrb.mxu0 %v689_v50  ;;  %900 = vmatpush.msrb.mxu1 %v753_v8  ;;  %v376_v50 = vld [vmem:[#allocation7 + $0x128] sm:$0xff]  ;;  %v398_v8 = vld [vmem:[#allocation7 + $0x1d8] sm:$0xff] }
  0xc3   : > { %519 = vmatpush.msra.mxu2 %v376_v50  ;;  %v414_v50 = vld [vmem:[#allocation7 + $0x258] sm:$0xff] }
  0xc4   : > { %878 = vmatpush.msrb.mxu0 %v685_v51  ;;  %901 = vmatpush.msrb.mxu1 %v749_v9  ;;  %v440_v51 = vld [vmem:[#allocation7 + $0x328] sm:$0xff]  ;;  %v462_v9 = vld [vmem:[#allocation7 + $0x3d8] sm:$0xff] }
  0xc5   : > { %542 = vmatpush.msra.mxu3 %v440_v51  ;;  %v346_v51 = vld [vmem:[#allocation7 + $0x38] sm:$0xff] }
  0xc6   : > { %879 = vmatpush.msrb.mxu0 %v681_v52  ;;  %902 = vmatpush.msrb.mxu1 %v745_v12  ;;  %v372_v52 = vld [vmem:[#allocation7 + $0x108] sm:$0xff]  ;;  %v390_v12 = vld [vmem:[#allocation7 + $0x198] sm:$0xff] }
  0xc7   : > { %520 = vmatpush.msra.mxu2 %v372_v52  ;;  %v410_v52 = vld [vmem:[#allocation7 + $0x238] sm:$0xff] }
  0xc8   : > { %880 = vmatpush.msrb.mxu0 %v677_v53  ;;  %903 = vmatpush.msrb.mxu1 %v741_v13  ;;  %v436_v53 = vld [vmem:[#allocation7 + $0x308] sm:$0xff]  ;;  %v454_v13 = vld [vmem:[#allocation7 + $0x398] sm:$0xff] }
  0xc9   : > { %543 = vmatpush.msra.mxu3 %v436_v53  ;;  %v342_v53 = vld [vmem:[#allocation7 + $0x18] sm:$0xff] }
  0xca   : > { %881 = vmatpush.msrb.mxu0 %v673_v57  ;;  %904 = vmatpush.msrb.mxu1 %v737_v14  ;;  %v428_v57 = vld [vmem:[#allocation7 + $0x2c8] sm:$0xff] }
  0xcc   : > { %882 = vmatpush.msrb.mxu0 %v669_v58  ;;  %905 = vmatpush.msrb.mxu1 %v733_v15  ;;  %v360_v58 = vld [vmem:[#allocation7 + $0xa8] sm:$0xff]  ;;  %v386_v15 = vld [vmem:[#allocation7 + $0x178] sm:$0xff] }
  0xce   : > { %883 = vmatpush.msrb.mxu0 %v665_v59  ;;  %906 = vmatpush.msrb.mxu1 %v729_v20  ;;  %v424_v59 = vld [vmem:[#allocation7 + $0x2a8] sm:$0xff]  ;;  %v442_v20 = vld [vmem:[#allocation7 + $0x338] sm:$0xff] }
  0xd0   : > { %884 = vmatpush.msrb.mxu0 %v661_v60  ;;  %907 = vmatpush.msrb.mxu1 %v725_v21  ;;  %v356_v60 = vld [vmem:[#allocation7 + $0x88] sm:$0xff]  ;;  %v374_v21 = vld [vmem:[#allocation7 + $0x118] sm:$0xff] }
  0xd2   : > { %885 = vmatpush.msrb.mxu0 %v657_v0  ;;  %908 = vmatpush.msrb.mxu1 %v721_v24  ;;  %v348_v0 = vld [vmem:[#allocation7 + $0x48] sm:$0xff] }
  0xd4   : > { %886 = vmatpush.msrb.mxu0 %v653_v1  ;;  %909 = vmatpush.msrb.mxu1 %v717_v28  ;;  %v412_v1 = vld [vmem:[#allocation7 + $0x248] sm:$0xff]  ;;  %v366_v28 = vld [vmem:[#allocation7 + $0xd8] sm:$0xff] }
  0xd5   : > { %887 = vmatmul.f32.vlgmr.msrb.gmra.mxu0 %v3138_v38  ;;  %910 = vmatmul.f32.vlgmr.msrb.gmra.mxu1 %v3141_v39 }
  0xdd   : > { %890 = vmatmul.f32.gmra.mxu0 %v3146_v40  ;;  %913 = vmatmul.f32.gmra.mxu1 %v3149_v41 }
  0xf2   : > { %v484_v54 = vpop.f32.mrf.mxu0  ;;  %v507_v55 = vpop.f32.mrf.mxu1 }
  0xf3   : > { %v508_v56 = vadd.f32 %v507_v55, %v484_v54  ;;  %v368_v54 = vld [vmem:[#allocation7 + $0xe8] sm:$0xff] }
  0xf4   : > { %v432_v55 = vld [vmem:[#allocation7 + $0x2e8] sm:$0xff]  ;;  %521 = vmatpush.msra.mxu2 %v368_v54  ;;  %v406_v54 = vld [vmem:[#allocation7 + $0x218] sm:$0xff] }
  0xf5   : > { %963 = vxpose.xlu0.b32.start [1/2] (short) %v508_v56, 128  ;;  %v364_v56 = vld [vmem:[#allocation7 + $0xc8] sm:$0xff]  ;;  %544 = vmatpush.msra.mxu3 %v432_v55 }
  0xf6   : > { %522 = vmatpush.msra.mxu2 %v364_v56  ;;  %v712_v55 = vld [vmem:[#allocation8 + $0x1e8] sm:$0xff] }
  0xf7   : > { %545 = vmatpush.msra.mxu3 %v428_v57  ;;  %v776_v56 = vld [vmem:[#allocation8 + $0x3e8] sm:$0xff] }
  0xf8   : > { %523 = vmatpush.msra.mxu2 %v360_v58  ;;  %v708_v58 = vld [vmem:[#allocation8 + $0x1c8] sm:$0xff] }
  0xf9   : > { %546 = vmatpush.msra.mxu3 %v424_v59  ;;  %v772_v59 = vld [vmem:[#allocation8 + $0x3c8] sm:$0xff] }
  0xfa   : > { %v487_v61 = vpop.f32.mrf.mxu0  ;;  %v510_v62 = vpop.f32.mrf.mxu1  ;;  %524 = vmatpush.msra.mxu2 %v356_v60  ;;  %v704_v60 = vld [vmem:[#allocation8 + $0x1a8] sm:$0xff] }
  0xfb   : > { %v511_v63 = vadd.f32 %v510_v62, %v487_v61  ;;  %v420_v61 = vld [vmem:[#allocation7 + $0x288] sm:$0xff] }
  0xfc   : > { %547 = vmatpush.msra.mxu3 %v420_v61  ;;  %v352_v62 = vld [vmem:[#allocation7 + $0x68] sm:$0xff] }
  0xfd   : > { %964 = vxpose.xlu0.b32.end [2/2] (short) %v511_v63, 128  ;;  %v416_v63 = vld [vmem:[#allocation7 + $0x268] sm:$0xff]  ;;  %525 = vmatpush.msra.mxu2 %v352_v62 }
  0xfe   : > { %548 = vmatpush.msra.mxu3 %v416_v63  ;;  %v768_v61 = vld [vmem:[#allocation8 + $0x3a8] sm:$0xff] }
  0xff   : > { %526 = vmatpush.msra.mxu2 %v348_v0  ;;  %v700_v62 = vld [vmem:[#allocation8 + $0x188] sm:$0xff] }
 0x100   : > { %549 = vmatpush.msra.mxu3 %v412_v1  ;;  %v764_v63 = vld [vmem:[#allocation8 + $0x388] sm:$0xff] }
 0x101   : > { %527 = vmatpush.msra.mxu2 %v344_v2  ;;  %v696_v1 = vld [vmem:[#allocation8 + $0x168] sm:$0xff] }
 0x102   : > { %550 = vmatpush.msra.mxu3 %v408_v3  ;;  %v760_v2 = vld [vmem:[#allocation8 + $0x368] sm:$0xff] }
 0x103   : > { %528 = vmatpush.msra.mxu2 %v340_v4  ;;  %v692_v3 = vld [vmem:[#allocation8 + $0x148] sm:$0xff] }
 0x104   : > { %551 = vmatpush.msra.mxu3 %v404_v5  ;;  %529 = vmatmul.f32.vlgmr.msra.gmra.mxu2 %v3118_v32  ;;  %v756_v4 = vld [vmem:[#allocation8 + $0x348] sm:$0xff] }
 0x105   : > { %605 = vmatpush.msrb.mxu2 %v402_v6  ;;  %552 = vmatmul.f32.vlgmr.msra.gmra.mxu3 %v3121_v33  ;;  %v688_v5 = vld [vmem:[#allocation8 + $0x128] sm:$0xff] }
 0x106   : > { %628 = vmatpush.msrb.mxu3 %v466_v7  ;;  %v748_v6 = vld [vmem:[#allocation8 + $0x308] sm:$0xff] }
 0x107   : > { %606 = vmatpush.msrb.mxu2 %v398_v8  ;;  %v680_v8 = vld [vmem:[#allocation8 + $0xe8] sm:$0xff] }
 0x108   : > { %629 = vmatpush.msrb.mxu3 %v462_v9  ;;  %v744_v9 = vld [vmem:[#allocation8 + $0x2e8] sm:$0xff] }
 0x10c   : > { %532 = vmatmul.f32.gmra.mxu2 %v3126_v42 }
 0x10d   : > { %555 = vmatmul.f32.gmra.mxu3 %v3129_v43 }
 0x112   : > { %v576_v10 = vpop.f32.mrf.mxu0  ;;  %v599_v11 = vpop.f32.mrf.mxu1 }
 0x113   : > { %v600_v18 = vadd.f32 %v599_v11, %v576_v10  ;;  %v394_v10 = vld [vmem:[#allocation7 + $0x1b8] sm:$0xff] }
 0x114   : > { %v458_v11 = vld [vmem:[#allocation7 + $0x3b8] sm:$0xff]  ;;  %607 = vmatpush.msrb.mxu2 %v394_v10  ;;  %v676_v10 = vld [vmem:[#allocation8 + $0xc8] sm:$0xff] }
 0x115   : > { %630 = vmatpush.msrb.mxu3 %v458_v11  ;;  %v740_v11 = vld [vmem:[#allocation8 + $0x2c8] sm:$0xff] }
 0x116   : > { %608 = vmatpush.msrb.mxu2 %v390_v12  ;;  %v672_v12 = vld [vmem:[#allocation8 + $0xa8] sm:$0xff] }
 0x117   : > { %631 = vmatpush.msrb.mxu3 %v454_v13  ;;  %v668_v13 = vld [vmem:[#allocation8 + $0x88] sm:$0xff] }
 0x118   : > { %609 = vmatpush.msrb.mxu2 %v386_v15  ;;  %v664_v15 = vld [vmem:[#allocation8 + $0x68] sm:$0xff] }
 0x11a   : > { %v579_v16 = vpop.f32.mrf.mxu0  ;;  %v602_v17 = vpop.f32.mrf.mxu1 }
 0x11b   : > { %v603_v19 = vadd.f32 %v602_v17, %v579_v16  ;;  %v450_v16 = vld [vmem:[#allocation7 + $0x378] sm:$0xff] }
 0x11c   : > { %v382_v17 = vld [vmem:[#allocation7 + $0x158] sm:$0xff]  ;;  %632 = vmatpush.msrb.mxu3 %v450_v16  ;;  %v728_v16 = vld [vmem:[#allocation8 + $0x268] sm:$0xff] }
 0x11d   : > { %1058 = vmatpush.msra.mxu0 %v603_v19  ;;  %v378_v19 = vld [vmem:[#allocation7 + $0x138] sm:$0xff]  ;;  %610 = vmatpush.msrb.mxu2 %v382_v17  ;;  %v660_v17 = vld [vmem:[#allocation8 + $0x48] sm:$0xff] }
 0x11f   : > { %1059 = vmatpush.msra.mxu0 %v600_v18  ;;  %v446_v18 = vld [vmem:[#allocation7 + $0x358] sm:$0xff]  ;;  %611 = vmatpush.msrb.mxu2 %v378_v19  ;;  %v656_v19 = vld [vmem:[#allocation8 + $0x28] sm:$0xff] }
 0x120   : > { %633 = vmatpush.msrb.mxu3 %v446_v18  ;;  %v724_v18 = vld [vmem:[#allocation8 + $0x248] sm:$0xff] }
 0x121   : > { %612 = vmatpush.msrb.mxu2 %v374_v21  ;;  %v652_v21 = vld [vmem:[#allocation8 + $0x8] sm:$0xff] }
 0x122   : > { %634 = vmatpush.msrb.mxu3 %v442_v20  ;;  %v720_v20 = vld [vmem:[#allocation8 + $0x228] sm:$0xff] }
 0x123   : > { %613 = vmatpush.msrb.mxu2 %v370_v26 }
 0x124   : > { %635 = vmatpush.msrb.mxu3 %v438_v23 }
 0x125   : > { %614 = vmatpush.msrb.mxu2 %v366_v28 }
 0x126   : > { %636 = vmatpush.msrb.mxu3 %v434_v27 }
 0x127   : > { %615 = vmatpush.msrb.mxu2 %v362_v30 }
 0x128   : > { %637 = vmatpush.msrb.mxu3 %v430_v29 }
 0x12a   : > { %638 = vmatpush.msrb.mxu3 %v426_v31 }
 0x132   : > { %v796_v34 = vpop.f32.mrf.mxu0  ;;  %v819_v35 = vpop.f32.mrf.mxu1 }
 0x133   : > { %v820_v36 = vadd.f32 %v819_v35, %v796_v34  ;;  %v358_v34 = vld [vmem:[#allocation7 + $0x98] sm:$0xff] }
 0x134   : > { %v422_v35 = vld [vmem:[#allocation7 + $0x298] sm:$0xff]  ;;  %616 = vmatpush.msrb.mxu2 %v358_v34 }
 0x135   : > { %1109 = vxpose.xlu1.b32.start [1/2] (short) %v820_v36, 128  ;;  %639 = vmatpush.msrb.mxu3 %v422_v35 }
 0x137   : > { %640 = vmatpush.msrb.mxu3 %v418_v46 }
 0x139   : > { %641 = vmatpush.msrb.mxu3 %v414_v50 }
 0x13a   : > { %v799_v37 = vpop.f32.mrf.mxu0  ;;  %v822_v44 = vpop.f32.mrf.mxu1 }
 0x13b   : > { %v823_v45 = vadd.f32 %v822_v44, %v799_v37  ;;  %642 = vmatpush.msrb.mxu3 %v410_v52 }
 0x13d   : > { %1110 = vxpose.xlu1.b32.end [2/2] (short) %v823_v45, 128  ;;  %v354_v45 = vld [vmem:[#allocation7 + $0x78] sm:$0xff]  ;;  %643 = vmatpush.msrb.mxu3 %v406_v54 }
 0x13e   : > { %617 = vmatpush.msrb.mxu2 %v354_v45  ;;  %644 = vmatmul.f32.vlgmr.msrb.gmra.mxu3 %v3121_v33  ;;  %v752_v33 = vld [vmem:[#allocation8 + $0x328] sm:$0xff] }
 0x13f   : > { %848 = vmatpush.msra.mxu3 %v776_v56 }
 0x140   : > { %618 = vmatpush.msrb.mxu2 %v350_v49 }
 0x141   : > { %849 = vmatpush.msra.mxu3 %v772_v59 }
 0x142   : > { %619 = vmatpush.msrb.mxu2 %v346_v51 }
 0x143   : > { %850 = vmatpush.msra.mxu3 %v768_v61 }
 0x144   : > { %620 = vmatpush.msrb.mxu2 %v342_v53 }
 0x145   : > { %621 = vmatmul.f32.vlgmr.msrb.gmra.mxu2 %v3118_v32  ;;  %851 = vmatpush.msra.mxu3 %v764_v63  ;;  %v684_v32 = vld [vmem:[#allocation8 + $0x108] sm:$0xff] }
 0x146   : > { %825 = vmatpush.msra.mxu2 %v712_v55  ;;  %647 = vmatmul.f32.gmra.mxu3 %v3129_v43  ;;  %v736_v43 = vld [vmem:[#allocation8 + $0x2a8] sm:$0xff] }
 0x147   : > { %852 = vmatpush.msra.mxu3 %v760_v2 }
 0x148   : > { %826 = vmatpush.msra.mxu2 %v708_v58 }
 0x149   : > { %853 = vmatpush.msra.mxu3 %v756_v4 }
 0x14a   : > { %827 = vmatpush.msra.mxu2 %v704_v60 }
 0x14b   : > { %854 = vmatpush.msra.mxu3 %v752_v33 }
 0x14c   : > { %828 = vmatpush.msra.mxu2 %v700_v62 }
 0x14d   : > { %624 = vmatmul.f32.gmra.mxu2 %v3126_v42  ;;  %855 = vmatpush.msra.mxu3 %v748_v6  ;;  %v732_v42 = vld [vmem:[#allocation8 + $0x288] sm:$0xff] }
 0x14e   : > { %829 = vmatpush.msra.mxu2 %v696_v1 }
 0x14f   : > { %856 = vmatpush.msra.mxu3 %v744_v9 }
 0x150   : > { %830 = vmatpush.msra.mxu2 %v692_v3 }
 0x151   : > { %857 = vmatpush.msra.mxu3 %v740_v11 }
 0x152   : > { %v888_v22 = vpop.f32.mrf.mxu0  ;;  %v911_v25 = vpop.f32.mrf.mxu1  ;;  %831 = vmatpush.msra.mxu2 %v688_v5 }
 0x153   : > { %v912_v47 = vadd.f32 %v911_v25, %v888_v22  ;;  %858 = vmatpush.msra.mxu3 %v736_v43  ;;  %v716_v22 = vld [vmem:[#allocation8 + $0x208] sm:$0xff] }
 0x154   : > { %832 = vmatpush.msra.mxu2 %v684_v32 }
 0x155   : > { %859 = vmatpush.msra.mxu3 %v732_v42  ;;  %v778_v42 = vld [vmem:[#allocation8 + $0x3f8] sm:$0xff] }
 0x156   : > { %833 = vmatpush.msra.mxu2 %v680_v8 }
 0x157   : > { %860 = vmatpush.msra.mxu3 %v728_v16  ;;  %v774_v16 = vld [vmem:[#allocation8 + $0x3d8] sm:$0xff] }
 0x158   : > { %834 = vmatpush.msra.mxu2 %v676_v10 }
 0x159   : > { %861 = vmatpush.msra.mxu3 %v724_v18  ;;  %v706_v18 = vld [vmem:[#allocation8 + $0x1b8] sm:$0xff] }
 0x15a   : > { %v891_v36 = vpop.f32.mrf.mxu0  ;;  %v914_v44 = vpop.f32.mrf.mxu1  ;;  %835 = vmatpush.msra.mxu2 %v672_v12 }
 0x15b   : > { %v915_v48 = vadd.f32 %v914_v44, %v891_v36  ;;  %862 = vmatpush.msra.mxu3 %v720_v20 }
 0x15c   : > { %836 = vmatpush.msra.mxu2 %v668_v13  ;;  %v714_v13 = vld [vmem:[#allocation8 + $0x1f8] sm:$0xff] }
 0x15d   : > { %1203 = vmatpush.msra.mxu1 %v915_v48  ;;  %863 = vmatpush.msra.mxu3 %v716_v22  ;;  %v766_v22 = vld [vmem:[#allocation8 + $0x398] sm:$0xff] }
 0x15e   : > { %837 = vmatpush.msra.mxu2 %v664_v15  ;;  %864 = vmatmul.f32.vlgmr.msra.gmra.mxu3 %v3141_v39 }
 0x15f   : > { %1204 = vmatpush.msra.mxu1 %v912_v47  ;;  %940 = vmatpush.msrb.mxu3 %v778_v42  ;;  %v718_v42 = vld [vmem:[#allocation8 + $0x218] sm:$0xff] }
 0x160   : > { %838 = vmatpush.msra.mxu2 %v660_v17 }
 0x161   : > { %941 = vmatpush.msrb.mxu3 %v774_v16 }
 0x162   : > { %839 = vmatpush.msra.mxu2 %v656_v19  ;;  %v770_v19 = vld [vmem:[#allocation8 + $0x3b8] sm:$0xff] }
 0x163   : > { %942 = vmatpush.msrb.mxu3 %v770_v19 }
 0x164   : > { %840 = vmatpush.msra.mxu2 %v652_v21  ;;  %v702_v21 = vld [vmem:[#allocation8 + $0x198] sm:$0xff] }
 0x165   : > { %841 = vmatmul.f32.vlgmr.msra.gmra.mxu2 %v3138_v38  ;;  %943 = vmatpush.msrb.mxu3 %v766_v22 }
 0x166   : > { %867 = vmatmul.f32.gmra.mxu3 %v3149_v41  ;;  %917 = vmatpush.msrb.mxu2 %v714_v13  ;;  %v654_v13 = vld [vmem:[#allocation8 + $0x18] sm:$0xff] }
 0x16d   : > { %844 = vmatmul.f32.gmra.mxu2 %v3146_v40 }
 0x187   : > { %v3199_v56 = vpop.f32.mrf.mxu2 }
 0x18f   : > { %v3210_v63 = vpop.f32.mrf.mxu2 }
 0x199   : > { %v979_v14 = vpop.trf.xlu0 }
 0x19a   : > { %2392 = vmatmul.msk.f32.vlgmr.msra.gmra.mxu0 %vm995_vm0, %v979_v14 }
 0x1a1   : > { %v980_v24 = vpop.trf.xlu0 }
 0x1a2   : > { %2393 = vmatmul.msk.f32.gmra.mxu0 %vm995_vm0, %v980_v24 }
 0x1a9   : > { %v981_v37 = vpop.trf.xlu0 }
 0x1aa   : > { %2394 = vmatmul.msk.f32.gmra.mxu0 %vm995_vm0, %v981_v37 }
 0x1b1   : > { %v982_v57 = vpop.trf.xlu0 }
 0x1b2   : > { %2395 = vmatmul.msk.f32.gmra.mxu0 %vm995_vm0, %v982_v57  ;;  %v3201_v57 = vpop.f32.mrf.mxu3 }
 0x1b9   : > { %v983_v0 = vpop.trf.xlu0 }
 0x1ba   : > { %2396 = vmatmul.msk.f32.gmra.mxu0 %vm995_vm0, %v983_v0  ;;  %v3212_v0 = vpop.f32.mrf.mxu3 }
 0x1c1   : > { %v984_v7 = vpop.trf.xlu0 }
 0x1c2   : > { %2397 = vmatmul.msk.f32.gmra.mxu0 %vm995_vm0, %v984_v7  ;;  %v645_v32 = vpop.f32.mrf.mxu3 }
 0x1c8   : > { %v622_v33 = vpop.f32.mrf.mxu2 }
 0x1c9   : > { %v985_v14 = vpop.trf.xlu0  ;;  %v3221_v6 = vadd.f32 %v645_v32, %v622_v33  ;;  %v662_v33 = vld [vmem:[#allocation8 + $0x58] sm:$0xff] }
 0x1ca   : > { %2398 = vmatmul.msk.f32.gmra.mxu0 %vm995_vm0, %v985_v14  ;;  %v648_v43 = vpop.f32.mrf.mxu3  ;;  %v710_v14 = vld [vmem:[#allocation8 + $0x1d8] sm:$0xff] }
 0x1cb   : > { %918 = vmatpush.msrb.mxu2 %v710_v14  ;;  %v726_v32 = vld [vmem:[#allocation8 + $0x258] sm:$0xff] }
 0x1cd   : > { %919 = vmatpush.msrb.mxu2 %v706_v18 }
 0x1cf   : > { %920 = vmatpush.msrb.mxu2 %v702_v21 }
 0x1d0   : > { %v625_v12 = vpop.f32.mrf.mxu2 }
 0x1d1   : > { %v986_v23 = vpop.trf.xlu0  ;;  %v3230_v15 = vadd.f32 %v648_v43, %v625_v12  ;;  %v658_v12 = vld [vmem:[#allocation8 + $0x38] sm:$0xff] }
 0x1d2   : > { %2399 = vmatmul.msk.f32.gmra.mxu0 %vm995_vm0, %v986_v23  ;;  %v698_v23 = vld [vmem:[#allocation8 + $0x178] sm:$0xff] }
 0x1d3   : > { %921 = vmatpush.msrb.mxu2 %v698_v23  ;;  %v722_v43 = vld [vmem:[#allocation8 + $0x238] sm:$0xff] }
 0x1d9   : > { %v1125_v24 = vpop.trf.xlu1  ;;  %v987_v25 = vpop.trf.xlu0 }
 0x1da   : > { %2408 = vmatmul.msk.f32.vlgmr.msra.gmra.mxu1 %vm995_vm0, %v1125_v24  ;;  %2400 = vmatmul.msk.f32.gmra.mxu0 %vm995_vm0, %v987_v25  ;;  %v762_v24 = vld [vmem:[#allocation8 + $0x378] sm:$0xff] }
 0x1db   : > { %v694_v25 = vld [vmem:[#allocation8 + $0x158] sm:$0xff]  ;;  %944 = vmatpush.msrb.mxu3 %v762_v24 }
 0x1dc   : > { %922 = vmatpush.msrb.mxu2 %v694_v25 }
 0x1e1   : > { %v1126_v26 = vpop.trf.xlu1  ;;  %v988_v27 = vpop.trf.xlu0 }
 0x1e2   : > { %2409 = vmatmul.msk.f32.gmra.mxu1 %vm995_vm0, %v1126_v26  ;;  %2401 = vmatmul.msk.f32.gmra.mxu0 %vm995_vm0, %v988_v27  ;;  %v758_v26 = vld [vmem:[#allocation8 + $0x358] sm:$0xff] }
 0x1e3   : > { %945 = vmatpush.msrb.mxu3 %v758_v26 }
 0x1e8   : > { %v842_v27 = vpop.f32.mrf.mxu2 }
 0x1e9   : > { %v1127_v28 = vpop.trf.xlu1  ;;  %v989_v29 = vpop.trf.xlu0 }
 0x1ea   : > { %2410 = vmatmul.msk.f32.gmra.mxu1 %vm995_vm0, %v1127_v28  ;;  %2402 = vmatmul.msk.f32.gmra.mxu0 %vm995_vm0, %v989_v29  ;;  %v865_v28 = vpop.f32.mrf.mxu3 }
 0x1f1   : > { %v1128_v30 = vpop.trf.xlu1  ;;  %v990_v31 = vpop.trf.xlu0 }
 0x1f2   : > { %2411 = vmatmul.msk.f32.gmra.mxu1 %vm995_vm0, %v1128_v30  ;;  %2403 = vmatmul.msk.f32.gmra.mxu0 %vm995_vm0, %v990_v31  ;;  %v866_v30 = vadd.f32 %v865_v28, %v842_v27 }
 0x1f4   : > { %1721 = vxpose.xlu0.b32.start [1/2] (short) %v866_v30, 128 }
 0x1f9   : > { %v1129_v34 = vpop.trf.xlu1  ;;  %v991_v35 = vpop.trf.xlu0 }
 0x1fa   : > { %2412 = vmatmul.msk.f32.gmra.mxu1 %vm995_vm0, %v1129_v34  ;;  %2404 = vmatmul.msk.f32.gmra.mxu0 %vm995_vm0, %v991_v35  ;;  %v690_v34 = vld [vmem:[#allocation8 + $0x138] sm:$0xff] }
 0x1fb   : > { %v754_v35 = vld [vmem:[#allocation8 + $0x338] sm:$0xff]  ;;  %923 = vmatpush.msrb.mxu2 %v690_v34  ;;  %v554_v34 = vadd.f32 %v3201_v57, %v3199_v56 }
 0x1fc   : > { %946 = vmatpush.msrb.mxu3 %v754_v35 }
 0x1fd   : > { %1576 = vxpose.xlu2.b32.start [1/2] (short) %v554_v34, 128 }
 0x201   : > { %v1130_v36 = vpop.trf.xlu1  ;;  %v992_v37 = vpop.trf.xlu0 }
 0x202   : > { %2413 = vmatmul.msk.f32.gmra.mxu1 %vm995_vm0, %v1130_v36  ;;  %2405 = vmatmul.msk.f32.gmra.mxu0 %vm995_vm0, %v992_v37  ;;  %v686_v36 = vld [vmem:[#allocation8 + $0x118] sm:$0xff] }
 0x203   : > { %v750_v37 = vld [vmem:[#allocation8 + $0x318] sm:$0xff]  ;;  %924 = vmatpush.msrb.mxu2 %v686_v36 }
 0x204   : > { %947 = vmatpush.msrb.mxu3 %v750_v37 }
 0x209   : > { %v1131_v44 = vpop.trf.xlu1  ;;  %v993_v45 = vpop.trf.xlu0 }
 0x20a   : > { %2414 = vmatmul.msk.f32.gmra.mxu1 %vm995_vm0, %v1131_v44  ;;  %2406 = vmatmul.msk.f32.gmra.mxu0 %vm995_vm0, %v993_v45  ;;  %v682_v44 = vld [vmem:[#allocation8 + $0xf8] sm:$0xff] }
 0x20b   : > { %v746_v45 = vld [vmem:[#allocation8 + $0x2f8] sm:$0xff]  ;;  %925 = vmatpush.msrb.mxu2 %v682_v44 }
 0x20c   : > { %948 = vmatpush.msrb.mxu3 %v746_v45 }
 0x211   : > { %v1132_v46 = vpop.trf.xlu1  ;;  %v994_v47 = vpop.trf.xlu0 }
 0x212   : > { %2415 = vmatmul.msk.f32.gmra.mxu1 %vm995_vm0, %v1132_v46  ;;  %2407 = vmatmul.msk.f32.gmra.mxu0 %vm995_vm0, %v994_v47  ;;  %v678_v46 = vld [vmem:[#allocation8 + $0xd8] sm:$0xff]  ;;  %v845_v47 = vpop.f32.mrf.mxu2 }
 0x213   : > { %926 = vmatpush.msrb.mxu2 %v678_v46 }
 0x217   : > { %v1061_v48 = vpop.f32.mrf.mxu0 }
 0x218   : > { %v3203_v58 = vmul.f32 0.088388346, %v1061_v48  ;;  %v742_v48 = vld [vmem:[#allocation8 + $0x2d8] sm:$0xff] }
 0x219   : > { %v1133_v49 = vpop.trf.xlu1  ;;  %949 = vmatpush.msrb.mxu3 %v742_v48 }
 0x21a   : > { %2416 = vmatmul.msk.f32.gmra.mxu1 %vm995_vm0, %v1133_v49  ;;  %v868_v49 = vpop.f32.mrf.mxu3 }
 0x21f   : > { %v1064_v50 = vpop.f32.mrf.mxu0 }
 0x220   : > { %v3214_v1 = vmul.f32 0.088388346, %v1064_v50 }
 0x221   : > { %v1134_v51 = vpop.trf.xlu1 }
 0x222   : > { %2417 = vmatmul.msk.f32.gmra.mxu1 %vm995_vm0, %v1134_v51  ;;  %v869_v51 = vadd.f32 %v868_v49, %v845_v47  ;;  %v557_v47 = vadd.f32 %v3212_v0, %v3210_v63 }
 0x224   : > { %1722 = vxpose.xlu0.b32.end [2/2] (short) %v869_v51, 128  ;;  %1577 = vxpose.xlu2.b32.end [2/2] (short) %v557_v47, 128 }
 0x227   : > { %v1067_v52 = vpop.f32.mrf.mxu0 }
 0x228   : > { %v3223_v7 = vmul.f32 0.088388346, %v1067_v52 }
 0x229   : > { %v1135_v53 = vpop.trf.xlu1 }
 0x22a   : > { %2418 = vmatmul.msk.f32.gmra.mxu1 %vm995_vm0, %v1135_v53  ;;  %v674_v53 = vld [vmem:[#allocation8 + $0xb8] sm:$0xff] }
 0x22b   : > { %927 = vmatpush.msrb.mxu2 %v674_v53 }
 0x22f   : > { %v3196_v54 = vpop.f32.mrf.mxu0 }
 0x230   : > { %v1257_v44 = vmul.f32 0.088388346, %v3196_v54 }
 0x231   : > { %v1136_v55 = vpop.trf.xlu1 }
 0x232   : > { %2419 = vmatmul.msk.f32.gmra.mxu1 %vm995_vm0, %v1136_v55  ;;  %v738_v55 = vld [vmem:[#allocation8 + $0x2b8] sm:$0xff] }
 0x233   : > { %950 = vmatpush.msrb.mxu3 %v738_v55 }
 0x237   : > { %v1073_v59 = vpop.f32.mrf.mxu0 }
 0x238   : > { %v3205_v61 = vmul.f32 0.088388346, %v1073_v59  ;;  %v670_v59 = vld [vmem:[#allocation8 + $0x98] sm:$0xff] }
 0x239   : > { %v1137_v60 = vpop.trf.xlu1  ;;  %928 = vmatpush.msrb.mxu2 %v670_v59 }
 0x23a   : > { %2420 = vmatmul.msk.f32.gmra.mxu1 %vm995_vm0, %v1137_v60  ;;  %v1270_v62 = vmax.f32 %v3203_v58, %v3205_v61  ;;  %v734_v60 = vld [vmem:[#allocation8 + $0x298] sm:$0xff] }
 0x23b   : > { %951 = vmatpush.msrb.mxu3 %v734_v60 }
 0x23f   : > { %v1076_v2 = vpop.f32.mrf.mxu0 }
 0x240   : > { %v3216_v4 = vmul.f32 0.088388346, %v1076_v2  ;;  %v666_v2 = vld [vmem:[#allocation8 + $0x78] sm:$0xff] }
 0x241   : > { %v1138_v3 = vpop.trf.xlu1  ;;  %929 = vmatpush.msrb.mxu2 %v666_v2 }
 0x242   : > { %2421 = vmatmul.msk.f32.gmra.mxu1 %vm995_vm0, %v1138_v3  ;;  %v1271_v5 = vmax.f32 %v3214_v1, %v3216_v4  ;;  %v730_v3 = vld [vmem:[#allocation8 + $0x278] sm:$0xff] }
 0x243   : > { %952 = vmatpush.msrb.mxu3 %v730_v3  ;;  %930 = vmatpush.msrb.mxu2 %v662_v33 }
 0x245   : > { %953 = vmatpush.msrb.mxu3 %v726_v32  ;;  %931 = vmatpush.msrb.mxu2 %v658_v12 }
 0x247   : > { %v1079_v8 = vpop.f32.mrf.mxu0  ;;  %954 = vmatpush.msrb.mxu3 %v722_v43  ;;  %932 = vmatpush.msrb.mxu2 %v654_v13 }
 0x248   : > { %v3225_v10 = vmul.f32 0.088388346, %v1079_v8  ;;  %933 = vmatmul.f32.vlgmr.msrb.gmra.mxu2 %v3138_v38 }
 0x249   : > { %v1139_v9 = vpop.trf.xlu1  ;;  %955 = vmatpush.msrb.mxu3 %v718_v42 }
 0x24a   : > { %2422 = vmatmul.msk.f32.gmra.mxu1 %vm995_vm0, %v1139_v9  ;;  %v1272_v11 = vmax.f32 %v3223_v7, %v3225_v10  ;;  %956 = vmatmul.f32.vlgmr.msrb.gmra.mxu3 %v3141_v39 }
 0x24f   : > { %v3232_v17 = vpop.f32.mrf.mxu0 }
 0x250   : > { %936 = vmatmul.f32.gmra.mxu2 %v3146_v40  ;;  %v1261_v45 = vmul.f32 0.088388346, %v3232_v17 }
 0x251   : > { %v1140_v20 = vpop.trf.xlu1 }
 0x252   : > { %2423 = vmatmul.msk.f32.gmra.mxu1 %vm995_vm0, %v1140_v20  ;;  %959 = vmatmul.f32.gmra.mxu3 %v3149_v41  ;;  %v1273_v48 = vmax.f32 %v1257_v44, %v1261_v45 }
 0x257   : > { %v1206_v29 = vpop.f32.mrf.mxu1  ;;  %v1085_v31 = vpop.f32.mrf.mxu0 }
 0x258   : > { %v3241_v19 = vmul.f32 0.088388346, %v1206_v29  ;;  %v3247_v23 = vmul.f32 0.088388346, %v1085_v31 }
 0x25a   : > { %v1274_v26 = vmax.f32 %v1270_v62, %v3247_v23 }
 0x25f   : > { %v1209_v50 = vpop.f32.mrf.mxu1  ;;  %v1088_v52 = vpop.f32.mrf.mxu0 }
 0x260   : > { %v3249_v38 = vmul.f32 0.088388346, %v1088_v52  ;;  %v3253_v25 = vmul.f32 0.088388346, %v1209_v50 }
 0x262   : > { %v1275_v27 = vmax.f32 %v1271_v5, %v3249_v38 }
 0x267   : > { %v1212_v8 = vpop.f32.mrf.mxu1  ;;  %v1091_v9 = vpop.f32.mrf.mxu0 }
 0x268   : > { %v3273_v36 = vmul.f32 0.088388346, %v1212_v8  ;;  %v3283_v56 = vmul.f32 0.088388346, %v1091_v9 }
 0x26a   : > { %v1276_v54 = vmax.f32 %v1272_v11, %v3283_v56 }
 0x26f   : > { %v3237_v14 = vpop.f32.mrf.mxu1  ;;  %v1094_v16 = vpop.f32.mrf.mxu0 }
 0x270   : > { %v3285_v57 = vmul.f32 0.088388346, %v1094_v16 }
 0x272   : > { %v1277_v17 = vmax.f32 %v1273_v48, %v3285_v57 }
 0x277   : > { %v1218_v18 = vpop.f32.mrf.mxu1  ;;  %v1097_v21 = vpop.f32.mrf.mxu0 }
 0x278   : > { %v3243_v20 = vmul.f32 0.088388346, %v1218_v18  ;;  %v3251_v39 = vmul.f32 0.088388346, %v1097_v21 }
 0x27a   : > { %v1406_v22 = vmax.f32 %v3241_v19, %v3243_v20  ;;  %v1278_v30 = vmax.f32 %v1274_v26, %v3251_v39 }
 0x27f   : > { %v1221_v24 = vpop.f32.mrf.mxu1  ;;  %v1100_v41 = vpop.f32.mrf.mxu0 }
 0x280   : > { %v3255_v40 = vmul.f32 0.088388346, %v1221_v24  ;;  %v3265_v28 = vmul.f32 0.088388346, %v1100_v41 }
 0x282   : > { %v1407_v29 = vmax.f32 %v3253_v25, %v3255_v40  ;;  %v1279_v31 = vmax.f32 %v1275_v27, %v3265_v28 }
 0x284   : > { %v1282_v35 = vmax.f32 %v1278_v30, %v1279_v31 }
 0x287   : > { %v1224_v62 = vpop.f32.mrf.mxu1  ;;  %v1103_v5 = vpop.f32.mrf.mxu0 }
 0x288   : > { %v3275_v37 = vmul.f32 0.088388346, %v1224_v62  ;;  %v3287_v49 = vmul.f32 0.088388346, %v1103_v5 }
 0x28a   : > { %v1408_v46 = vmax.f32 %v3273_v36, %v3275_v37  ;;  %v1280_v63 = vmax.f32 %v1276_v54, %v3287_v49 }
 0x28f   : > { %v3289_v50 = vpop.f32.mrf.mxu1  ;;  %v1106_v51 = vpop.f32.mrf.mxu0 }
 0x290   : > { %v3296_v52 = vmul.f32 0.088388346, %v1106_v51 }
 0x292   : > { %v1281_v0 = vmax.f32 %v1277_v17, %v3296_v52 }
 0x294   : > { %v1283_v53 = vmax.f32 %v1280_v63, %v1281_v0 }
 0x296   : > { %v1284_v55 = vmax.f32 %v1282_v35, %v1283_v53 }
 0x297   : > { %v1230_v59 = vpop.f32.mrf.mxu1 }
 0x298   : > { %v1285_v60 = vrot.slane %v1284_v55, 4 }
 0x29a   : > { %v1286_v2 = vmax.f32 %v1284_v55, %v1285_v60  ;;  %v3348_v60 = vmul.f32 0.088388346, %v1230_v59 }
 0x29c   : > { %v1287_v3 = vrot.slane %v1286_v2, 2 }
 0x29e   : > { %v1288_v33 = vmax.f32 %v1286_v2, %v1287_v3 }
 0x29f   : > { %v1233_v32 = vpop.f32.mrf.mxu1 }
 0x2a0   : > { %v1289_v8 = vrot.slane %v1288_v33, 1  ;;  %v3350_v2 = vmul.f32 0.088388346, %v1233_v32 }
 0x2a2   : > { %v3300_v9 = vmax.f32 %v1288_v33, %v1289_v8 }
 0x2a4   : > { %v1291_v11 = vsub.f32 %v3203_v58, %v3300_v9  ;;  %v1292_v12 = vsub.f32 %v3214_v1, %v3300_v9  ;;  %v1293_v43 = vsub.f32 %v3223_v7, %v3300_v9  ;;  %v1294_v13 = vsub.f32 %v1257_v44, %v3300_v9 }
 0x2a5   : > { %v1295_v42 = vsub.f32 %v3205_v61, %v3300_v9  ;;  %v1296_v16 = vsub.f32 %v3216_v4, %v3300_v9  ;;  %v1297_v18 = vsub.f32 %v3225_v10, %v3300_v9  ;;  %v1298_v61 = vsub.f32 %v1261_v45, %v3300_v9 }
 0x2a6   : > { %v1307_v58 = vmul.f32 1.442695, %v1291_v11  ;;  %v1309_v24 = vmul.f32 1.442695, %v1292_v12  ;;  %v1311_v41 = vmul.f32 1.442695, %v1293_v43  ;;  %v1299_v10 = vsub.f32 %v3247_v23, %v3300_v9 }
 0x2a7   : > { %v3315_v21 = vpop.f32.mrf.mxu1  ;;  %v1313_v1 = vmul.f32 1.442695, %v1294_v13  ;;  %v1315_v7 = vmul.f32 1.442695, %v1295_v42  ;;  %v1317_v27 = vmul.f32 1.442695, %v1296_v16  ;;  %v1300_v62 = vsub.f32 %v3249_v38, %v3300_v9 }
 0x2a8   : > { %2552 = vpow2.f32 %v1307_v58  ;;  %v1319_v31 = vmul.f32 1.442695, %v1297_v18  ;;  %v1321_v5 = vmul.f32 1.442695, %v1298_v61  ;;  %v1301_v47 = vsub.f32 %v3283_v56, %v3300_v9 }
 0x2a9   : > { %2554 = vpow2.f32 %v1309_v24  ;;  %v1323_v23 = vmul.f32 1.442695, %v1299_v10  ;;  %v1302_v17 = vsub.f32 %v3285_v57, %v3300_v9  ;;  %v1325_v38 = vmul.f32 1.442695, %v1300_v62 }
 0x2aa   : > { %2556 = vpow2.f32 %v1311_v41  ;;  %v1303_v53 = vsub.f32 %v3251_v39, %v3300_v9  ;;  %v1327_v56 = vmul.f32 1.442695, %v1301_v47  ;;  %v1304_v57 = vsub.f32 %v3265_v28, %v3300_v9 }
 0x2ab   : > { %2558 = vpow2.f32 %v1313_v1  ;;  %v1329_v33 = vmul.f32 1.442695, %v1302_v17  ;;  %v1305_v39 = vsub.f32 %v3287_v49, %v3300_v9  ;;  %v1410_v28 = vmax.f32 %v1406_v22, %v3348_v60 }
 0x2ac   : > { %2560 = vpow2.f32 %v1315_v7  ;;  %v1331_v12 = vmul.f32 1.442695, %v1303_v53  ;;  %v1411_v43 = vmax.f32 %v1407_v29, %v3350_v2  ;;  %v1306_v49 = vsub.f32 %v3296_v52, %v3300_v9 }
 0x2ad   : > { %2562 = vpow2.f32 %v1317_v27  ;;  %v1333_v16 = vmul.f32 1.442695, %v1304_v57  ;;  %v1335_v22 = vmul.f32 1.442695, %v1305_v39 }
 0x2ae   : > { %v3320_v4 = vpop.eup %2552  ;;  %2564 = vpow2.f32 %v1319_v31  ;;  %v1337_v52 = vmul.f32 1.442695, %v1306_v49 }
 0x2af   : > { %v3317_v26 = vpop.f32.mrf.mxu1  ;;  %v3322_v30 = vpop.eup %2554  ;;  %2566 = vpow2.f32 %v1321_v5 }
 0x2b0   : > { %v1339_v34 = vadd.f32 %v3322_v30, %v3320_v4  ;;  %v3328_v35 = vpop.eup %2556  ;;  %2568 = vpow2.f32 %v1323_v23  ;;  %v3406_v17 = vmul.f32 0.088388346, %v3317_v26 }
 0x2b1   : > { %v3333_v45 = vpop.eup %2558  ;;  %2570 = vpow2.f32 %v1325_v38 }
 0x2b2   : > { %v1340_v44 = vadd.f32 %v3328_v35, %v1339_v34  ;;  %v3338_v54 = vpop.eup %2560  ;;  %2572 = vpow2.f32 %v1327_v56 }
 0x2b3   : > { %v3343_v0 = vpop.eup %2562  ;;  %2574 = vpow2.f32 %v1329_v33 }
 0x2b4   : > { %v1341_v48 = vadd.f32 %v3333_v45, %v1340_v44  ;;  %v3352_v3 = vpop.eup %2564  ;;  %2576 = vpow2.f32 %v1331_v12  ;;  %v3396_v44 = vmul.f32 0.088388346, %v3289_v50 }
 0x2b5   : > { %v3357_v11 = vpop.eup %2566  ;;  %2578 = vpow2.f32 %v1333_v16 }
 0x2b6   : > { %v1342_v63 = vadd.f32 %v3338_v54, %v1341_v48  ;;  %v3372_v42 = vpop.eup %2568  ;;  %2580 = vpow2.f32 %v1335_v22  ;;  %v1393_v48 = vmul.f32 0.088388346, %v3237_v14 }
 0x2b7   : > { %v1242_v51 = vpop.f32.mrf.mxu1  ;;  %v3379_v24 = vpop.eup %2570  ;;  %2582 = vpow2.f32 %v1337_v52 }
 0x2b8   : > { %v1343_v55 = vadd.f32 %v3343_v0, %v1342_v63  ;;  %v3361_v59 = vmul.f32 0.088388346, %v1242_v51  ;;  %v3384_v7 = vpop.eup %2572  ;;  %v3403_v51 = vmul.f32 0.088388346, %v3315_v21  ;;  %v1409_v53 = vmax.f32 %v1393_v48, %v3396_v44 }
 0x2b9   : > { %v3387_v27 = vpop.eup %2574 }
 0x2ba   : > { %v1344_v8 = vadd.f32 %v3352_v3, %v1343_v55  ;;  %v1414_v41 = vmax.f32 %v1410_v28, %v3361_v59  ;;  %v3390_v34 = vpop.eup %2576  ;;  %v1412_v14 = vmax.f32 %v1408_v46, %v3403_v51  ;;  %v1413_v21 = vmax.f32 %v1409_v53, %v3406_v17 }
 0x2bb   : > { %v3393_v5 = vpop.eup %2578 }
 0x2bc   : > { %v1345_v32 = vadd.f32 %v3357_v11, %v1344_v8  ;;  %v3399_v23 = vpop.eup %2580 }
 0x2bd   : > { %v2583_v63 = vpop.eup %2582 }
 0x2be   : > { %v1346_v58 = vadd.f32 %v3372_v42, %v1345_v32 }
 0x2bf   : > { %v1245_v13 = vpop.f32.mrf.mxu1 }
 0x2c0   : > { %v3376_v18 = vmul.f32 0.088388346, %v1245_v13  ;;  %v1347_v1 = vadd.f32 %v3379_v24, %v1346_v58 }
 0x2c2   : > { %v1415_v29 = vmax.f32 %v1411_v43, %v3376_v18  ;;  %v1348_v61 = vadd.f32 %v3384_v7, %v1347_v1 }
 0x2c4   : > { %v1418_v9 = vmax.f32 %v1414_v41, %v1415_v29  ;;  %v1349_v10 = vadd.f32 %v3387_v27, %v1348_v61 }
 0x2c6   : > { %v1350_v62 = vadd.f32 %v3390_v34, %v1349_v10 }
 0x2c7   : > { %v1248_v31 = vpop.f32.mrf.mxu1 }
 0x2c8   : > { %v1351_v47 = vadd.f32 %v3393_v5, %v1350_v62  ;;  %v3410_v56 = vmul.f32 0.088388346, %v1248_v31 }
 0x2ca   : > { %v1352_v38 = vadd.f32 %v3399_v23, %v1351_v47  ;;  %v1416_v33 = vmax.f32 %v1412_v14, %v3410_v56 }
 0x2cc   : > { %v1353_v50 = vadd.f32 %v2583_v63, %v1352_v38 }
 0x2ce   : > { %v1354_v26 = vrot.slane %v1353_v50, 4 }
 0x2cf   : > { %v1251_v55 = vpop.f32.mrf.mxu1 }
 0x2d0   : > { %v3417_v57 = vmul.f32 0.088388346, %v1251_v55  ;;  %v1355_v39 = vadd.f32 %v1354_v26, %v1353_v50 }
 0x2d2   : > { %v1417_v8 = vmax.f32 %v1413_v21, %v3417_v57  ;;  %v1356_v32 = vrot.slane %v1355_v39, 2 }
 0x2d4   : > { %v1419_v12 = vmax.f32 %v1416_v33, %v1417_v8  ;;  %v1357_v43 = vadd.f32 %v1356_v32, %v1355_v39 }
 0x2d6   : > { %v1420_v28 = vmax.f32 %v1418_v9, %v1419_v12  ;;  %v1358_v49 = vrot.slane %v1357_v43, 1 }
 0x2d8   : > { %v1421_v13 = vrot.slane %v1420_v28, 4  ;;  %v1359_v58 = vadd.f32 %v1358_v49, %v1357_v43 }
 0x2da   : > { %v1422_v16 = vmax.f32 %v1420_v28, %v1421_v13  ;;  %2584 = vrcp.f32 %v1359_v58  ;;  %v1371_v50 = vand.u32 2147483648, %v1359_v58  ;;  %v1369_v55 = vand.u32 2147483647, %v1359_v58 }
 0x2db   : > { %vm1365_vm2 = vweird.f32 %v1359_v58 }
 0x2dc   : > { %v1423_v22 = vrot.slane %v1422_v16, 2  ;;  %vm1370_vm4 = vcmp.eq.f32.partialorder %v1369_v55, 8.507059e+37 }
 0x2de   : > { %v1424_v46 = vmax.f32 %v1422_v16, %v1423_v22 }
 0x2e0   : > { %v1425_v41 = vrot.slane %v1424_v46, 1  ;;  %v2585_v1 = vpop.eup %2584 }
 0x2e1   : > { %v1361_v52 = vmul.f32 %v2585_v1, %v1359_v58  ;;  %vm1366_vm1 = vweird.f32 %v2585_v1 }
 0x2e2   : > { %v3421_v29 = vmax.f32 %v1424_v46, %v1425_v41  ;;  %vm1367_vm3 = vmor %vm1365_vm2, %vm1366_vm1 }
 0x2e3   : > { %v1362_v38 = vsub.f32 1.0, %v1361_v52 }
 0x2e4   : > { %v1427_v61 = vsub.f32 %v3241_v19, %v3421_v29  ;;  %v1428_v10 = vsub.f32 %v3253_v25, %v3421_v29  ;;  %v1429_v9 = vsub.f32 %v3273_v36, %v3421_v29  ;;  %v1430_v31 = vsub.f32 %v1393_v48, %v3421_v29 }
 0x2e5   : > { %v1431_v62 = vsub.f32 %v3243_v20, %v3421_v29  ;;  %v1432_v47 = vsub.f32 %v3255_v40, %v3421_v29  ;;  %v1433_v53 = vsub.f32 %v3275_v37, %v3421_v29  ;;  %v1363_v19 = vmul.f32 %v2585_v1, %v1362_v38 }
 0x2e6   : > { %v1443_v25 = vmul.f32 1.442695, %v1427_v61  ;;  %v1445_v14 = vmul.f32 1.442695, %v1428_v10  ;;  %v1447_v36 = vmul.f32 1.442695, %v1429_v9  ;;  %v1434_v37 = vsub.f32 %v3396_v44, %v3421_v29 }
 0x2e7   : > { %v1364_v21 = vadd.f32 %v2585_v1, %v1363_v19  ;;  %v1372_v48 = vor.u32 1.1754944e-38, %v1371_v50  ;;  %v1449_v40 = vmul.f32 1.442695, %v1430_v31  ;;  %v1435_v33 = vsub.f32 %v3348_v60, %v3421_v29 }
 0x2e8   : > { %2586 = vpow2.f32 %v1443_v25  ;;  %v1451_v8 = vmul.f32 1.442695, %v1431_v62  ;;  %v1453_v39 = vmul.f32 1.442695, %v1432_v47  ;;  %v1455_v49 = vmul.f32 1.442695, %v1433_v53 }
 0x2e9   : > { %v1368_v20 = vsel %vm1367_vm3, %v2585_v1, %v1364_v21  ;;  %2588 = vpow2.f32 %v1445_v14  ;;  %v1459_v46 = vmul.f32 1.442695, %v1435_v33  ;;  %v934_v14 = vpop.f32.mrf.mxu2  ;;  %v957_v21 = vpop.f32.mrf.mxu3 }
 0x2ea   : > { %v3436_v26 = vsel %vm1370_vm4, %v1372_v48, %v1368_v20  ;;  %2590 = vpow2.f32 %v1447_v36 }
 0x2eb   : > { %v1389_v12 = vmul.f32 %v2583_v63, %v3436_v26  ;;  %v1388_v32 = vmul.f32 %v3399_v23, %v3436_v26  ;;  %v1387_v28 = vmul.f32 %v3393_v5, %v3436_v26  ;;  %2592 = vpow2.f32 %v1449_v40 }
 0x2ec   : > { %v1386_v43 = vmul.f32 %v3390_v34, %v3436_v26  ;;  %v1385_v44 = vmul.f32 %v3387_v27, %v3436_v26  ;;  %v1384_v60 = vmul.f32 %v3384_v7, %v3436_v26  ;;  %v1383_v23 = vmul.f32 %v3379_v24, %v3436_v26 }
 0x2ed   : > { %1549 = vmatpush.msra.mxu3 %v1389_v12  ;;  %v1382_v5 = vmul.f32 %v3372_v42, %v3436_v26  ;;  %v1381_v63 = vmul.f32 %v3357_v11, %v3436_v26  ;;  %2594 = vpow2.f32 %v1451_v8  ;;  %v1380_v27 = vmul.f32 %v3352_v3, %v3436_v26 }
 0x2ee   : > { %v3453_v13 = vpop.eup %2586  ;;  %v1379_v7 = vmul.f32 %v3343_v0, %v3436_v26  ;;  %v1378_v16 = vmul.f32 %v3338_v54, %v3436_v26  ;;  %v3473_v42 = vmul.f32 %v3333_v45, %v3436_v26  ;;  %v3477_v11 = vmul.f32 %v3328_v35, %v3436_v26 }
 0x2ef   : > { %v3461_v34 = vpop.eup %2588  ;;  %1550 = vmatpush.msra.mxu3 %v1388_v32  ;;  %v1436_v0 = vsub.f32 %v3350_v2, %v3421_v29  ;;  %2596 = vpow2.f32 %v1453_v39  ;;  %v1457_v3 = vmul.f32 1.442695, %v1434_v37  ;;  %v1437_v45 = vsub.f32 %v3403_v51, %v3421_v29 }
 0x2f0   : > { %v1475_v24 = vadd.f32 %v3461_v34, %v3453_v13  ;;  %v3479_v58 = vpop.eup %2590  ;;  %2598 = vpow2.f32 %v1455_v49  ;;  %v1438_v2 = vsub.f32 %v3406_v17, %v3421_v29  ;;  %v1439_v51 = vsub.f32 %v3361_v59, %v3421_v29 }
 0x2f1   : > { %1551 = vmatpush.msra.mxu3 %v1387_v28  ;;  %v3484_v22 = vpop.eup %2592  ;;  %2600 = vpow2.f32 %v1457_v3  ;;  %v1461_v1 = vmul.f32 1.442695, %v1436_v0  ;;  %v1463_v10 = vmul.f32 1.442695, %v1437_v45  ;;  %v1440_v17 = vsub.f32 %v3376_v18, %v3421_v29  ;;  %v937_v12 = vpop.f32.mrf.mxu2  ;;  %v2689_v3 = vld [vmem:[%s3103_s11 + $0x10] sm:$0xff] }
 0x2f2   : > { %v1476_v54 = vadd.f32 %v3479_v58, %v1475_v24  ;;  %2602 = vpow2.f32 %v1459_v46  ;;  %v1465_v62 = vmul.f32 1.442695, %v1438_v2  ;;  %v1441_v59 = vsub.f32 %v3410_v56, %v3421_v29  ;;  %v960_v32 = vpop.f32.mrf.mxu3 }
 0x2f3   : > { %1552 = vmatpush.msra.mxu3 %v1386_v43  ;;  %v3489_v41 = vpop.eup %2594  ;;  %2604 = vpow2.f32 %v1461_v1  ;;  %v1467_v53 = vmul.f32 1.442695, %v1439_v51  ;;  %v1442_v18 = vsub.f32 %v3417_v57, %v3421_v29  ;;  %v1469_v55 = vmul.f32 1.442695, %v1440_v17 }
 0x2f4   : > { %v1477_v35 = vadd.f32 %v3484_v22, %v1476_v54  ;;  %2606 = vpow2.f32 %v1463_v10  ;;  %v1471_v56 = vmul.f32 1.442695, %v1441_v59  ;;  %v1375_v43 = vmul.f32 %v3322_v30, %v3436_v26 }
 0x2f5   : > { %1553 = vmatpush.msra.mxu3 %v1385_v44  ;;  %v3494_v61 = vpop.eup %2596  ;;  %2608 = vpow2.f32 %v1465_v62  ;;  %v1473_v40 = vmul.f32 1.442695, %v1442_v18  ;;  %v1374_v49 = vmul.f32 %v3320_v4, %v3436_v26 }
 0x2f6   : > { %v1478_v52 = vadd.f32 %v3489_v41, %v1477_v35  ;;  %v3499_v31 = vpop.eup %2598  ;;  %2610 = vpow2.f32 %v1467_v53 }
 0x2f7   : > { %1554 = vmatpush.msra.mxu3 %v1384_v60  ;;  %v3504_v38 = vpop.eup %2600  ;;  %2612 = vpow2.f32 %v1469_v55 }
 0x2f8   : > { %v1479_v9 = vadd.f32 %v3494_v61, %v1478_v52  ;;  %v3509_v19 = vpop.eup %2602  ;;  %2614 = vpow2.f32 %v1471_v56 }
 0x2f9   : > { %1555 = vmatpush.msra.mxu3 %v1383_v23  ;;  %v3514_v36 = vpop.eup %2604  ;;  %2616 = vpow2.f32 %v1473_v40  ;;  %v961_v23 = vadd.f32 %v960_v32, %v937_v12 }
 0x2fa   : > { %v1480_v47 = vadd.f32 %v3499_v31, %v1479_v9  ;;  %v3517_v20 = vpop.eup %2606 }
 0x2fb   : > { %1556 = vmatpush.msra.mxu3 %v1382_v5  ;;  %v2609_v29 = vpop.eup %2608  ;;  %v1737_v5 = vpop.trf.xlu0 }
 0x2fc   : > { %v1481_v50 = vadd.f32 %v3504_v38, %v1480_v47  ;;  %v2611_v33 = vpop.eup %2610 }
 0x2fd   : > { %1557 = vmatpush.msra.mxu3 %v1381_v63  ;;  %v2613_v39 = vpop.eup %2612 }
 0x2fe   : > { %v1482_v25 = vadd.f32 %v3509_v19, %v1481_v50  ;;  %v2615_v44 = vpop.eup %2614 }
 0x2ff   : > { %1558 = vmatpush.msra.mxu3 %v1380_v27  ;;  %v2617_v63 = vpop.eup %2616 }
 0x300   : > { %v1483_v48 = vadd.f32 %v3514_v36, %v1482_v25 }
 0x301   : > { %1559 = vmatpush.msra.mxu3 %v1379_v7  ;;  %v958_v7 = vadd.f32 %v957_v21, %v934_v14 }
 0x302   : > { %v1484_v57 = vadd.f32 %v3517_v20, %v1483_v48 }
 0x303   : > { %1560 = vmatpush.msra.mxu3 %v1378_v16  ;;  %v2688_v16 = vld [vmem:[%s3103_s11] sm:$0xff] }
 0x304   : > { %v1485_v37 = vadd.f32 %v2609_v29, %v1484_v57 }
 0x305   : > { %1561 = vmatpush.msra.mxu3 %v3473_v42 }
 0x306   : > { %v1486_v8 = vadd.f32 %v2611_v33, %v1485_v37 }
 0x307   : > { %1562 = vmatpush.msra.mxu3 %v3477_v11  ;;  %v1738_v11 = vpop.trf.xlu0 }
 0x308   : > { %v1487_v28 = vadd.f32 %v2613_v39, %v1486_v8 }
 0x309   : > { %1563 = vmatpush.msra.mxu3 %v1375_v43 }
 0x30a   : > { %v1488_v60 = vadd.f32 %v2615_v44, %v1487_v28 }
 0x30b   : > { %1564 = vmatpush.msra.mxu3 %v1374_v49 }
 0x30c   : > { %v1489_v27 = vadd.f32 %v2617_v63, %v1488_v60  ;;  %1565 = vmatmul.f32.vlgmr.msra.gmra.mxu3 %v2688_v16 }
 0x30d   : > { %1815 = vmatpush.msrb.mxu3 %v961_v23 }
 0x30e   : > { %v1490_v24 = vrot.slane %v1489_v27, 4 }
 0x30f   : > { %1816 = vmatpush.msrb.mxu3 %v958_v7  ;;  %v1739_v26 = vpop.trf.xlu0 }
 0x310   : > { %v1491_v42 = vadd.f32 %v1490_v24, %v1489_v27 }
 0x312   : > { %v1492_v30 = vrot.slane %v1491_v42, 2 }
 0x314   : > { %v1493_v0 = vadd.f32 %v1492_v30, %v1491_v42  ;;  %1568 = vmatmul.f32.gmra.mxu3 %v2689_v3 }
 0x316   : > { %v1494_v54 = vrot.slane %v1493_v0, 1 }
 0x317   : > { %v1740_v35 = vpop.trf.xlu0 }
 0x318   : > { %v1495_v4 = vadd.f32 %v1494_v54, %v1493_v0 }
 0x31a   : > { %2618 = vrcp.f32 %v1495_v4  ;;  %v1507_v1 = vand.u32 2147483648, %v1495_v4  ;;  %v1505_v51 = vand.u32 2147483647, %v1495_v4  ;;  %vm1501_vm6 = vweird.f32 %v1495_v4 }
 0x31c   : > { %2440 = vmatmul.msk.f32.vlgmr.msrb.gmra.mxu3 %vm995_vm0, %v1737_v5  ;;  %v1508_v9 = vor.u32 1.1754944e-38, %v1507_v1  ;;  %vm1506_vm8 = vcmp.eq.f32.partialorder %v1505_v51, 8.507059e+37 }
 0x31f   : > { %v1741_v47 = vpop.trf.xlu0 }
 0x320   : > { %v2619_v45 = vpop.eup %2618 }
 0x321   : > { %v1497_v46 = vmul.f32 %v2619_v45, %v1495_v4  ;;  %vm1502_vm5 = vweird.f32 %v2619_v45 }
 0x322   : > { %vm1503_vm7 = vmor %vm1501_vm6, %vm1502_vm5 }
 0x323   : > { %v1498_v2 = vsub.f32 1.0, %v1497_v46 }
 0x324   : > { %2441 = vmatmul.msk.f32.gmra.mxu3 %vm995_vm0, %v1738_v11 }
 0x325   : > { %v1499_v52 = vmul.f32 %v2619_v45, %v1498_v2 }
 0x327   : > { %v1500_v10 = vadd.f32 %v2619_v45, %v1499_v52 }
 0x329   : > { %v1504_v17 = vsel %vm1503_vm7, %v2619_v45, %v1500_v10 }
 0x32a   : > { %v1509_v62 = vsel %vm1506_vm8, %v1508_v9, %v1504_v17 }
 0x32b   : > { %v1525_v59 = vmul.f32 %v2617_v63, %v1509_v62  ;;  %v1524_v53 = vmul.f32 %v2615_v44, %v1509_v62  ;;  %v1523_v50 = vmul.f32 %v2613_v39, %v1509_v62  ;;  %v1522_v18 = vmul.f32 %v2611_v33, %v1509_v62 }
 0x32c   : > { %v1521_v55 = vmul.f32 %v2609_v29, %v1509_v62  ;;  %v1520_v25 = vmul.f32 %v3517_v20, %v1509_v62  ;;  %v1519_v14 = vmul.f32 %v3514_v36, %v1509_v62  ;;  %v1518_v21 = vmul.f32 %v3509_v19, %v1509_v62  ;;  %2442 = vmatmul.msk.f32.gmra.mxu3 %vm995_vm0, %v1739_v26  ;;  %v1742_v36 = vpop.trf.xlu0 }
 0x32d   : > { %1526 = vmatpush.msra.mxu2 %v1525_v59  ;;  %v1517_v56 = vmul.f32 %v3504_v38, %v1509_v62  ;;  %v1516_v48 = vmul.f32 %v3499_v31, %v1509_v62  ;;  %v1515_v40 = vmul.f32 %v3494_v61, %v1509_v62  ;;  %v1514_v57 = vmul.f32 %v3489_v41, %v1509_v62  ;;  %v1592_v41 = vpop.trf.xlu2  ;;  %v2691_v38 = vld [vmem:[%s3095_s23 + $0x10] sm:$0xff] }
 0x32e   : > { %v1513_v37 = vmul.f32 %v3484_v22, %v1509_v62  ;;  %v1512_v29 = vmul.f32 %v3479_v58, %v1509_v62  ;;  %v1511_v20 = vmul.f32 %v3461_v34, %v1509_v62  ;;  %v1510_v19 = vmul.f32 %v3453_v13, %v1509_v62  ;;  %v2690_v58 = vld [vmem:[%s3095_s23] sm:$0xff] }
 0x32f   : > { %1527 = vmatpush.msra.mxu2 %v1524_v53 }
 0x331   : > { %1528 = vmatpush.msra.mxu2 %v1523_v50 }
 0x333   : > { %1529 = vmatpush.msra.mxu2 %v1522_v18 }
 0x334   : > { %2443 = vmatmul.msk.f32.gmra.mxu3 %vm995_vm0, %v1740_v35  ;;  %v1743_v61 = vpop.trf.xlu0 }
 0x335   : > { %1530 = vmatpush.msra.mxu2 %v1521_v55  ;;  %v1593_v13 = vpop.trf.xlu2 }
 0x337   : > { %1531 = vmatpush.msra.mxu2 %v1520_v25 }
 0x339   : > { %1532 = vmatpush.msra.mxu2 %v1519_v14 }
 0x33b   : > { %1533 = vmatpush.msra.mxu2 %v1518_v21 }
 0x33c   : > { %2444 = vmatmul.msk.f32.gmra.mxu3 %vm995_vm0, %v1741_v47  ;;  %v1744_v34 = vpop.trf.xlu0 }
 0x33d   : > { %1534 = vmatpush.msra.mxu2 %v1517_v56  ;;  %v1594_v31 = vpop.trf.xlu2 }
 0x33f   : > { %1535 = vmatpush.msra.mxu2 %v1516_v48 }
 0x341   : > { %1536 = vmatpush.msra.mxu2 %v1515_v40 }
 0x343   : > { %1537 = vmatpush.msra.mxu2 %v1514_v57 }
 0x344   : > { %2445 = vmatmul.msk.f32.gmra.mxu3 %vm995_vm0, %v1742_v36  ;;  %v1745_v22 = vpop.trf.xlu0 }
 0x345   : > { %1538 = vmatpush.msra.mxu2 %v1513_v37  ;;  %v1595_v8 = vpop.trf.xlu2 }
 0x347   : > { %1539 = vmatpush.msra.mxu2 %v1512_v29 }
 0x349   : > { %1540 = vmatpush.msra.mxu2 %v1511_v20 }
 0x34b   : > { %1541 = vmatpush.msra.mxu2 %v1510_v19 }
 0x34c   : > { %1542 = vmatmul.f32.vlgmr.msra.gmra.mxu2 %v2690_v58  ;;  %2446 = vmatmul.msk.f32.gmra.mxu3 %vm995_vm0, %v1743_v61  ;;  %v1746_v33 = vpop.trf.xlu0 }
 0x34d   : > { %1670 = vmatpush.msrb.mxu2 %v3230_v15  ;;  %v1596_v12 = vpop.trf.xlu2 }
 0x34f   : > { %1671 = vmatpush.msrb.mxu2 %v3221_v6 }
 0x354   : > { %1545 = vmatmul.f32.gmra.mxu2 %v2691_v38  ;;  %2447 = vmatmul.msk.f32.gmra.mxu3 %vm995_vm0, %v1744_v34  ;;  %v1747_v39 = vpop.trf.xlu0 }
 0x355   : > { %v1597_v6 = vpop.trf.xlu2 }
 0x35c   : > { %2424 = vmatmul.msk.f32.vlgmr.msrb.gmra.mxu2 %vm995_vm0, %v1592_v41  ;;  %2448 = vmatmul.msk.f32.gmra.mxu3 %vm995_vm0, %v1745_v22  ;;  %v1748_v15 = vpop.trf.xlu0 }
 0x35d   : > { %v1598_v28 = vpop.trf.xlu2 }
 0x364   : > { %2425 = vmatmul.msk.f32.gmra.mxu2 %vm995_vm0, %v1593_v13  ;;  %2449 = vmatmul.msk.f32.gmra.mxu3 %vm995_vm0, %v1746_v33  ;;  %v1749_v32 = vpop.trf.xlu0 }
 0x365   : > { %v1599_v44 = vpop.trf.xlu2 }
 0x36c   : > { %2426 = vmatmul.msk.f32.gmra.mxu2 %vm995_vm0, %v1594_v31  ;;  %2450 = vmatmul.msk.f32.gmra.mxu3 %vm995_vm0, %v1747_v39  ;;  %v1750_v43 = vpop.trf.xlu0 }
 0x36d   : > { %v1600_v49 = vpop.trf.xlu2 }
 0x374   : > { %2427 = vmatmul.msk.f32.gmra.mxu2 %vm995_vm0, %v1595_v8  ;;  %2451 = vmatmul.msk.f32.gmra.mxu3 %vm995_vm0, %v1748_v15  ;;  %v1751_v60 = vpop.trf.xlu0 }
 0x375   : > { %v1601_v63 = vpop.trf.xlu2 }
 0x37c   : > { %2428 = vmatmul.msk.f32.gmra.mxu2 %vm995_vm0, %v1596_v12  ;;  %2452 = vmatmul.msk.f32.gmra.mxu3 %vm995_vm0, %v1749_v32  ;;  %v1752_v5 = vpop.trf.xlu0 }
 0x37d   : > { %v1602_v7 = vpop.trf.xlu2 }
 0x384   : > { %2429 = vmatmul.msk.f32.gmra.mxu2 %vm995_vm0, %v1597_v6  ;;  %2453 = vmatmul.msk.f32.gmra.mxu3 %vm995_vm0, %v1750_v43 }
 0x385   : > { %v1603_v42 = vpop.trf.xlu2 }
 0x38c   : > { %2430 = vmatmul.msk.f32.gmra.mxu2 %vm995_vm0, %v1598_v28  ;;  %2454 = vmatmul.msk.f32.gmra.mxu3 %vm995_vm0, %v1751_v60 }
 0x38d   : > { %v1604_v11 = vpop.trf.xlu2 }
 0x38f   : > { %v1566_v23 = vpop.f32.mrf.mxu3 }
 0x390   : > { %1574 = vst [vmem:[%s3566_s24] sm:$0xff] %v1566_v23 }
 0x394   : > { %2431 = vmatmul.msk.f32.gmra.mxu2 %vm995_vm0, %v1599_v44  ;;  %2455 = vmatmul.msk.f32.gmra.mxu3 %vm995_vm0, %v1752_v5 }
 0x395   : > { %v1605_v3 = vpop.trf.xlu2 }
 0x397   : > { %v1569_v27 = vpop.f32.mrf.mxu3 }
 0x398   : > { %1575 = vst [vmem:[%s3566_s24 + $0x10] sm:$0xff] %v1569_v27 }
 0x39c   : > { %2432 = vmatmul.msk.f32.gmra.mxu2 %vm995_vm0, %v1600_v49 }
 0x39d   : > { %v1606_v35 = vpop.trf.xlu2 }
 0x39f   : > { %v1818_v16 = vpop.f32.mrf.mxu3 }
 0x3a0   : > { %v3577_v54 = vmul.f32 0.088388346, %v1818_v16 }
 0x3a4   : > { %2433 = vmatmul.msk.f32.gmra.mxu2 %vm995_vm0, %v1601_v63 }
 0x3a5   : > { %v1607_v62 = vpop.trf.xlu2 }
 0x3a7   : > { %v1821_v24 = vpop.f32.mrf.mxu3 }
 0x3a8   : > { %v3584_v46 = vmul.f32 0.088388346, %v1821_v24 }
 0x3ac   : > { %2434 = vmatmul.msk.f32.gmra.mxu2 %vm995_vm0, %v1602_v7 }
 0x3af   : > { %v1824_v30 = vpop.f32.mrf.mxu3 }
 0x3b0   : > { %v3591_v51 = vmul.f32 0.088388346, %v1824_v30 }
 0x3b4   : > { %2435 = vmatmul.msk.f32.gmra.mxu2 %vm995_vm0, %v1603_v42 }
 0x3b7   : > { %v1827_v0 = vpop.f32.mrf.mxu3 }
 0x3b8   : > { %v2005_v43 = vmul.f32 0.088388346, %v1827_v0 }
 0x3bc   : > { %2436 = vmatmul.msk.f32.gmra.mxu2 %vm995_vm0, %v1604_v11 }
 0x3bf   : > { %v1830_v4 = vpop.f32.mrf.mxu3 }
 0x3c0   : > { %v3579_v26 = vmul.f32 0.088388346, %v1830_v4 }
 0x3c2   : > { %v2018_v45 = vmax.f32 %v3577_v54, %v3579_v26 }
 0x3c4   : > { %2437 = vmatmul.msk.f32.gmra.mxu2 %vm995_vm0, %v1605_v3 }
 0x3c7   : > { %v1833_v2 = vpop.f32.mrf.mxu3 }
 0x3c8   : > { %v3586_v1 = vmul.f32 0.088388346, %v1833_v2 }
 0x3ca   : > { %v2019_v52 = vmax.f32 %v3584_v46, %v3586_v1 }
 0x3cc   : > { %2438 = vmatmul.msk.f32.gmra.mxu2 %vm995_vm0, %v1606_v35 }
 0x3cf   : > { %v1543_v10 = vpop.f32.mrf.mxu2  ;;  %v1836_v9 = vpop.f32.mrf.mxu3 }
 0x3d0   : > { %1572 = vst [vmem:[%s3594_s26] sm:$0xff] %v1543_v10  ;;  %v3597_v17 = vmul.f32 0.088388346, %v1836_v9 }
 0x3d2   : > { %v2020_v47 = vmax.f32 %v3591_v51, %v3597_v17 }
 0x3d4   : > { %2439 = vmatmul.msk.f32.gmra.mxu2 %vm995_vm0, %v1607_v62 }
 0x3d7   : > { %v1546_v59 = vpop.f32.mrf.mxu2  ;;  %v1839_v53 = vpop.f32.mrf.mxu3 }
 0x3d8   : > { %1573 = vst [vmem:[%s3594_s26 + $0x10] sm:$0xff] %v1546_v59  ;;  %v2009_v44 = vmul.f32 0.088388346, %v1839_v53 }
 0x3da   : > { %v2021_v49 = vmax.f32 %v2005_v43, %v2009_v44 }
 0x3df   : > { %v1673_v50 = vpop.f32.mrf.mxu2  ;;  %v1842_v18 = vpop.f32.mrf.mxu3 }
 0x3e0   : > { %v3605_v57 = vmul.f32 0.088388346, %v1673_v50  ;;  %v3611_v19 = vmul.f32 0.088388346, %v1842_v18 }
 0x3e2   : > { %v2022_v22 = vmax.f32 %v2018_v45, %v3611_v19 }
 0x3e7   : > { %v1676_v55 = vpop.f32.mrf.mxu2  ;;  %v1845_v25 = vpop.f32.mrf.mxu3 }
 0x3e8   : > { %v3613_v36 = vmul.f32 0.088388346, %v1845_v25  ;;  %v3617_v34 = vmul.f32 0.088388346, %v1676_v55 }
 0x3ea   : > { %v2023_v31 = vmax.f32 %v2019_v52, %v3613_v36 }
 0x3ef   : > { %v1679_v14 = vpop.f32.mrf.mxu2  ;;  %v1848_v21 = vpop.f32.mrf.mxu3 }
 0x3f0   : > { %v3629_v6 = vmul.f32 0.088388346, %v1679_v14  ;;  %v3635_v23 = vmul.f32 0.088388346, %v1848_v21 }
 0x3f2   : > { %v2024_v16 = vmax.f32 %v2020_v47, %v3635_v23 }
 0x3f7   : > { %v3603_v56 = vpop.f32.mrf.mxu2  ;;  %v1851_v48 = vpop.f32.mrf.mxu3 }
 0x3f8   : > { %v3637_v5 = vmul.f32 0.088388346, %v1851_v48 }
 0x3fa   : > { %v2025_v24 = vmax.f32 %v2021_v49, %v3637_v5 }
 0x3ff   : > { %v1685_v40 = vpop.f32.mrf.mxu2  ;;  %v1854_v29 = vpop.f32.mrf.mxu3 }
 0x400   : > { %v3607_v37 = vmul.f32 0.088388346, %v1685_v40  ;;  %v3615_v61 = vmul.f32 0.088388346, %v1854_v29 }
 0x402   : > { %v1882_v20 = vmax.f32 %v3605_v57, %v3607_v37  ;;  %v2026_v8 = vmax.f32 %v2022_v22, %v3615_v61 }
 0x407   : > { %v1688_v41 = vpop.f32.mrf.mxu2  ;;  %v1857_v58 = vpop.f32.mrf.mxu3 }
 0x408   : > { %v3619_v13 = vmul.f32 0.088388346, %v1688_v41  ;;  %v3623_v38 = vmul.f32 0.088388346, %v1857_v58 }
 0x40a   : > { %v1883_v33 = vmax.f32 %v3617_v34, %v3619_v13  ;;  %v2027_v39 = vmax.f32 %v2023_v31, %v3623_v38 }
 0x40c   : > { %v2030_v12 = vmax.f32 %v2026_v8, %v2027_v39 }
 0x40f   : > { %v1691_v15 = vpop.f32.mrf.mxu2  ;;  %v1860_v28 = vpop.f32.mrf.mxu3 }
 0x410   : > { %v3631_v32 = vmul.f32 0.088388346, %v1691_v15  ;;  %v3639_v63 = vmul.f32 0.088388346, %v1860_v28 }
 0x412   : > { %v1884_v60 = vmax.f32 %v3629_v6, %v3631_v32  ;;  %v2028_v30 = vmax.f32 %v2024_v16, %v3639_v63 }
 0x417   : > { %v3641_v27 = vpop.f32.mrf.mxu2  ;;  %v1863_v7 = vpop.f32.mrf.mxu3 }
 0x418   : > { %v3645_v42 = vmul.f32 0.088388346, %v1863_v7 }
 0x41a   : > { %v2029_v11 = vmax.f32 %v2025_v24, %v3645_v42 }
 0x41c   : > { %v2031_v0 = vmax.f32 %v2028_v30, %v2029_v11 }
 0x41e   : > { %v2032_v3 = vmax.f32 %v2030_v12, %v2031_v0 }
 0x41f   : > { %v1697_v4 = vpop.f32.mrf.mxu2 }
 0x420   : > { %v2033_v45 = vrot.slane %v2032_v3, 4  ;;  %v3697_v0 = vmul.f32 0.088388346, %v1697_v4 }
 0x422   : > { %v2034_v35 = vmax.f32 %v2032_v3, %v2033_v45 }
 0x424   : > { %v2035_v2 = vrot.slane %v2034_v35, 2 }
 0x426   : > { %v2036_v52 = vmax.f32 %v2034_v35, %v2035_v2 }
 0x427   : > { %v1700_v10 = vpop.f32.mrf.mxu2 }
 0x428   : > { %v2037_v9 = vrot.slane %v2036_v52, 1  ;;  %v3699_v3 = vmul.f32 0.088388346, %v1700_v10 }
 0x42a   : > { %v3649_v62 = vmax.f32 %v2036_v52, %v2037_v9 }
 0x42c   : > { %v2039_v47 = vsub.f32 %v3577_v54, %v3649_v62  ;;  %v2040_v59 = vsub.f32 %v3584_v46, %v3649_v62  ;;  %v2041_v53 = vsub.f32 %v3591_v51, %v3649_v62  ;;  %v2042_v50 = vsub.f32 %v2005_v43, %v3649_v62 }
 0x42d   : > { %v2043_v18 = vsub.f32 %v3579_v26, %v3649_v62  ;;  %v2044_v55 = vsub.f32 %v3586_v1, %v3649_v62  ;;  %v2045_v25 = vsub.f32 %v3597_v17, %v3649_v62  ;;  %v2046_v26 = vsub.f32 %v2009_v44, %v3649_v62 }
 0x42e   : > { %v2055_v54 = vmul.f32 1.442695, %v2039_v47  ;;  %v2057_v21 = vmul.f32 1.442695, %v2040_v59  ;;  %v2059_v48 = vmul.f32 1.442695, %v2041_v53  ;;  %v2047_v17 = vsub.f32 %v3611_v19, %v3649_v62 }
 0x42f   : > { %v3664_v14 = vpop.f32.mrf.mxu2  ;;  %v2061_v46 = vmul.f32 1.442695, %v2042_v50  ;;  %v2063_v51 = vmul.f32 1.442695, %v2043_v18  ;;  %v2065_v29 = vmul.f32 1.442695, %v2044_v55  ;;  %v2048_v8 = vsub.f32 %v3613_v36, %v3649_v62 }
 0x430   : > { %2620 = vpow2.f32 %v2055_v54  ;;  %v2067_v58 = vmul.f32 1.442695, %v2045_v25  ;;  %v2069_v39 = vmul.f32 1.442695, %v2046_v26  ;;  %v2049_v28 = vsub.f32 %v3635_v23, %v3649_v62 }
 0x431   : > { %2622 = vpow2.f32 %v2057_v21  ;;  %v2071_v19 = vmul.f32 1.442695, %v2047_v17  ;;  %v2050_v7 = vsub.f32 %v3637_v5, %v3649_v62  ;;  %v2073_v36 = vmul.f32 1.442695, %v2048_v8 }
 0x432   : > { %2624 = vpow2.f32 %v2059_v48  ;;  %v2051_v30 = vsub.f32 %v3615_v61, %v3649_v62  ;;  %v2075_v23 = vmul.f32 1.442695, %v2049_v28  ;;  %v2052_v5 = vsub.f32 %v3623_v38, %v3649_v62 }
 0x433   : > { %2626 = vpow2.f32 %v2061_v46  ;;  %v2077_v35 = vmul.f32 1.442695, %v2050_v7  ;;  %v2053_v61 = vsub.f32 %v3639_v63, %v3649_v62  ;;  %v1886_v38 = vmax.f32 %v1882_v20, %v3697_v0 }
 0x434   : > { %2628 = vpow2.f32 %v2063_v51  ;;  %v2079_v9 = vmul.f32 1.442695, %v2051_v30  ;;  %v1887_v47 = vmax.f32 %v1883_v33, %v3699_v3  ;;  %v2054_v63 = vsub.f32 %v3645_v42, %v3649_v62 }
 0x435   : > { %2630 = vpow2.f32 %v2065_v29  ;;  %v2081_v50 = vmul.f32 1.442695, %v2052_v5  ;;  %v2083_v20 = vmul.f32 1.442695, %v2053_v61  ;;  %v3745_v8 = vmul.f32 0.088388346, %v3641_v27 }
 0x436   : > { %v3669_v1 = vpop.eup %2620  ;;  %2632 = vpow2.f32 %v2067_v58  ;;  %v2085_v42 = vmul.f32 1.442695, %v2054_v63  ;;  %v1869_v28 = vmul.f32 0.088388346, %v3603_v56 }
 0x437   : > { %v3666_v40 = vpop.f32.mrf.mxu2  ;;  %v3671_v41 = vpop.eup %2622  ;;  %2634 = vpow2.f32 %v2069_v39 }
 0x438   : > { %v2087_v22 = vadd.f32 %v3671_v41, %v3669_v1  ;;  %v3677_v31 = vpop.eup %2624  ;;  %2636 = vpow2.f32 %v2071_v19  ;;  %v3752_v19 = vmul.f32 0.088388346, %v3664_v14 }
 0x439   : > { %v3682_v15 = vpop.eup %2626  ;;  %2638 = vpow2.f32 %v2073_v36  ;;  %v1885_v36 = vmax.f32 %v1869_v28, %v3745_v8 }
 0x43a   : > { %v2088_v12 = vadd.f32 %v3677_v31, %v2087_v22  ;;  %v3687_v49 = vpop.eup %2628  ;;  %2640 = vpow2.f32 %v2075_v23  ;;  %v1888_v56 = vmax.f32 %v1884_v60, %v3752_v19 }
 0x43b   : > { %v3692_v24 = vpop.eup %2630  ;;  %2642 = vpow2.f32 %v2077_v35 }
 0x43c   : > { %v2089_v43 = vadd.f32 %v3682_v15, %v2088_v12  ;;  %v3701_v45 = vpop.eup %2632  ;;  %2644 = vpow2.f32 %v2079_v9 }
 0x43d   : > { %v3706_v52 = vpop.eup %2634  ;;  %2646 = vpow2.f32 %v2081_v50 }
 0x43e   : > { %v2090_v16 = vadd.f32 %v3687_v49, %v2089_v43  ;;  %v3721_v53 = vpop.eup %2636  ;;  %2648 = vpow2.f32 %v2083_v20  ;;  %v3755_v43 = vmul.f32 0.088388346, %v3666_v40 }
 0x43f   : > { %v1709_v44 = vpop.f32.mrf.mxu2  ;;  %v3728_v25 = vpop.eup %2638  ;;  %2650 = vpow2.f32 %v2085_v42 }
 0x440   : > { %v2091_v11 = vadd.f32 %v3692_v24, %v2090_v16  ;;  %v3710_v4 = vmul.f32 0.088388346, %v1709_v44  ;;  %v3733_v48 = vpop.eup %2640  ;;  %v1889_v14 = vmax.f32 %v1885_v36, %v3755_v43 }
 0x441   : > { %v3736_v51 = vpop.eup %2642 }
 0x442   : > { %v2092_v2 = vadd.f32 %v3701_v45, %v2091_v11  ;;  %v1890_v54 = vmax.f32 %v1886_v38, %v3710_v4  ;;  %v3739_v17 = vpop.eup %2644 }
 0x443   : > { %v3742_v22 = vpop.eup %2646 }
 0x444   : > { %v2093_v10 = vadd.f32 %v3706_v52, %v2092_v2  ;;  %v3748_v12 = vpop.eup %2648 }
 0x445   : > { %v2651_v7 = vpop.eup %2650 }
 0x446   : > { %v2094_v55 = vadd.f32 %v3721_v53, %v2093_v10 }
 0x447   : > { %v1712_v59 = vpop.f32.mrf.mxu2 }
 0x448   : > { %v3725_v18 = vmul.f32 0.088388346, %v1712_v59  ;;  %v2095_v21 = vadd.f32 %v3728_v25, %v2094_v55 }
 0x44a   : > { %v1891_v33 = vmax.f32 %v1887_v47, %v3725_v18  ;;  %v2096_v46 = vadd.f32 %v3733_v48, %v2095_v21 }
 0x44c   : > { %v1894_v62 = vmax.f32 %v1890_v54, %v1891_v33  ;;  %v2097_v26 = vadd.f32 %v3736_v51, %v2096_v46 }
 0x44e   : > { %v2098_v58 = vadd.f32 %v3739_v17, %v2097_v26 }
 0x44f   : > { %v1715_v29 = vpop.f32.mrf.mxu2 }
 0x450   : > { %v2099_v39 = vadd.f32 %v3742_v22, %v2098_v58  ;;  %v3759_v16 = vmul.f32 0.088388346, %v1715_v29 }
 0x452   : > { %v2100_v44 = vadd.f32 %v3748_v12, %v2099_v39  ;;  %v1892_v11 = vmax.f32 %v1888_v56, %v3759_v16 }
 0x454   : > { %v2101_v27 = vadd.f32 %v2651_v7, %v2100_v44 }
 0x456   : > { %v2102_v40 = vrot.slane %v2101_v27, 4 }
 0x457   : > { %v1718_v30 = vpop.f32.mrf.mxu2 }
 0x458   : > { %v3766_v23 = vmul.f32 0.088388346, %v1718_v30  ;;  %v2103_v35 = vadd.f32 %v2102_v40, %v2101_v27 }
 0x45a   : > { %v1893_v5 = vmax.f32 %v1889_v14, %v3766_v23  ;;  %v2104_v61 = vrot.slane %v2103_v35, 2 }
 0x45c   : > { %v1895_v2 = vmax.f32 %v1892_v11, %v1893_v5  ;;  %v2105_v10 = vadd.f32 %v2104_v61, %v2103_v35 }
 0x45e   : > { %v1896_v9 = vmax.f32 %v1894_v62, %v1895_v2  ;;  %v2106_v47 = vrot.slane %v2105_v10, 1 }
 0x460   : > { %v1897_v38 = vrot.slane %v1896_v9, 4  ;;  %v2107_v63 = vadd.f32 %v2106_v47, %v2105_v10 }
 0x462   : > { %v1898_v59 = vmax.f32 %v1896_v9, %v1897_v38  ;;  %2652 = vrcp.f32 %v2107_v63  ;;  %v2119_v44 = vand.u32 2147483648, %v2107_v63  ;;  %v2117_v36 = vand.u32 2147483647, %v2107_v63 }
 0x463   : > { %vm2113_vm10 = vweird.f32 %v2107_v63 }
 0x464   : > { %v1899_v50 = vrot.slane %v1898_v59, 2  ;;  %vm2118_vm12 = vcmp.eq.f32.partialorder %v2117_v36, 8.507059e+37 }
 0x466   : > { %v1900_v60 = vmax.f32 %v1898_v59, %v1899_v50 }
 0x468   : > { %v1901_v55 = vrot.slane %v1900_v60, 1  ;;  %v2653_v54 = vpop.eup %2652 }
 0x469   : > { %v2109_v33 = vmul.f32 %v2653_v54, %v2107_v63  ;;  %vm2114_vm9 = vweird.f32 %v2653_v54 }
 0x46a   : > { %v3770_v20 = vmax.f32 %v1900_v60, %v1901_v55  ;;  %vm2115_vm11 = vmor %vm2113_vm10, %vm2114_vm9 }
 0x46b   : > { %v2110_v58 = vsub.f32 1.0, %v2109_v33 }
 0x46c   : > { %v1903_v21 = vsub.f32 %v3605_v57, %v3770_v20  ;;  %v1904_v42 = vsub.f32 %v3617_v34, %v3770_v20  ;;  %v1905_v62 = vsub.f32 %v3629_v6, %v3770_v20  ;;  %v1906_v46 = vsub.f32 %v1869_v28, %v3770_v20 }
 0x46d   : > { %v1907_v26 = vsub.f32 %v3607_v37, %v3770_v20  ;;  %v1908_v29 = vsub.f32 %v3619_v13, %v3770_v20  ;;  %v1909_v39 = vsub.f32 %v3631_v32, %v3770_v20  ;;  %v2111_v57 = vmul.f32 %v2653_v54, %v2110_v58 }
 0x46e   : > { %v1919_v34 = vmul.f32 1.442695, %v1903_v21  ;;  %v1921_v27 = vmul.f32 1.442695, %v1904_v42  ;;  %v1923_v6 = vmul.f32 1.442695, %v1905_v62  ;;  %v1910_v32 = vsub.f32 %v3745_v8, %v3770_v20 }
 0x46f   : > { %v2112_v30 = vadd.f32 %v2653_v54, %v2111_v57  ;;  %v2120_v28 = vor.u32 1.1754944e-38, %v2119_v44  ;;  %v1925_v13 = vmul.f32 1.442695, %v1906_v46  ;;  %v1911_v14 = vsub.f32 %v3697_v0, %v3770_v20 }
 0x470   : > { %2654 = vpow2.f32 %v1919_v34  ;;  %v1927_v40 = vmul.f32 1.442695, %v1907_v26  ;;  %v1929_v11 = vmul.f32 1.442695, %v1908_v29  ;;  %v1931_v10 = vmul.f32 1.442695, %v1909_v39 }
 0x471   : > { %v2116_v37 = vsel %vm2115_vm11, %v2653_v54, %v2112_v30  ;;  %2656 = vpow2.f32 %v1921_v27  ;;  %v1913_v63 = vsub.f32 %v3752_v19, %v3770_v20  ;;  %v1915_v19 = vsub.f32 %v3710_v4, %v3770_v20 }
 0x472   : > { %v3785_v56 = vsel %vm2118_vm12, %v2120_v28, %v2116_v37  ;;  %2658 = vpow2.f32 %v1923_v6  ;;  %v1917_v4 = vsub.f32 %v3759_v16, %v3770_v20 }
 0x473   : > { %v2137_v5 = vmul.f32 %v2651_v7, %v3785_v56  ;;  %v2136_v35 = vmul.f32 %v3748_v12, %v3785_v56  ;;  %v2135_v2 = vmul.f32 %v3742_v22, %v3785_v56  ;;  %2660 = vpow2.f32 %v1925_v13 }
 0x474   : > { %v2134_v61 = vmul.f32 %v3739_v17, %v3785_v56  ;;  %v2133_v8 = vmul.f32 %v3736_v51, %v3785_v56  ;;  %v2132_v0 = vmul.f32 %v3733_v48, %v3785_v56  ;;  %v2131_v12 = vmul.f32 %v3728_v25, %v3785_v56 }
 0x475   : > { %2138 = vmatpush.msrb.mxu0 %v2137_v5  ;;  %v2130_v22 = vmul.f32 %v3721_v53, %v3785_v56  ;;  %v2129_v7 = vmul.f32 %v3706_v52, %v3785_v56  ;;  %2662 = vpow2.f32 %v1927_v40  ;;  %v2128_v51 = vmul.f32 %v3701_v45, %v3785_v56 }
 0x476   : > { %v3802_v9 = vpop.eup %2654  ;;  %v2127_v48 = vmul.f32 %v3692_v24, %v3785_v56  ;;  %v2126_v38 = vmul.f32 %v3687_v49, %v3785_v56  ;;  %v2125_v53 = vmul.f32 %v3682_v15, %v3785_v56  ;;  %v3824_v52 = vmul.f32 %v3677_v31, %v3785_v56 }
 0x477   : > { %v3810_v17 = vpop.eup %2656  ;;  %2139 = vmatpush.msrb.mxu0 %v2136_v35  ;;  %v1912_v45 = vsub.f32 %v3699_v3, %v3770_v20  ;;  %2664 = vpow2.f32 %v1929_v11  ;;  %v1933_v24 = vmul.f32 1.442695, %v1910_v32  ;;  %v1935_v15 = vmul.f32 1.442695, %v1911_v14 }
 0x478   : > { %v1951_v25 = vadd.f32 %v3810_v17, %v3802_v9  ;;  %v3826_v47 = vpop.eup %2658  ;;  %2666 = vpow2.f32 %v1931_v10  ;;  %v1914_v3 = vsub.f32 %v3755_v43, %v3770_v20  ;;  %v1939_v33 = vmul.f32 1.442695, %v1913_v63 }
 0x479   : > { %2140 = vmatpush.msrb.mxu0 %v2135_v2  ;;  %v3831_v59 = vpop.eup %2660  ;;  %2668 = vpow2.f32 %v1933_v24  ;;  %v1937_v60 = vmul.f32 1.442695, %v1912_v45  ;;  %v1916_v43 = vsub.f32 %v3725_v18, %v3770_v20  ;;  %v1943_v29 = vmul.f32 1.442695, %v1915_v19 }
 0x47a   : > { %v1952_v49 = vadd.f32 %v3826_v47, %v1951_v25  ;;  %2670 = vpow2.f32 %v1935_v15  ;;  %v1941_v62 = vmul.f32 1.442695, %v1914_v3  ;;  %v1918_v18 = vsub.f32 %v3766_v23, %v3770_v20 }
 0x47b   : > { %2141 = vmatpush.msrb.mxu0 %v2134_v61  ;;  %v3836_v50 = vpop.eup %2662  ;;  %2672 = vpow2.f32 %v1937_v60  ;;  %v1945_v44 = vmul.f32 1.442695, %v1916_v43  ;;  %v1947_v34 = vmul.f32 1.442695, %v1917_v4  ;;  %v2123_v14 = vmul.f32 %v3671_v41, %v3785_v56  ;;  %v2692_v61 = vld [vmem:[%s3095_s23 + $0x8] sm:$0xff] }
 0x47c   : > { %v1953_v31 = vadd.f32 %v3831_v59, %v1952_v49  ;;  %2674 = vpow2.f32 %v1939_v33  ;;  %v1949_v30 = vmul.f32 1.442695, %v1918_v18  ;;  %v2122_v5 = vmul.f32 %v3669_v1, %v3785_v56 }
 0x47d   : > { %2142 = vmatpush.msrb.mxu0 %v2133_v8  ;;  %v3841_v54 = vpop.eup %2664  ;;  %2676 = vpow2.f32 %v1941_v62 }
 0x47e   : > { %v1954_v55 = vadd.f32 %v3836_v50, %v1953_v31  ;;  %v3846_v42 = vpop.eup %2666  ;;  %2678 = vpow2.f32 %v1943_v29 }
 0x47f   : > { %2143 = vmatpush.msrb.mxu0 %v2132_v0  ;;  %v3851_v26 = vpop.eup %2668  ;;  %2680 = vpow2.f32 %v1945_v44 }
 0x480   : > { %v1955_v21 = vadd.f32 %v3841_v54, %v1954_v55  ;;  %v3856_v39 = vpop.eup %2670  ;;  %2682 = vpow2.f32 %v1947_v34 }
 0x481   : > { %2144 = vmatpush.msrb.mxu0 %v2131_v12  ;;  %v2673_v36 = vpop.eup %2672  ;;  %2684 = vpow2.f32 %v1949_v30 }
 0x482   : > { %v1956_v46 = vadd.f32 %v3846_v42, %v1955_v21  ;;  %v2675_v16 = vpop.eup %2674 }
 0x483   : > { %2145 = vmatpush.msrb.mxu0 %v2130_v22  ;;  %v2677_v28 = vpop.eup %2676  ;;  %v2693_v22 = vld [vmem:[%s3095_s23 + $0x18] sm:$0xff] }
 0x484   : > { %v1957_v58 = vadd.f32 %v3851_v26, %v1956_v46  ;;  %v2679_v23 = vpop.eup %2678 }
 0x485   : > { %2146 = vmatpush.msrb.mxu0 %v2129_v7  ;;  %v2681_v13 = vpop.eup %2680 }
 0x486   : > { %v1958_v57 = vadd.f32 %v3856_v39, %v1957_v58  ;;  %v2683_v40 = vpop.eup %2682 }
 0x487   : > { %2147 = vmatpush.msrb.mxu0 %v2128_v51  ;;  %v2685_v35 = vpop.eup %2684 }
 0x488   : > { %v1959_v27 = vadd.f32 %v2673_v36, %v1958_v57 }
 0x489   : > { %2148 = vmatpush.msrb.mxu0 %v2127_v48 }
 0x48a   : > { %v1960_v6 = vadd.f32 %v2675_v16, %v1959_v27 }
 0x48b   : > { %2149 = vmatpush.msrb.mxu0 %v2126_v38 }
 0x48c   : > { %v1961_v37 = vadd.f32 %v2677_v28, %v1960_v6 }
 0x48d   : > { %2150 = vmatpush.msrb.mxu0 %v2125_v53 }
 0x48e   : > { %v1962_v20 = vadd.f32 %v2679_v23, %v1961_v37 }
 0x48f   : > { %2151 = vmatpush.msrb.mxu0 %v3824_v52 }
 0x490   : > { %v1963_v32 = vadd.f32 %v2681_v13, %v1962_v20 }
 0x491   : > { %2152 = vmatpush.msrb.mxu0 %v2123_v14 }
 0x492   : > { %v1964_v11 = vadd.f32 %v2683_v40, %v1963_v32 }
 0x493   : > { %2153 = vmatpush.msrb.mxu0 %v2122_v5 }
 0x494   : > { %v1965_v2 = vadd.f32 %v2685_v35, %v1964_v11  ;;  %2154 = vmatmul.f32.vlgmr.msrb.gmra.mxu0 %v2692_v61 }
 0x496   : > { %v1966_v8 = vrot.slane %v1965_v2, 4 }
 0x498   : > { %v1967_v0 = vadd.f32 %v1966_v8, %v1965_v2 }
 0x49a   : > { %v1968_v10 = vrot.slane %v1967_v0, 2 }
 0x49c   : > { %v1969_v12 = vadd.f32 %v1968_v10, %v1967_v0  ;;  %2157 = vmatmul.f32.gmra.mxu0 %v2693_v22 }
 0x49e   : > { %v1970_v7 = vrot.slane %v1969_v12, 1 }
 0x4a0   : > { %v1971_v51 = vadd.f32 %v1970_v7, %v1969_v12 }
 0x4a2   : > { %2686 = vrcp.f32 %v1971_v51  ;;  %v1983_v25 = vand.u32 2147483648, %v1971_v51  ;;  %v1981_v1 = vand.u32 2147483647, %v1971_v51  ;;  %vm1977_vm14 = vweird.f32 %v1971_v51 }
 0x4a4   : > { %v1984_v52 = vor.u32 1.1754944e-38, %v1983_v25  ;;  %vm1982_vm0 = vcmp.eq.f32.partialorder %v1981_v1, 8.507059e+37 }
 0x4a8   : > { %v2687_v41 = vpop.eup %2686 }
 0x4a9   : > { %v1973_v48 = vmul.f32 %v2687_v41, %v1971_v51  ;;  %vm1978_vm13 = vweird.f32 %v2687_v41 }
 0x4aa   : > { %vm1979_vm15 = vmor %vm1977_vm14, %vm1978_vm13 }
 0x4ab   : > { %v1974_v38 = vsub.f32 1.0, %v1973_v48 }
 0x4ad   : > { %v1975_v53 = vmul.f32 %v2687_v41, %v1974_v38 }
 0x4af   : > { %v1976_v56 = vadd.f32 %v2687_v41, %v1975_v53 }
 0x4b1   : > { %v1980_v45 = vsel %vm1979_vm15, %v2687_v41, %v1976_v56 }
 0x4b2   : > { %v1985_v24 = vsel %vm1982_vm0, %v1984_v52, %v1980_v45 }
 0x4b3   : > { %v2001_v49 = vmul.f32 %v2685_v35, %v1985_v24  ;;  %v2000_v63 = vmul.f32 %v2683_v40, %v1985_v24  ;;  %v1999_v15 = vmul.f32 %v2681_v13, %v1985_v24  ;;  %v1998_v31 = vmul.f32 %v2679_v23, %v1985_v24 }
 0x4b4   : > { %v1997_v3 = vmul.f32 %v2677_v28, %v1985_v24  ;;  %v1996_v60 = vmul.f32 %v2675_v16, %v1985_v24  ;;  %v1995_v55 = vmul.f32 %v2673_v36, %v1985_v24  ;;  %v1994_v19 = vmul.f32 %v3856_v39, %v1985_v24 }
 0x4b5   : > { %2161 = vmatpush.msrb.mxu1 %v2001_v49  ;;  %v1993_v33 = vmul.f32 %v3851_v26, %v1985_v24  ;;  %v1992_v21 = vmul.f32 %v3846_v42, %v1985_v24  ;;  %v1991_v43 = vmul.f32 %v3841_v54, %v1985_v24  ;;  %v1990_v62 = vmul.f32 %v3836_v50, %v1985_v24 }
 0x4b6   : > { %v1989_v46 = vmul.f32 %v3831_v59, %v1985_v24  ;;  %v1988_v4 = vmul.f32 %v3826_v47, %v1985_v24  ;;  %v1987_v29 = vmul.f32 %v3810_v17, %v1985_v24  ;;  %v1986_v58 = vmul.f32 %v3802_v9, %v1985_v24  ;;  %v2694_v9 = vld [vmem:[%s3103_s11 + $0x8] sm:$0xff]  ;;  %v2695_v17 = vld [vmem:[%s3103_s11 + $0x18] sm:$0xff] }
 0x4b7   : > { %2162 = vmatpush.msrb.mxu1 %v2000_v63 }
 0x4b9   : > { %2163 = vmatpush.msrb.mxu1 %v1999_v15 }
 0x4bb   : > { %2164 = vmatpush.msrb.mxu1 %v1998_v31 }
 0x4bd   : > { %2165 = vmatpush.msrb.mxu1 %v1997_v3 }
 0x4bf   : > { %2166 = vmatpush.msrb.mxu1 %v1996_v60 }
 0x4c1   : > { %2167 = vmatpush.msrb.mxu1 %v1995_v55 }
 0x4c3   : > { %2168 = vmatpush.msrb.mxu1 %v1994_v19 }
 0x4c5   : > { %2169 = vmatpush.msrb.mxu1 %v1993_v33 }
 0x4c7   : > { %2170 = vmatpush.msrb.mxu1 %v1992_v21 }
 0x4c9   : > { %2171 = vmatpush.msrb.mxu1 %v1991_v43 }
 0x4cb   : > { %2172 = vmatpush.msrb.mxu1 %v1990_v62 }
 0x4cd   : > { %2173 = vmatpush.msrb.mxu1 %v1989_v46 }
 0x4cf   : > { %2174 = vmatpush.msrb.mxu1 %v1988_v4 }
 0x4d1   : > { %2175 = vmatpush.msrb.mxu1 %v1987_v29 }
 0x4d3   : > { %2176 = vmatpush.msrb.mxu1 %v1986_v58 }
 0x4d4   : > { %2177 = vmatmul.f32.vlgmr.msrb.gmra.mxu1 %v2694_v9 }
 0x4dc   : > { %2180 = vmatmul.f32.gmra.mxu1 %v2695_v17 }
 0x511   : > { %v2155_v47 = vpop.f32.mrf.mxu0 }
 0x512   : > { %2184 = vst [vmem:[%s3594_s26 + $0x8] sm:$0xff] %v2155_v47 }
 0x519   : > { %v2158_v59 = vpop.f32.mrf.mxu0 }
 0x51a   : > { %2185 = vst [vmem:[%s3594_s26 + $0x18] sm:$0xff] %v2158_v59 }
 0x51b   : > { %2843 = shalt.err (!%p2840_p9)
}
 0x51c   : > { %s2934_s23 = smov 256   ;;  %s2935_s29 = smov 16  }
 0x51d   : > { %2480 = dma.vmem_to_hbm [thread:$0]  (%p3032_p3), %s2207_s6, 512, %s2209_s8, %s2189_s9, %s2934_s23, %s2934_s23, %s2935_s29  }
 0x51e   : > { %s2222_s26 = scalar_lea.hbm %s3937_s5, %s2466_s30  ;;  %s2223_s7 = sshll.u32 %s3566_s24, 4  ;;  %s2224_s7 = int_to_ptr.vmem [resolvable:$true] %s2223_s7 }
 0x51f   : > { %s2225_s13 = sshll.u32 %s2222_s26, 4  ;;  %s2194_s15 = scalar_lea.sflag [#allocation12], %s3088_s3  ;;  %s2226_s13 = int_to_ptr.hbm [resolvable:$true] %s2225_s13 }
 0x520   : > { %s2858_s10 = sshra.s32 %s2226_s13, 4  ;;  %s2864_s9 = scalar_lea.hbm %s3937_s5, 64  ;;  %s2859_s10 = int_to_ptr.hbm [resolvable:$true] %s2858_s10 }
 0x521   : > { %s2860_s12 = scalar_lea.hbm %s2859_s10, 32  ;;  %p2865_p5 = scmp.lt.s32.totalorder %s2859_s10, %s3937_s5 }
 0x522   : > { %p2861_p12 = scmp.ne.s32.totalorder %s2859_s10, %s2860_s12  ;;  %p2866_p7 = scmp.lt.s32.totalorder %s2864_s9, %s2860_s12 }
 0x524   : > { %p2862_p13 = pnand %p2861_p12, %p3032_p3  ;;  %p2867_p1 = por %p2866_p7, %p2865_p5 }
 0x526   : > { %p2863_p0 = pneg %p2862_p13 }
 0x528   : > { %p2868_p4 = pnand %p2867_p1, %p2863_p0 }
 0x551   : > { %v2178_v50 = vpop.f32.mrf.mxu1 }
 0x552   : > { %2186 = vst [vmem:[%s3566_s24 + $0x8] sm:$0xff] %v2178_v50 }
 0x559   : > { %v2181_v54 = vpop.f32.mrf.mxu1 }
 0x55a   : > { %2187 = vst [vmem:[%s3566_s24 + $0x18] sm:$0xff] %v2181_v54 }
 0x55b   : > { %2871 = shalt.err (!%p2868_p4)
}
 0x55c   : > { %2481 = dma.vmem_to_hbm [thread:$0]  (%p3032_p3), %s2224_s7, 512, %s2226_s13, %s2194_s15, %s2934_s23, %s2934_s23, %s2935_s29  }
 0x55d PF: > { %s2240_s3 = sand.u32 1, %s2914_s18   ;;  %p3952_p8 = scmp.ge.s32.totalorder %s2926_s21, 2 }
 0x55e   : > { %s2241_s24 = scalar_lea.sflag [#allocation4], %s2240_s3 }
 0x55f   : > { %p2499_p2 = pnand %p3952_p8, %p3001_p6 }
 0x561   : > { %p2500_p10 = pneg %p2499_p2 }
 0x563   : > { %2905 = dma.done.wait (%p2500_p10), %s2241_s24, 512  }
 0x564   : > { %2907 = vsyncadd (%p2500_p10), %s2241_s24, 4294966784  ;;  %s2251_s22 = scalar_lea.sflag [#allocation12], %s2240_s3 }
 0x565   : > { %2909 = dma.done.wait (%p2500_p10), %s2251_s22, 512  }
 0x566   : > { %2911 = vsyncadd (%p2500_p10), %s2251_s22, 4294966784  ;;  %s3953_s17 = sld [smem:[#allocation19_spill]]  ;;  %p26_p3 = scmp.ge.s32.totalorder %s3022_s14, 4  }
 0x567   : > { %s3954_s18 = smov %s2918_s19  ;;  %s3955_s19 = smov %s2922_s20 }
 0x568   : > { %s3957_s21 = smov %s3022_s14  ;;  %28 = sbr.rel (!%p26_p3) target bundleno = 14 (0xe), region = 119 }
 0x56c   : > { %s3956_s20 = smov %s3953_s17 }
 0x56d   :  { %2257 = vsyncpa [#allocation3], 1 }
 0x56e   :  { %2259 = vsyncpa [#allocation3 + $0x1], 1 }
 0x56f   :  { %2260 = vsyncpa [#allocation6], 1 }
 0x570   :  { %2262 = vsyncpa [#allocation6 + $0x1], 1 }
 0x571   :  { %2263 = vsyncpa [#allocation9], 1 }
 0x572   :  { %2264 = vsyncpa [#allocation4], 1 }
 0x573   :  { %2266 = vsyncpa [#allocation4 + $0x1], 1 }
 0x574   :  { %2267 = vsyncpa [#allocation12], 1 }
 0x575   :  { %2269 = vsyncpa [#allocation12 + $0x1], 1 }

</bundles_post_ra>
